<compile_context>
chip_gen: v6e
topology: v6e:2x2x1
jax: 0.10.0
libtpu: 0.0.40
codegen_flags: <defaults>
</compile_context>

<pallas_src>
import numpy as np
import jax
import jax.numpy as jnp
from jax.experimental import pallas as pl
from jax.experimental.pallas import tpu as pltpu

IN_FEATURES = 128 * 128 * 4        # 65536
HID = 100                          # hid_features
LAST = 50                          # last_channel
POOL_OUT = 16


# ----------------------------------------------------------------------------
# In-kernel math helpers (built only from ops that lower on Mosaic).
# ----------------------------------------------------------------------------
def _erf_f32(x):
    # Abramowitz & Stegun 7.1.26 rational approximation (max abs err ~1.5e-7,
    # i.e. at float32 round-off).
    p = 0.3275911
    a1, a2, a3, a4, a5 = (0.254829592, -0.284496736, 1.421413741,
                          -1.453152027, 1.061405429)
    sgn = jnp.where(x >= 0.0, 1.0, -1.0)
    ax = jnp.abs(x)
    t = 1.0 / (1.0 + p * ax)
    poly = ((((a5 * t + a4) * t + a3) * t + a2) * t + a1) * t
    return sgn * (1.0 - poly * jnp.exp(-ax * ax))


def _gelu_exact(x):
    # torch.nn.GELU() default (erf formulation).
    return 0.5 * x * (1.0 + _erf_f32(x * np.float32(1.0 / np.sqrt(2.0))))


def _softplus(x):
    # torch.nn.Softplus(): beta=1, threshold=20.
    return jnp.where(x > 20.0, x, jnp.log(1.0 + jnp.exp(jnp.minimum(x, 20.0))))


def _finalize(acc, b1, w2t, b2, head_w, head_b):
    """GELU -> to_output -> softplus -> (pool + both class heads, pre-folded)."""
    h = _gelu_exact(acc + b1)                                                # (B, 100)
    s = _softplus(jnp.dot(h, w2t, preferred_element_type=jnp.float32) + b2)  # (B, 50)
    return jnp.dot(s, head_w, preferred_element_type=jnp.float32) + head_b   # (B, n_out)


# ----------------------------------------------------------------------------
# Kernels.
# ----------------------------------------------------------------------------
def linnet_fused_kernel(x_ref, w1t_ref, b1_ref, w2t_ref, b2_ref,
                        head_w_ref, head_b_ref, out_ref, acc_ref):
    """Single-TensorCore path: K reduction + full finalize in one kernel."""
    k = pl.program_id(0)

    @pl.when(k == 0)
    def _():
        acc_ref[...] = jnp.zeros_like(acc_ref)

    # Hot path: (B, TK)bf16 @ (TK, HID)bf16 accumulated in f32 over K=65536.
    acc_ref[...] += jnp.dot(x_ref[...], w1t_ref[...],
                            preferred_element_type=jnp.float32)

    @pl.when(k == pl.num_programs(0) - 1)
    def _():
        out_ref[...] = _finalize(acc_ref[...], b1_ref[...], w2t_ref[...],
                                 b2_ref[...], head_w_ref[...], head_b_ref[...])


def linnet_reduce_kernel(x_ref, w1t_ref, partial_ref):
    """Split-K path: each 'parallel' split accumulates its slice of K into its
    own (B, HID) partial (output block resident across the reduction axis)."""
    @pl.when(pl.program_id(1) == 0)
    def _():
        partial_ref[...] = jnp.zeros_like(partial_ref)

    partial_ref[...] += jnp.dot(x_ref[...], w1t_ref[...],
                                preferred_element_type=jnp.float32)


def make_finalize_kernel(num_splits):
    def kernel(partials_ref, b1_ref, w2t_ref, b2_ref,
               head_w_ref, head_b_ref, out_ref):
        acc = partials_ref[0]
        for i in range(1, num_splits):          # static unroll (num_splits small)
            acc = acc + partials_ref[i]
        out_ref[...] = _finalize(acc, b1_ref[...], w2t_ref[...], b2_ref[...],
                                 head_w_ref[...], head_b_ref[...])
    return kernel


# ----------------------------------------------------------------------------
# Generation-aware configuration.
# ----------------------------------------------------------------------------
def _device_kind():
    try:
        return jax.devices()[0].device_kind.lower()
    except Exception:
        return ""


def default_config():
    """v7x: 2 TCs, 64 MiB VMEM/TC, 3.2 TB/s -> split K across cores, tk=32768.
    v6e: 1 TC, 32 MiB default scoped VMEM   -> tk=32768, fused single kernel.
    v5e / unknown: 16 MiB default scoped    -> tk=16384 (32768 needs ~19 MiB of
    double-buffered w1+x), fused single kernel."""
    kind = _device_kind()
    if "v7" in kind or "7x" in kind:
        return dict(tk=32768, num_k_splits=2)
    if "v6" in kind:
        return dict(tk=32768, num_k_splits=1)
    return dict(tk=16384, num_k_splits=1)


def _vmem_limit_bytes(batch, tk):
    sub = -(-batch // 16) * 16                 # bf16 sublane packing of the x tile
    w1_bufs = 2 * tk * 128 * 2                 # (tk, 100) bf16, 100 -> 128 lanes, 2 bufs
    x_bufs = 2 * sub * tk * 2                  # (B, tk) bf16, 2 bufs
    return w1_bufs + x_bufs + (8 << 20)        # + small operands / internal scratch slack


# ----------------------------------------------------------------------------
# Parameters (PyTorch layout) + one-time inference preprocessing.
# ----------------------------------------------------------------------------
def adaptive_avgpool1d_matrix(length, out_size):
    """P[j, i] = 1/window_i if j is in window i (AdaptiveAvgPool1d semantics)."""
    mat = np.zeros((length, out_size), dtype=np.float32)
    for i in range(out_size):
        start = (i * length) // out_size
        end = -((-(i + 1) * length) // out_size)    # ceil((i+1)*L/out)
        mat[start:end, i] = 1.0 / (end - start)
    return jnp.asarray(mat)


def init_linear(key, in_f, out_f):
    """PyTorch nn.Linear default init (kaiming_uniform a=sqrt(5))."""
    kw, kb = jax.random.split(key)
    bound = 1.0 / np.sqrt(in_f)
    w = jax.random.uniform(kw, (out_f, in_f), jnp.float32, -bound, bound)
    b = jax.random.uniform(kb, (out_f,), jnp.float32, -bound, bound)
    return w, b


def make_params(key, n_weather, n_terrain):
    k1, k2, k3, k4 = jax.random.split(key, 4)
    w1, b1 = init_linear(k1, IN_FEATURES, HID)
    w2, b2 = init_linear(k2, HID, LAST)
    ww, bw = init_linear(k3, POOL_OUT, n_weather)
    wt, bt = init_linear(k4, POOL_OUT, n_terrain)
    return dict(w1=w1, b1=b1, w2=w2, b2=b2, ww=ww, bw=bw, wt=wt, bt=bt)


def prepare_inference_params(params):
    """One-time weight preprocessing, hoisted out of the per-call forward:
    w1 transpose + bf16 cast, w2 transpose, AdaptiveAvgPool1d(16) + both class
    heads folded into a single fused (50, n_weather + n_terrain) weight/bias."""
    n_weather = params["ww"].shape[0]
    n_terrain = params["wt"].shape[0]
    pool_mat = adaptive_avgpool1d_matrix(LAST, POOL_OUT)                  # (50, 16)
    head_w = jnp.concatenate([pool_mat @ params["ww"].T,
                              pool_mat @ params["wt"].T], axis=1)         # (50, n_out)
    head_b = jnp.concatenate([params["bw"], params["bt"]]).reshape(1, -1)
    return dict(
        w1t_bf16=params["w1"].T.astype(jnp.bfloat16),                     # (65536, 100)
        b1=params["b1"].reshape(1, HID),
        w2t=params["w2"].T,                                               # (100, 50)
        b2=params["b2"].reshape(1, LAST),
        head_w=head_w,
        head_b=head_b,
        n_weather=n_weather,
        n_terrain=n_terrain,
    )


# ----------------------------------------------------------------------------
# Forward.
# ----------------------------------------------------------------------------
def linnet_forward(x_nchw, prep, *, tk=None, num_k_splits=None):
    cfg = default_config()
    tk = cfg["tk"] if tk is None else tk
    num_k_splits = cfg["num_k_splits"] if num_k_splits is None else num_k_splits

    B = x_nchw.shape[0]
    assert IN_FEATURES % num_k_splits == 0
    k_per_split = IN_FEATURES // num_k_splits
    assert k_per_split % tk == 0
    nk = k_per_split // tk

    # Row-major flatten matching torch x.reshape(-1, 65536); x/w1 streamed in
    # bf16 (HBM-bound path), accumulated in f32 on the MXU.
    x2d = x_nchw.reshape(B, IN_FEATURES).astype(jnp.bfloat16)
    n_out = prep["head_w"].shape[1]

    compiler_params = pltpu.CompilerParams(
        dimension_semantics=(("arbitrary",) if num_k_splits == 1
                             else ("parallel", "arbitrary")),
        vmem_limit_bytes=_vmem_limit_bytes(B, tk))

    tail_flops = 2 * B * (HID * LAST + LAST * n_out)
    main_cost = pl.CostEstimate(
        flops=2 * B * IN_FEATURES * HID + (tail_flops if num_k_splits == 1 else 0),
        transcendentals=(B * (HID + 2 * LAST)) if num_k_splits == 1 else 0,
        bytes_accessed=(B * IN_FEATURES * 2            # x  (bf16)
                        + IN_FEATURES * HID * 2        # w1 (bf16)
                        + num_k_splits * B * HID * 4   # partials / acc
                        + B * n_out * 4))

    if num_k_splits == 1:
        # Fully fused single-kernel path (v5e / v6e: one TensorCore).
        out = pl.pallas_call(
            linnet_fused_kernel,
            out_shape=jax.ShapeDtypeStruct((B, n_out), jnp.float32),
            grid_spec=pltpu.PrefetchScalarGridSpec(
                num_scalar_prefetch=0,
                grid=(nk,),
                in_specs=[
                    pl.BlockSpec((B, tk), lambda k: (0, k)),           # x (bf16)
                    pl.BlockSpec((tk, HID), lambda k: (k, 0)),         # w1^T tile (bf16)
                    pl.BlockSpec((1, HID), lambda k: (0, 0)),          # b1
                    pl.BlockSpec((HID, LAST), lambda k: (0, 0)),       # w2^T
                    pl.BlockSpec((1, LAST), lambda k: (0, 0)),         # b2
                    pl.BlockSpec((LAST, n_out), lambda k: (0, 0)),     # fused head w
                    pl.BlockSpec((1, n_out), lambda k: (0, 0)),        # fused head b
                ],
                out_specs=pl.BlockSpec((B, n_out), lambda k: (0, 0)),
                scratch_shapes=[pltpu.VMEM((B, HID), jnp.float32)],
            ),
            compiler_params=compiler_params,
            cost_estimate=main_cost,
        )(x2d, prep["w1t_bf16"], prep["b1"], prep["w2t"], prep["b2"],
          prep["head_w"], prep["head_b"])
    else:
        # v7x path: leading 'parallel' axis splits K across the 2 TensorCores.
        partials = pl.pallas_call(
            linnet_reduce_kernel,
            out_shape=jax.ShapeDtypeStruct((num_k_splits, B, HID), jnp.float32),
            grid_spec=pltpu.PrefetchScalarGridSpec(
                num_scalar_prefetch=0,
                grid=(num_k_splits, nk),
                in_specs=[
                    pl.BlockSpec((B, tk), lambda c, k: (0, c * nk + k)),
                    pl.BlockSpec((tk, HID), lambda c, k: (c * nk + k, 0)),
                ],
                out_specs=pl.BlockSpec((None, B, HID), lambda c, k: (c, 0, 0)),
            ),
            compiler_params=compiler_params,
            cost_estimate=main_cost,
        )(x2d, prep["w1t_bf16"])

        out = pl.pallas_call(
            make_finalize_kernel(num_k_splits),
            out_shape=jax.ShapeDtypeStruct((B, n_out), jnp.float32),
            grid_spec=pltpu.PrefetchScalarGridSpec(
                num_scalar_prefetch=0,
                grid=(1,),
                in_specs=[
                    pl.BlockSpec((num_k_splits, B, HID), lambda i: (0, 0, 0)),
                    pl.BlockSpec((1, HID), lambda i: (0, 0)),
                    pl.BlockSpec((HID, LAST), lambda i: (0, 0)),
                    pl.BlockSpec((1, LAST), lambda i: (0, 0)),
                    pl.BlockSpec((LAST, n_out), lambda i: (0, 0)),
                    pl.BlockSpec((1, n_out), lambda i: (0, 0)),
                ],
                out_specs=pl.BlockSpec((B, n_out), lambda i: (0, 0)),
            ),
            cost_estimate=pl.CostEstimate(
                flops=tail_flops,
                transcendentals=B * (HID + 2 * LAST),
                bytes_accessed=(num_k_splits * B * HID + HID * (LAST + 1)
                                + LAST * (n_out + 1) + B * n_out) * 4),
        )(partials, prep["b1"], prep["w2t"], prep["b2"],
          prep["head_w"], prep["head_b"])

    nw = prep["n_weather"]
    return {"weather": out[:, :nw], "terrain": out[:, nw:]}


def linnet_reference(x_nchw, params):
    """Pure-JAX f32 reference mirroring the PyTorch forward (eval mode)."""
    B = x_nchw.shape[0]
    x2d = x_nchw.reshape(B, IN_FEATURES).astype(jnp.float32)
    h = jax.nn.gelu(x2d @ params["w1"].T + params["b1"], approximate=False)
    s = jax.nn.softplus(h @ params["w2"].T + params["b2"])
    p = s @ adaptive_avgpool1d_matrix(LAST, POOL_OUT)
    return {
        "weather": p @ params["ww"].T + params["bw"],
        "terrain": p @ params["wt"].T + params["bt"],
    }


if __name__ == "__main__":
    B = 2
    N_WEATHER = 5
    N_TERRAIN = 7

    key = jax.random.PRNGKey(0)
    k_x, k_p = jax.random.split(key)
    # NCHW input, flattened exactly like torch reshape(-1, 65536). The 65536-in
    # Linear hard-wires the spatial size, so (4, 128, 128) is the minimal shape.
    x = jax.random.normal(k_x, (B, 4, 128, 128), dtype=jnp.float32)
    params = make_params(k_p, N_WEATHER, N_TERRAIN)
    prep = prepare_inference_params(params)     # one-time weight prep (hoisted)

    ref = linnet_reference(x, params)

    def check(out):
        # Tolerance accounts for bf16 streaming of x/w1 (f32 MXU accumulation).
        np.testing.assert_allclose(np.asarray(out["weather"]),
                                   np.asarray(ref["weather"]), rtol=5e-3, atol=5e-3)
        np.testing.assert_allclose(np.asarray(out["terrain"]),
                                   np.asarray(ref["terrain"]), rtol=5e-3, atol=5e-3)

    # 1) Device-tuned default (tk / core-split chosen per TPU generation).
    out = linnet_forward(x, prep)
    jax.block_until_ready(out)
    check(out)

    # 2) Explicitly exercise both code paths so each stays correct everywhere.
    out_fused = linnet_forward(x, prep, tk=16384, num_k_splits=1)
    jax.block_until_ready(out_fused)
    check(out_fused)

    out_split = linnet_forward(x, prep, tk=16384, num_k_splits=2)
    jax.block_until_ready(out_split)
    check(out_split)

    print("KERNEL_OK")
</pallas_src>

<mosaic_0001>
module attributes {stable_mosaic.version = 11 : i64} {
  func.func @linnet_fused_kernel(%arg0: i32, %arg1: memref<2x16384xbf16, #tpu.memory_space<vmem>>, %arg2: memref<16384x100xbf16, #tpu.memory_space<vmem>>, %arg3: memref<1x100xf32, #tpu.memory_space<vmem>>, %arg4: memref<100x50xf32, #tpu.memory_space<vmem>>, %arg5: memref<1x50xf32, #tpu.memory_space<vmem>>, %arg6: memref<50x12xf32, #tpu.memory_space<vmem>>, %arg7: memref<1x12xf32, #tpu.memory_space<vmem>>, %arg8: memref<2x12xf32, #tpu.memory_space<vmem>>, %arg9: memref<2x100xf32, #tpu.memory_space<vmem>>) attributes {dimension_semantics = [#tpu.dimension_semantics<arbitrary>], iteration_bounds = array<i64: 4>, scalar_prefetch = 0 : i64, scratch_operands = 1 : i64, tpu.core_type = #tpu.core_type<tc>, window_params = [{transform_indices = @transform_0, window_bounds = array<i64: 2, 16384>}, {transform_indices = @transform_1, window_bounds = array<i64: 16384, 100>}, {pipeline_mode = #tpu.pipeline_mode<synchronous>, transform_indices = @transform_2, window_bounds = array<i64: 1, 100>}, {pipeline_mode = #tpu.pipeline_mode<synchronous>, transform_indices = @transform_3, window_bounds = array<i64: 100, 50>}, {pipeline_mode = #tpu.pipeline_mode<synchronous>, transform_indices = @transform_4, window_bounds = array<i64: 1, 50>}, {pipeline_mode = #tpu.pipeline_mode<synchronous>, transform_indices = @transform_5, window_bounds = array<i64: 50, 12>}, {pipeline_mode = #tpu.pipeline_mode<synchronous>, transform_indices = @transform_6, window_bounds = array<i64: 1, 12>}, {pipeline_mode = #tpu.pipeline_mode<synchronous>, transform_indices = @transform_7, window_bounds = array<i64: 2, 12>}]} {
    %c0_i32 = arith.constant 0 : i32
    %0 = arith.cmpi eq, %arg0, %c0_i32 : i32
    %1 = arith.extui %0 : i1 to i32
    %c0_i32_0 = arith.constant 0 : i32
    %2 = arith.cmpi ne, %1, %c0_i32_0 : i32
    scf.if %2 {
      %cst_9 = arith.constant 0.000000e+00 : f32
      %12 = vector.broadcast %cst_9 : f32 to vector<2x100xf32>
      %c0_10 = arith.constant 0 : index
      %c0_11 = arith.constant 0 : index
      %13 = vector.load %arg9[%c0_10, %c0_11] : memref<2x100xf32, #tpu.memory_space<vmem>>, vector<2x100xf32>
      tpu.vector_store %arg9[%c0_10, %c0_11], %12 {strides = array<i32>} : memref<2x100xf32, #tpu.memory_space<vmem>>, vector<2x100xf32>,
    } else {
    }
    %c0 = arith.constant 0 : index
    %c0_1 = arith.constant 0 : index
    %3 = vector.load %arg9[%c0, %c0_1] : memref<2x100xf32, #tpu.memory_space<vmem>>, vector<2x100xf32>
    %c0_2 = arith.constant 0 : index
    %c0_3 = arith.constant 0 : index
    %4 = vector.load %arg1[%c0_2, %c0_3] : memref<2x16384xbf16, #tpu.memory_space<vmem>>, vector<2x16384xbf16>
    %c0_4 = arith.constant 0 : index
    %c0_5 = arith.constant 0 : index
    %5 = vector.load %arg2[%c0_4, %c0_5] : memref<16384x100xbf16, #tpu.memory_space<vmem>>, vector<16384x100xbf16>
    %cst = arith.constant dense<0.000000e+00> : vector<2x100xf32>
    %6 = tpu.matmul %4, %5, %cst {dimension_numbers = #tpu.dot_dimension_numbers<[1], [0], [0], [1], [0, 0, 1, 1], [], []>} : vector<2x16384xbf16>, vector<16384x100xbf16>, vector<2x100xf32> -> vector<2x100xf32>
    %7 = arith.addf %3, %6 : vector<2x100xf32>
    %c0_6 = arith.constant 0 : index
    %c0_7 = arith.constant 0 : index
    %8 = vector.load %arg9[%c0_6, %c0_7] : memref<2x100xf32, #tpu.memory_space<vmem>>, vector<2x100xf32>
    tpu.vector_store %arg9[%c0_6, %c0_7], %7 {strides = array<i32>} : memref<2x100xf32, #tpu.memory_space<vmem>>, vector<2x100xf32>,
    %c3_i32 = arith.constant 3 : i32
    %9 = arith.cmpi eq, %arg0, %c3_i32 : i32
    %10 = arith.extui %9 : i1 to i32
    %c0_i32_8 = arith.constant 0 : i32
    %11 = arith.cmpi ne, %10, %c0_i32_8 : i32
    scf.if %11 {
      %c0_9 = arith.constant 0 : index
      %c0_10 = arith.constant 0 : index
      %12 = vector.load %arg9[%c0_9, %c0_10] : memref<2x100xf32, #tpu.memory_space<vmem>>, vector<2x100xf32>
      %c0_11 = arith.constant 0 : index
      %c0_12 = arith.constant 0 : index
      %13 = vector.load %arg3[%c0_11, %c0_12] : memref<1x100xf32, #tpu.memory_space<vmem>>, vector<1x100xf32>
      %c0_13 = arith.constant 0 : index
      %c0_14 = arith.constant 0 : index
      %14 = vector.load %arg4[%c0_13, %c0_14] : memref<100x50xf32, #tpu.memory_space<vmem>>, vector<100x50xf32>
      %c0_15 = arith.constant 0 : index
      %c0_16 = arith.constant 0 : index
      %15 = vector.load %arg5[%c0_15, %c0_16] : memref<1x50xf32, #tpu.memory_space<vmem>>, vector<1x50xf32>
      %c0_17 = arith.constant 0 : index
      %c0_18 = arith.constant 0 : index
      %16 = vector.load %arg6[%c0_17, %c0_18] : memref<50x12xf32, #tpu.memory_space<vmem>>, vector<50x12xf32>
      %c0_19 = arith.constant 0 : index
      %c0_20 = arith.constant 0 : index
      %17 = vector.load %arg7[%c0_19, %c0_20] : memref<1x12xf32, #tpu.memory_space<vmem>>, vector<1x12xf32>
      %18 = vector.broadcast %13 : vector<1x100xf32> to vector<2x100xf32>
      %19 = arith.addf %12, %18 : vector<2x100xf32>
      %cst_21 = arith.constant 5.000000e-01 : f32
      %20 = vector.broadcast %cst_21 : f32 to vector<2x100xf32>
      %21 = arith.mulf %20, %19 : vector<2x100xf32>
      %cst_22 = arith.constant 0.707106769 : f32
      %22 = vector.broadcast %cst_22 : f32 to vector<2x100xf32>
      %23 = arith.mulf %19, %22 : vector<2x100xf32>
      %cst_23 = arith.constant 0.000000e+00 : f32
      %24 = vector.broadcast %cst_23 : f32 to vector<2x100xf32>
      %25 = arith.cmpf oge, %23, %24 : vector<2x100xf32>
      %cst_24 = arith.constant 1.000000e+00 : f32
      %cst_25 = arith.constant -1.000000e+00 : f32
      %26 = vector.broadcast %cst_24 : f32 to vector<2x100xf32>
      %27 = vector.broadcast %cst_25 : f32 to vector<2x100xf32>
      %28 = arith.select %25, %26, %27 : vector<2x100xi1>, vector<2x100xf32>
      %29 = math.absf %23 : vector<2x100xf32>
      %cst_26 = arith.constant 0.327591091 : f32
      %30 = vector.broadcast %cst_26 : f32 to vector<2x100xf32>
      %31 = arith.mulf %30, %29 : vector<2x100xf32>
      %cst_27 = arith.constant 1.000000e+00 : f32
      %32 = vector.broadcast %cst_27 : f32 to vector<2x100xf32>
      %33 = arith.addf %32, %31 : vector<2x100xf32>
      %cst_28 = arith.constant 1.000000e+00 : f32
      %34 = vector.broadcast %cst_28 : f32 to vector<2x100xf32>
      %35 = arith.divf %34, %33 : vector<2x100xf32>
      %cst_29 = arith.constant 1.06140542 : f32
      %36 = vector.broadcast %cst_29 : f32 to vector<2x100xf32>
      %37 = arith.mulf %36, %35 : vector<2x100xf32>
      %cst_30 = arith.constant -1.45315206 : f32
      %38 = vector.broadcast %cst_30 : f32 to vector<2x100xf32>
      %39 = arith.addf %37, %38 : vector<2x100xf32>
      %40 = arith.mulf %39, %35 : vector<2x100xf32>
      %cst_31 = arith.constant 1.42141378 : f32
      %41 = vector.broadcast %cst_31 : f32 to vector<2x100xf32>
      %42 = arith.addf %40, %41 : vector<2x100xf32>
      %43 = arith.mulf %42, %35 : vector<2x100xf32>
      %cst_32 = arith.constant -0.284496725 : f32
      %44 = vector.broadcast %cst_32 : f32 to vector<2x100xf32>
      %45 = arith.addf %43, %44 : vector<2x100xf32>
      %46 = arith.mulf %45, %35 : vector<2x100xf32>
      %cst_33 = arith.constant 0.254829586 : f32
      %47 = vector.broadcast %cst_33 : f32 to vector<2x100xf32>
      %48 = arith.addf %46, %47 : vector<2x100xf32>
      %49 = arith.mulf %48, %35 : vector<2x100xf32>
      %cst_34 = arith.constant 0.000000e+00 : f32
      %50 = vector.broadcast %cst_34 : f32 to vector<2x100xf32>
      %51 = arith.subf %50, %29 : vector<2x100xf32>
      %52 = arith.mulf %51, %29 : vector<2x100xf32>
      %53 = math.exp %52 : vector<2x100xf32>
      %54 = arith.mulf %49, %53 : vector<2x100xf32>
      %cst_35 = arith.constant 1.000000e+00 : f32
      %55 = vector.broadcast %cst_35 : f32 to vector<2x100xf32>
      %56 = arith.subf %55, %54 : vector<2x100xf32>
      %57 = arith.mulf %28, %56 : vector<2x100xf32>
      %cst_36 = arith.constant 1.000000e+00 : f32
      %58 = vector.broadcast %cst_36 : f32 to vector<2x100xf32>
      %59 = arith.addf %58, %57 : vector<2x100xf32>
      %60 = arith.mulf %21, %59 : vector<2x100xf32>
      %cst_37 = arith.constant dense<0.000000e+00> : vector<2x50xf32>
      %61 = tpu.matmul %60, %14, %cst_37 {dimension_numbers = #tpu.dot_dimension_numbers<[1], [0], [0], [1], [0, 0, 1, 1], [], []>} : vector<2x100xf32>, vector<100x50xf32>, vector<2x50xf32> -> vector<2x50xf32>
      %62 = vector.broadcast %15 : vector<1x50xf32> to vector<2x50xf32>
      %63 = arith.addf %61, %62 : vector<2x50xf32>
      %cst_38 = arith.constant 2.000000e+01 : f32
      %64 = vector.broadcast %cst_38 : f32 to vector<2x50xf32>
      %65 = arith.cmpf ogt, %63, %64 : vector<2x50xf32>
      %cst_39 = arith.constant 2.000000e+01 : f32
      %66 = vector.broadcast %cst_39 : f32 to vector<2x50xf32>
      %67 = arith.minimumf %63, %66 : vector<2x50xf32>
      %68 = math.exp %67 : vector<2x50xf32>
      %cst_40 = arith.constant 1.000000e+00 : f32
      %69 = vector.broadcast %cst_40 : f32 to vector<2x50xf32>
      %70 = arith.addf %69, %68 : vector<2x50xf32>
      %71 = math.log %70 : vector<2x50xf32>
      %72 = arith.select %65, %63, %71 : vector<2x50xi1>, vector<2x50xf32>
      %cst_41 = arith.constant dense<0.000000e+00> : vector<2x12xf32>
      %73 = tpu.matmul %72, %16, %cst_41 {dimension_numbers = #tpu.dot_dimension_numbers<[1], [0], [0], [1], [0, 0, 1, 1], [], []>} : vector<2x50xf32>, vector<50x12xf32>, vector<2x12xf32> -> vector<2x12xf32>
      %74 = vector.broadcast %17 : vector<1x12xf32> to vector<2x12xf32>
      %75 = arith.addf %73, %74 : vector<2x12xf32>
      %c0_42 = arith.constant 0 : index
      %c0_43 = arith.constant 0 : index
      %76 = vector.load %arg8[%c0_42, %c0_43] : memref<2x12xf32, #tpu.memory_space<vmem>>, vector<2x12xf32>
      tpu.vector_store %arg8[%c0_42, %c0_43], %75 {strides = array<i32>} : memref<2x12xf32, #tpu.memory_space<vmem>>, vector<2x12xf32>,
    } else {
    }
    return
  }
  func.func @transform_0(%arg0: i32) -> (i32, i32) {
    %c0_i32 = arith.constant 0 : i32
    %c0_i32_0 = arith.constant 0 : i32
    return %c0_i32, %arg0 : i32, i32
  }
  func.func @transform_1(%arg0: i32) -> (i32, i32) {
    %c0_i32 = arith.constant 0 : i32
    %c0_i32_0 = arith.constant 0 : i32
    return %arg0, %c0_i32 : i32, i32
  }
  func.func @transform_2(%arg0: i32) -> (i32, i32) {
    %c0_i32 = arith.constant 0 : i32
    %c0_i32_0 = arith.constant 0 : i32
    %c0_i32_1 = arith.constant 0 : i32
    return %c0_i32, %c0_i32_0 : i32, i32
  }
  func.func @transform_3(%arg0: i32) -> (i32, i32) {
    %c0_i32 = arith.constant 0 : i32
    %c0_i32_0 = arith.constant 0 : i32
    %c0_i32_1 = arith.constant 0 : i32
    return %c0_i32, %c0_i32_0 : i32, i32
  }
  func.func @transform_4(%arg0: i32) -> (i32, i32) {
    %c0_i32 = arith.constant 0 : i32
    %c0_i32_0 = arith.constant 0 : i32
    %c0_i32_1 = arith.constant 0 : i32
    return %c0_i32, %c0_i32_0 : i32, i32
  }
  func.func @transform_5(%arg0: i32) -> (i32, i32) {
    %c0_i32 = arith.constant 0 : i32
    %c0_i32_0 = arith.constant 0 : i32
    %c0_i32_1 = arith.constant 0 : i32
    return %c0_i32, %c0_i32_0 : i32, i32
  }
  func.func @transform_6(%arg0: i32) -> (i32, i32) {
    %c0_i32 = arith.constant 0 : i32
    %c0_i32_0 = arith.constant 0 : i32
    %c0_i32_1 = arith.constant 0 : i32
    return %c0_i32, %c0_i32_0 : i32, i32
  }
  func.func @transform_7(%arg0: i32) -> (i32, i32) {
    %c0_i32 = arith.constant 0 : i32
    %c0_i32_0 = arith.constant 0 : i32
    %c0_i32_1 = arith.constant 0 : i32
    return %c0_i32, %c0_i32_0 : i32, i32
  }
}

</mosaic_0001>

<bundles_post_ra>
// kernel: tpu_custom_call.1
= control target key start
LH: loop header
LB: loop body
LE: loop exit
PB: predicated region body
PF: predicated region fallthrough
CT: control target
= control target key end

     0   :  { %12 = vsyncpa [#allocation4], 0  ;;  %s15958_s24 = smov 0   ;;  %s17378_s0 = inlined_call_operand.vmem [shape: bf16[2,65536], index: 0, kind: input, shape index: {}]   ;;  %s17379_s1 = inlined_call_operand.vmem [shape: bf16[65536,100], index: 1, kind: input, shape index: {}]   ;;  %s17380_s2 = inlined_call_operand.vmem [shape: f32[1,100], index: 2, kind: input, shape index: {}]   ;;  %s17381_s3 = inlined_call_operand.vmem [shape: f32[100,50], index: 3, kind: input, shape index: {}]   ;;  %s17382_s4 = inlined_call_operand.vmem [shape: f32[1,50], index: 4, kind: input, shape index: {}]   ;;  %s17383_s5 = inlined_call_operand.vmem [shape: f32[50,12], index: 5, kind: input, shape index: {}]   ;;  %s17384_s6 = inlined_call_operand.vmem [shape: f32[1,12], index: 6, kind: input, shape index: {}]   ;;  %s17385_s7 = inlined_call_operand.hbm [shape: f32[2,12], index: 7, kind: output, shape index: {}]  }
   0x1 LB: > { %s15964_s25 = sadd.s32 4294967295, %s15910_s24   ;;  %p12291_p0 = scmp.ge.s32.totalorder %s15910_s24, 1  ;;  %s15910_s24 = sphi %s15958_s24, %s18_s24  }
   0x2   : > { %p244_p1 = scmp.lt.s32.totalorder %s15910_s24, 5 }
   0x4   : > { %p245_p2 = pnand %p12291_p0, %p244_p1 }
   0x5   : > { %s12292_s26 = sshll.u32 (!%p245_p2), %s15964_s25, 7  ;;  %s12293_s27 = sshll.u32 (!%p245_p2), %s15964_s25, 11 }
   0x6   : > { %248 = sbr.rel (%p245_p2) target bundleno = 1752 (0x6d8), region = 48  ;;  %p276_p3 = scmp.lt.s32.totalorder (!%p245_p2), %s12292_s26, 511 }
   0x7   : > { %p281_p4 = scmp.lt.s32.totalorder (!%p245_p2), %s12293_s27, 8191  ;;  %p12295_p5 = scmp.ne.s32.totalorder (!%p245_p2), %s15964_s25, 0 }
   0xb   : > { %s17387_s26 = smov (!%p276_p3, %s12292_s26), 511  ;;  %s17389_s27 = smov (!%p281_p4, %s12293_s27), 8191 }
   0xc   : > { %s15973_s30 = scalar_lea.vmem %s17378_s0, %s17387_s26  ;;  %s12294_s8 = sshll.u32 %s17389_s27, 2 }
   0xd   : > { %s15978_s11 = scalar_lea.vmem %s17379_s1, %s12294_s8  ;;  %290 = sbr.rel (%p12295_p5) target bundleno = 20 (0x14), region = 52 }
  0x12   : > { %vm291_vm0 = vcmask 812032   ;;  %v15912_v0 = vmov 0.0  }
  0x13   : > { %292 = vst.msk [vmem:[#allocation2] sm:$0x3] %vm291_vm0, %v15912_v0 }
  0x14 PF: > { %v14828_v1 = vld [vmem:[%s15978_s11 + $0x78] sm:$0xff]   ;;  %v14832_v5 = vld [vmem:[%s15978_s11 + $0x70] sm:$0xff]   ;;  %v14836_v9 = vld [vmem:[%s15978_s11 + $0x68] sm:$0xff]   ;;  %v2378_v29 = vlaneseq  ;;  %v15913_v37 = vmov 1966171168   ;;  %vm11991_vm1 = vcmask 812032  }
  0x15   : > { %v14829_v2 = vld [vmem:[%s15978_s11 + $0xf8] sm:$0xff]   ;;  %13332 = vmatprep.subr.bf16.mxu0 %v14828_v1  ;;  %v14833_v6 = vld [vmem:[%s15978_s11 + $0xf0] sm:$0xff]   ;;  %v14837_v10 = vld [vmem:[%s15978_s11 + $0xe8] sm:$0xff]   ;;  %v2376_v38 = vunpack.c.l.s4 %v15913_v37  ;;  %p13320_p6 = scmp.ne.s32.totalorder %s15964_s25, 3 }
  0x16   : > { %v14830_v3 = vld [vmem:[%s15978_s11 + $0x38] sm:$0xff]   ;;  %13354 = vmatprep.subr.bf16.mxu1 %v14829_v2  ;;  %v14834_v7 = vld [vmem:[%s15978_s11 + $0x30] sm:$0xff]   ;;  %v14838_v11 = vld [vmem:[%s15978_s11 + $0x28] sm:$0xff]   ;;  %v2379_v34 = vshrl.u32 %v2378_v29, 7 }
  0x17   : > { %v14831_v4 = vld [vmem:[%s15978_s11 + $0xb8] sm:$0xff]   ;;  %13333 = vmatpush3.bf16.msra.mxu0 %v14830_v3  ;;  %v14835_v8 = vld [vmem:[%s15978_s11 + $0xb0] sm:$0xff]   ;;  %v14839_v12 = vld [vmem:[%s15978_s11 + $0xa8] sm:$0xff]   ;;  %v2377_v41 = vunpack.c.0.s8 %v2376_v38 }
  0x18   : > { %13355 = vmatpush3.bf16.msra.mxu1 %v14831_v4  ;;  %13334 = vmatprep.subr.bf16.mxu0 %v14832_v5  ;;  %v14840_v13 = vld [vmem:[%s15978_s11 + $0x60] sm:$0xff]   ;;  %v14844_v17 = vld [vmem:[%s15978_s11 + $0x58] sm:$0xff]   ;;  %v14848_v21 = vld [vmem:[%s15978_s11 + $0x50] sm:$0xff]  }
  0x19   : > { %13356 = vmatprep.subr.bf16.mxu1 %v14833_v6  ;;  %v14841_v14 = vld [vmem:[%s15978_s11 + $0xe0] sm:$0xff]   ;;  %v14845_v18 = vld [vmem:[%s15978_s11 + $0xd8] sm:$0xff]   ;;  %v14849_v22 = vld [vmem:[%s15978_s11 + $0xd0] sm:$0xff]   ;;  %v16016_v42 = vsub.s32 %v2377_v41, %v2379_v34 }
  0x1a   : > { %v14842_v15 = vld [vmem:[%s15978_s11 + $0x20] sm:$0xff]   ;;  %v14846_v19 = vld [vmem:[%s15978_s11 + $0x18] sm:$0xff]   ;;  %v14850_v23 = vld [vmem:[%s15978_s11 + $0x10] sm:$0xff]  }
  0x1b   : > { %13335 = vmatpush3.bf16.msra.mxu0 %v14834_v7  ;;  %v14843_v16 = vld [vmem:[%s15978_s11 + $0xa0] sm:$0xff]   ;;  %v14847_v20 = vld [vmem:[%s15978_s11 + $0x98] sm:$0xff]   ;;  %v14851_v24 = vld [vmem:[%s15978_s11 + $0x90] sm:$0xff]  }
  0x1c   : > { %13357 = vmatpush3.bf16.msra.mxu1 %v14835_v8  ;;  %13336 = vmatprep.subr.bf16.mxu0 %v14836_v9  ;;  %v14852_v25 = vld [vmem:[%s15978_s11 + $0x48] sm:$0xff]   ;;  %v14856_v30 = vld [vmem:[%s15978_s11 + $0x40] sm:$0xff]   ;;  %v14861_v36 = vld [vmem:[%s15978_s11 + $0x178] sm:$0xff]  }
  0x1d   : > { %13358 = vmatprep.subr.bf16.mxu1 %v14837_v10  ;;  %v14853_v26 = vld [vmem:[%s15978_s11 + $0xc8] sm:$0xff]   ;;  %v14857_v31 = vld [vmem:[%s15978_s11 + $0xc0] sm:$0xff]   ;;  %v14862_v39 = vld [vmem:[%s15978_s11 + $0x1f8] sm:$0xff]  }
  0x1e   : > { %v14854_v27 = vld [vmem:[%s15978_s11 + $0x8] sm:$0xff]   ;;  %v14858_v32 = vld [vmem:[%s15978_s11] sm:$0xff]   ;;  %v14863_v48 = vld [vmem:[%s15978_s11 + $0x138] sm:$0xff]  }
  0x1f   : > { %13337 = vmatpush3.bf16.msra.mxu0 %v14838_v11  ;;  %v14855_v28 = vld [vmem:[%s15978_s11 + $0x88] sm:$0xff]   ;;  %v14859_v33 = vld [vmem:[%s15978_s11 + $0x80] sm:$0xff]   ;;  %v14864_v50 = vld [vmem:[%s15978_s11 + $0x1b8] sm:$0xff]  }
  0x20   : > { %13359 = vmatpush3.bf16.msra.mxu1 %v14839_v12  ;;  %13338 = vmatprep.subr.bf16.mxu0 %v14840_v13  ;;  %v294_v35 = vld [vmem:[%s15973_s30] sm:$0xff]  ;;  %v14865_v53 = vld [vmem:[%s15978_s11 + $0x170] sm:$0xff]   ;;  %v14869_v59 = vld [vmem:[%s15978_s11 + $0x168] sm:$0xff]  }
  0x21   : > { %13360 = vmatprep.subr.bf16.mxu1 %v14841_v14  ;;  %v2374_v40 = vcombine.high %v294_v35, %v294_v35  ;;  %v2381_v43 = vrot.slane %v294_v35, %v16016_v42  ;;  %v14866_v55 = vld [vmem:[%s15978_s11 + $0x1f0] sm:$0xff]   ;;  %v14870_v60 = vld [vmem:[%s15978_s11 + $0x1e8] sm:$0xff]   ;;  %v14873_v63 = vld [vmem:[%s15978_s11 + $0x160] sm:$0xff]  }
  0x22   : > { %v14867_v56 = vld [vmem:[%s15978_s11 + $0x130] sm:$0xff]   ;;  %v14871_v61 = vld [vmem:[%s15978_s11 + $0x128] sm:$0xff]   ;;  %v14874_v0 = vld [vmem:[%s15978_s11 + $0x1e0] sm:$0xff]  }
  0x23   : > { %13339 = vmatpush3.bf16.msra.mxu0 %v14842_v15  ;;  %v16020_v44 = vrot.slane %v2374_v40, %v16016_v42  ;;  %v2389_v45 = vcombine.high %v2381_v43, %v2381_v43  ;;  %v2397_v46 = vrot.slane %v2381_v43, %v16016_v42  ;;  %v14868_v58 = vld [vmem:[%s15978_s11 + $0x1b0] sm:$0xff]   ;;  %v14872_v62 = vld [vmem:[%s15978_s11 + $0x1a8] sm:$0xff]   ;;  %v14875_v1 = vld [vmem:[%s15978_s11 + $0x120] sm:$0xff]  }
  0x24   : > { %13361 = vmatpush3.bf16.msra.mxu1 %v14843_v16  ;;  %13340 = vmatprep.subr.bf16.mxu0 %v14844_v17  ;;  %v14876_v2 = vld [vmem:[%s15978_s11 + $0x1a0] sm:$0xff]   ;;  %v14877_v3 = vld [vmem:[%s15978_s11 + $0x158] sm:$0xff]   ;;  %v14881_v7 = vld [vmem:[%s15978_s11 + $0x150] sm:$0xff]  }
  0x25   : > { %13362 = vmatprep.subr.bf16.mxu1 %v14845_v18  ;;  %v2390_v47 = vcombine.high %v16020_v44, %v16020_v44  ;;  %v2411_v49 = vrot.slane %v2389_v45, %v16016_v42  ;;  %v2419_v52 = vcombine.high %v2397_v46, %v2397_v46  ;;  %v14878_v4 = vld [vmem:[%s15978_s11 + $0x1d8] sm:$0xff]   ;;  %v14882_v8 = vld [vmem:[%s15978_s11 + $0x1d0] sm:$0xff]   ;;  %v14885_v11 = vld [vmem:[%s15978_s11 + $0x148] sm:$0xff]  }
  0x26   : > { %v14879_v5 = vld [vmem:[%s15978_s11 + $0x118] sm:$0xff]   ;;  %v14883_v9 = vld [vmem:[%s15978_s11 + $0x110] sm:$0xff]   ;;  %v14886_v12 = vld [vmem:[%s15978_s11 + $0x1c8] sm:$0xff]  }
  0x27   : > { %13341 = vmatpush3.bf16.msra.mxu0 %v14846_v19  ;;  %v2418_v51 = vrot.slane %v2390_v47, %v16016_v42  ;;  %9462 = vmatprep.mubr.bf16.mxu0 %v2411_v49  ;;  %v2421_v54 = vcombine.high %v2411_v49, %v2411_v49  ;;  %v14880_v6 = vld [vmem:[%s15978_s11 + $0x198] sm:$0xff]   ;;  %v14884_v10 = vld [vmem:[%s15978_s11 + $0x190] sm:$0xff]   ;;  %v14887_v13 = vld [vmem:[%s15978_s11 + $0x108] sm:$0xff]   ;;  %v2404_v19 = vrot.slane %v16020_v44, %v16016_v42 }
  0x28   : > { %13363 = vmatpush3.bf16.msra.mxu1 %v14847_v20  ;;  %13342 = vmatprep.subr.bf16.mxu0 %v14848_v21  ;;  %v14888_v14 = vld [vmem:[%s15978_s11 + $0x188] sm:$0xff]   ;;  %v14889_v15 = vld [vmem:[%s15978_s11 + $0x140] sm:$0xff]   ;;  %v14893_v20 = vld [vmem:[%s15978_s11 + $0x278] sm:$0xff]  }
  0x29   : > { %13364 = vmatprep.subr.bf16.mxu1 %v14849_v22  ;;  %v2422_v57 = vcombine.high %v2418_v51, %v2418_v51  ;;  %9502 = vmatprep.mubr.bf16.mxu1 %v2421_v54  ;;  %v14890_v16 = vld [vmem:[%s15978_s11 + $0x1c0] sm:$0xff]   ;;  %v14894_v21 = vld [vmem:[%s15978_s11 + $0x2f8] sm:$0xff]   ;;  %v14901_v29 = vld [vmem:[%s15978_s11 + $0x268] sm:$0xff]  }
  0x2a   : > { %v14891_v17 = vld [vmem:[%s15978_s11 + $0x100] sm:$0xff]   ;;  %v14895_v22 = vld [vmem:[%s15978_s11 + $0x238] sm:$0xff]   ;;  %v14913_v41 = vld [vmem:[%s15978_s11 + $0x250] sm:$0xff]  }
  0x2b   : > { %13343 = vmatpush3.bf16.msra.mxu0 %v14850_v23  ;;  %v14892_v18 = vld [vmem:[%s15978_s11 + $0x180] sm:$0xff]   ;;  %v14896_v23 = vld [vmem:[%s15978_s11 + $0x2b8] sm:$0xff]   ;;  %v14914_v43 = vld [vmem:[%s15978_s11 + $0x2d0] sm:$0xff]  }
  0x2c   : > { %13365 = vmatpush3.bf16.msra.mxu1 %v14851_v24  ;;  %13344 = vmatprep.subr.bf16.mxu0 %v14852_v25  ;;  %v2420_v24 = vcombine.high %v2404_v19, %v2404_v19  ;;  %v14897_v25 = vld [vmem:[%s15978_s11 + $0x270] sm:$0xff]   ;;  %v14906_v34 = vld [vmem:[%s15978_s11 + $0x2e0] sm:$0xff]   ;;  %v14909_v37 = vld [vmem:[%s15978_s11 + $0x258] sm:$0xff]  }
  0x2d   : > { %13366 = vmatprep.subr.bf16.mxu1 %v14853_v26  ;;  %v14898_v26 = vld [vmem:[%s15978_s11 + $0x2f0] sm:$0xff]   ;;  %v14907_v35 = vld [vmem:[%s15978_s11 + $0x220] sm:$0xff]   ;;  %v14910_v38 = vld [vmem:[%s15978_s11 + $0x2d8] sm:$0xff]  }
  0x2e   : > { %v14912_v40 = vld [vmem:[%s15978_s11 + $0x298] sm:$0xff]   ;;  %v14915_v44 = vld [vmem:[%s15978_s11 + $0x210] sm:$0xff]   ;;  %v295_v47 = vld [vmem:[%s15973_s30 + $0x8] sm:$0xff] }
  0x2f   : > { %13345 = vmatpush3.bf16.msra.mxu0 %v14854_v27  ;;  %v14899_v27 = vld [vmem:[%s15978_s11 + $0x230] sm:$0xff]   ;;  %v2430_v49 = vrot.slane %v295_v47, %v16016_v42 }
  0x30   : > { %13367 = vmatpush3.bf16.msra.mxu1 %v14855_v28  ;;  %13346 = vmatprep.subr.bf16.mxu0 %v14856_v30  ;;  %v14900_v28 = vld [vmem:[%s15978_s11 + $0x2b0] sm:$0xff]   ;;  %v14902_v30 = vld [vmem:[%s15978_s11 + $0x2e8] sm:$0xff]  }
  0x31   : > { %13368 = vmatprep.subr.bf16.mxu1 %v14857_v31  ;;  %v14903_v31 = vld [vmem:[%s15978_s11 + $0x228] sm:$0xff]   ;;  %v14916_v45 = vld [vmem:[%s15978_s11 + $0x290] sm:$0xff]  }
  0x33   : > { %13347 = vmatpush3.bf16.msra.mxu0 %v14858_v32  ;;  %v14904_v32 = vld [vmem:[%s15978_s11 + $0x2a8] sm:$0xff]  }
  0x34   : > { %13369 = vmatpush3.bf16.msra.mxu1 %v14859_v33  ;;  %13376 = vmatprep.subr.bf16.mxu0 %v14861_v36  ;;  %v14905_v33 = vld [vmem:[%s15978_s11 + $0x260] sm:$0xff]  }
  0x35   : > { %13398 = vmatprep.subr.bf16.mxu1 %v14862_v39  ;;  %v14908_v36 = vld [vmem:[%s15978_s11 + $0x2a0] sm:$0xff]   ;;  %v14911_v39 = vld [vmem:[%s15978_s11 + $0x218] sm:$0xff]  }
  0x36   : > { %9463 = vmatmul.mubr.bf16.vlgmr.msra.gmra.mxu0 %v2397_v46  ;;  %v14917_v46 = vld [vmem:[%s15978_s11 + $0x248] sm:$0xff]  }
  0x37   : > { %13377 = vmatpush3.bf16.msra.mxu0 %v14863_v48  ;;  %9503 = vmatmul.mubr.bf16.vlgmr.msra.gmra.mxu1 %v2419_v52  ;;  %v14918_v48 = vld [vmem:[%s15978_s11 + $0x2c8] sm:$0xff]  }
  0x38   : > { %13378 = vmatprep.subr.bf16.mxu0 %v14865_v53  ;;  %13399 = vmatpush3.bf16.msra.mxu1 %v14864_v50  ;;  %v2423_v50 = vcombine.high %v295_v47, %v295_v47  ;;  %v14920_v52 = vld [vmem:[%s15978_s11 + $0x288] sm:$0xff]   ;;  %v2438_v53 = vcombine.high %v2430_v49, %v2430_v49 }
  0x39   : > { %9542 = vmatprep.mubr.bf16.mxu0 %v2418_v51  ;;  %13400 = vmatprep.subr.bf16.mxu1 %v14866_v55  ;;  %v14919_v51 = vld [vmem:[%s15978_s11 + $0x208] sm:$0xff]   ;;  %v14921_v55 = vld [vmem:[%s15978_s11 + $0x240] sm:$0xff]  }
  0x3a   : > { %9582 = vmatprep.mubr.bf16.mxu1 %v2422_v57  ;;  %v16090_v54 = vrot.slane %v2423_v50, %v16016_v42  ;;  %v2460_v57 = vrot.slane %v2438_v53, %v16016_v42  ;;  %v14968_v47 = vld [vmem:[%s15978_s11 + $0x428] sm:$0xff]   ;;  %v14971_v50 = vld [vmem:[%s15978_s11 + $0x4e0] sm:$0xff]   ;;  %v14974_v53 = vld [vmem:[%s15978_s11 + $0x458] sm:$0xff]  }
  0x3b   : > { %13379 = vmatpush3.bf16.msra.mxu0 %v14867_v56  ;;  %v14922_v56 = vld [vmem:[%s15978_s11 + $0x2c0] sm:$0xff]  }
  0x3c   : > { %13380 = vmatprep.subr.bf16.mxu0 %v14869_v59  ;;  %13401 = vmatpush3.bf16.msra.mxu1 %v14868_v58  ;;  %v2439_v58 = vcombine.high %v16090_v54, %v16090_v54  ;;  %v14923_v59 = vld [vmem:[%s15978_s11 + $0x200] sm:$0xff]  }
  0x3d   : > { %13402 = vmatprep.subr.bf16.mxu1 %v14870_v60  ;;  %v14924_v60 = vld [vmem:[%s15978_s11 + $0x280] sm:$0xff]  }
  0x3f   : > { %13381 = vmatpush3.bf16.msra.mxu0 %v14871_v61  ;;  %v2470_v61 = vcombine.high %v2460_v57, %v2460_v57 }
  0x40   : > { %13382 = vmatprep.subr.bf16.mxu0 %v14873_v63  ;;  %13403 = vmatpush3.bf16.msra.mxu1 %v14872_v62  ;;  %v2446_v62 = vrot.slane %v2430_v49, %v16016_v42  ;;  %v14925_v63 = vld [vmem:[%s15978_s11 + $0x378] sm:$0xff]   ;;  %v14970_v49 = vld [vmem:[%s15978_s11 + $0x460] sm:$0xff]  }
  0x41   : > { %13404 = vmatprep.subr.bf16.mxu1 %v14874_v0  ;;  %v14926_v0 = vld [vmem:[%s15978_s11 + $0x3f8] sm:$0xff]  }
  0x43   : > { %13383 = vmatpush3.bf16.msra.mxu0 %v14875_v1  ;;  %v2467_v1 = vrot.slane %v2439_v58, %v16016_v42  ;;  %v14979_v58 = vld [vmem:[%s15978_s11 + $0x4d0] sm:$0xff]  }
  0x44   : > { %13384 = vmatprep.subr.bf16.mxu0 %v14877_v3  ;;  %13405 = vmatpush3.bf16.msra.mxu1 %v14876_v2  ;;  %v14927_v2 = vld [vmem:[%s15978_s11 + $0x338] sm:$0xff]  }
  0x45   : > { %13406 = vmatprep.subr.bf16.mxu1 %v14878_v4  ;;  %v14928_v3 = vld [vmem:[%s15978_s11 + $0x3b8] sm:$0xff]   ;;  %v2468_v4 = vcombine.high %v2446_v62, %v2446_v62 }
  0x47   : > { %13385 = vmatpush3.bf16.msra.mxu0 %v14879_v5  ;;  %v14929_v5 = vld [vmem:[%s15978_s11 + $0x370] sm:$0xff]  }
  0x48   : > { %13386 = vmatprep.subr.bf16.mxu0 %v14881_v7  ;;  %13407 = vmatpush3.bf16.msra.mxu1 %v14880_v6  ;;  %v14930_v6 = vld [vmem:[%s15978_s11 + $0x3f0] sm:$0xff]   ;;  %v2471_v7 = vcombine.high %v2467_v1, %v2467_v1 }
  0x49   : > { %13408 = vmatprep.subr.bf16.mxu1 %v14882_v8  ;;  %v14931_v8 = vld [vmem:[%s15978_s11 + $0x330] sm:$0xff]  }
  0x4b   : > { %13387 = vmatpush3.bf16.msra.mxu0 %v14883_v9  ;;  %v14932_v9 = vld [vmem:[%s15978_s11 + $0x3b0] sm:$0xff]  }
  0x4c   : > { %13388 = vmatprep.subr.bf16.mxu0 %v14885_v11  ;;  %13409 = vmatpush3.bf16.msra.mxu1 %v14884_v10  ;;  %v14933_v10 = vld [vmem:[%s15978_s11 + $0x368] sm:$0xff]  }
  0x4d   : > { %13410 = vmatprep.subr.bf16.mxu1 %v14886_v12  ;;  %v14934_v11 = vld [vmem:[%s15978_s11 + $0x3e8] sm:$0xff]  }
  0x4e   : > { %v14935_v12 = vld [vmem:[%s15978_s11 + $0x328] sm:$0xff]  }
  0x4f   : > { %13389 = vmatpush3.bf16.msra.mxu0 %v14887_v13  ;;  %v14936_v13 = vld [vmem:[%s15978_s11 + $0x3a8] sm:$0xff]  }
  0x50   : > { %13390 = vmatprep.subr.bf16.mxu0 %v14889_v15  ;;  %13411 = vmatpush3.bf16.msra.mxu1 %v14888_v14  ;;  %v14937_v14 = vld [vmem:[%s15978_s11 + $0x360] sm:$0xff]  }
  0x51   : > { %13412 = vmatprep.subr.bf16.mxu1 %v14890_v16  ;;  %v14938_v15 = vld [vmem:[%s15978_s11 + $0x3e0] sm:$0xff]  }
  0x52   : > { %v14939_v16 = vld [vmem:[%s15978_s11 + $0x320] sm:$0xff]  }
  0x53   : > { %13391 = vmatpush3.bf16.msra.mxu0 %v14891_v17  ;;  %v14940_v17 = vld [vmem:[%s15978_s11 + $0x3a0] sm:$0xff]  }
  0x54   : > { %13420 = vmatprep.subr.bf16.mxu0 %v14893_v20  ;;  %13413 = vmatpush3.bf16.msra.mxu1 %v14892_v18  ;;  %v14941_v18 = vld [vmem:[%s15978_s11 + $0x358] sm:$0xff]  }
  0x55   : > { %13442 = vmatprep.subr.bf16.mxu1 %v14894_v21  ;;  %v14943_v20 = vld [vmem:[%s15978_s11 + $0x318] sm:$0xff]  }
  0x56   : > { %9543 = vmatmul.mubr.bf16.vlgmr.msra.gmra.mxu0 %v2404_v19  ;;  %v14942_v19 = vld [vmem:[%s15978_s11 + $0x3d8] sm:$0xff]  }
  0x57   : > { %13421 = vmatpush3.bf16.msra.mxu0 %v14895_v22  ;;  %9583 = vmatmul.mubr.bf16.vlgmr.msra.gmra.mxu1 %v2420_v24  ;;  %v14944_v21 = vld [vmem:[%s15978_s11 + $0x398] sm:$0xff]   ;;  %v14945_v22 = vld [vmem:[%s15978_s11 + $0x350] sm:$0xff]  }
  0x58   : > { %13422 = vmatprep.subr.bf16.mxu0 %v14897_v25  ;;  %13443 = vmatpush3.bf16.msra.mxu1 %v14896_v23  ;;  %v14946_v23 = vld [vmem:[%s15978_s11 + $0x3d0] sm:$0xff]  }
  0x59   : > { %13444 = vmatprep.subr.bf16.mxu1 %v14898_v26  ;;  %9622 = vmatprep.mubr.bf16.mxu0 %v2460_v57  ;;  %v14947_v24 = vld [vmem:[%s15978_s11 + $0x310] sm:$0xff]   ;;  %v14949_v26 = vld [vmem:[%s15978_s11 + $0x348] sm:$0xff]  }
  0x5a   : > { %9662 = vmatprep.mubr.bf16.mxu1 %v2470_v61  ;;  %v14948_v25 = vld [vmem:[%s15978_s11 + $0x390] sm:$0xff]   ;;  %v14982_v61 = vld [vmem:[%s15978_s11 + $0x448] sm:$0xff]  }
  0x5b   : > { %13423 = vmatpush3.bf16.msra.mxu0 %v14899_v27  ;;  %v14950_v27 = vld [vmem:[%s15978_s11 + $0x3c8] sm:$0xff]   ;;  %v14978_v57 = vld [vmem:[%s15978_s11 + $0x450] sm:$0xff]  }
  0x5c   : > { %13424 = vmatprep.subr.bf16.mxu0 %v14901_v29  ;;  %13445 = vmatpush3.bf16.msra.mxu1 %v14900_v28  ;;  %v14951_v28 = vld [vmem:[%s15978_s11 + $0x308] sm:$0xff]  }
  0x5d   : > { %13446 = vmatprep.subr.bf16.mxu1 %v14902_v30  ;;  %v14952_v29 = vld [vmem:[%s15978_s11 + $0x388] sm:$0xff]   ;;  %v14953_v30 = vld [vmem:[%s15978_s11 + $0x340] sm:$0xff]  }
  0x5f   : > { %13425 = vmatpush3.bf16.msra.mxu0 %v14903_v31  ;;  %v14954_v31 = vld [vmem:[%s15978_s11 + $0x3c0] sm:$0xff]  }
  0x60   : > { %13426 = vmatprep.subr.bf16.mxu0 %v14905_v33  ;;  %13447 = vmatpush3.bf16.msra.mxu1 %v14904_v32  ;;  %v14955_v32 = vld [vmem:[%s15978_s11 + $0x300] sm:$0xff]  }
  0x61   : > { %13448 = vmatprep.subr.bf16.mxu1 %v14906_v34  ;;  %v14956_v33 = vld [vmem:[%s15978_s11 + $0x380] sm:$0xff]   ;;  %v2453_v34 = vrot.slane %v16090_v54, %v16016_v42  ;;  %v14975_v54 = vld [vmem:[%s15978_s11 + $0x4d8] sm:$0xff]  }
  0x63   : > { %13427 = vmatpush3.bf16.msra.mxu0 %v14907_v35  ;;  %v14958_v35 = vld [vmem:[%s15978_s11 + $0x478] sm:$0xff]  }
  0x64   : > { %13428 = vmatprep.subr.bf16.mxu0 %v14909_v37  ;;  %13449 = vmatpush3.bf16.msra.mxu1 %v14908_v36  ;;  %v14959_v36 = vld [vmem:[%s15978_s11 + $0x4f8] sm:$0xff]  }
  0x65   : > { %13450 = vmatprep.subr.bf16.mxu1 %v14910_v38  ;;  %v14960_v37 = vld [vmem:[%s15978_s11 + $0x438] sm:$0xff]  }
  0x66   : > { %v14961_v38 = vld [vmem:[%s15978_s11 + $0x4b8] sm:$0xff]  }
  0x67   : > { %13429 = vmatpush3.bf16.msra.mxu0 %v14911_v39  ;;  %v2469_v39 = vcombine.high %v2453_v34, %v2453_v34 }
  0x68   : > { %13430 = vmatprep.subr.bf16.mxu0 %v14913_v41  ;;  %13451 = vmatpush3.bf16.msra.mxu1 %v14912_v40  ;;  %v14962_v40 = vld [vmem:[%s15978_s11 + $0x470] sm:$0xff]  }
  0x69   : > { %13452 = vmatprep.subr.bf16.mxu1 %v14914_v43  ;;  %v14963_v41 = vld [vmem:[%s15978_s11 + $0x4f0] sm:$0xff]  }
  0x6a   : > { %v14964_v43 = vld [vmem:[%s15978_s11 + $0x430] sm:$0xff]  }
  0x6b   : > { %13431 = vmatpush3.bf16.msra.mxu0 %v14915_v44  ;;  %v14965_v44 = vld [vmem:[%s15978_s11 + $0x4b0] sm:$0xff]  }
  0x6c   : > { %13432 = vmatprep.subr.bf16.mxu0 %v14917_v46  ;;  %13453 = vmatpush3.bf16.msra.mxu1 %v14916_v45  ;;  %v14966_v45 = vld [vmem:[%s15978_s11 + $0x468] sm:$0xff]  }
  0x6d   : > { %13454 = vmatprep.subr.bf16.mxu1 %v14918_v48  ;;  %v14967_v46 = vld [vmem:[%s15978_s11 + $0x4e8] sm:$0xff]  }
  0x6e   : > { %v14969_v48 = vld [vmem:[%s15978_s11 + $0x4a8] sm:$0xff]  }
  0x6f   : > { %13433 = vmatpush3.bf16.msra.mxu0 %v14919_v51  ;;  %v14972_v51 = vld [vmem:[%s15978_s11 + $0x420] sm:$0xff]  }
  0x70   : > { %13434 = vmatprep.subr.bf16.mxu0 %v14921_v55  ;;  %13455 = vmatpush3.bf16.msra.mxu1 %v14920_v52  ;;  %v14973_v52 = vld [vmem:[%s15978_s11 + $0x4a0] sm:$0xff]   ;;  %v14976_v55 = vld [vmem:[%s15978_s11 + $0x418] sm:$0xff]  }
  0x71   : > { %13456 = vmatprep.subr.bf16.mxu1 %v14922_v56  ;;  %v14977_v56 = vld [vmem:[%s15978_s11 + $0x498] sm:$0xff]  }
  0x73   : > { %13435 = vmatpush3.bf16.msra.mxu0 %v14923_v59  ;;  %v14980_v59 = vld [vmem:[%s15978_s11 + $0x410] sm:$0xff]  }
  0x74   : > { %13464 = vmatprep.subr.bf16.mxu0 %v14925_v63  ;;  %13457 = vmatpush3.bf16.msra.mxu1 %v14924_v60  ;;  %v14981_v60 = vld [vmem:[%s15978_s11 + $0x490] sm:$0xff]   ;;  %v14983_v63 = vld [vmem:[%s15978_s11 + $0x4c8] sm:$0xff]  }
  0x75   : > { %13486 = vmatprep.subr.bf16.mxu1 %v14926_v0 }
  0x76   : > { %9623 = vmatmul.mubr.bf16.vlgmr.msra.gmra.mxu0 %v2446_v62  ;;  %v296_v62 = vld [vmem:[%s15973_s30 + $0x10] sm:$0xff] }
  0x77   : > { %13465 = vmatpush3.bf16.msra.mxu0 %v14927_v2  ;;  %9702 = vmatprep.mubr.bf16.mxu0 %v2467_v1  ;;  %v2479_v0 = vrot.slane %v296_v62, %v16016_v42  ;;  %v2472_v1 = vcombine.high %v296_v62, %v296_v62  ;;  %v14984_v2 = vld [vmem:[%s15978_s11 + $0x408] sm:$0xff]  }
  0x78   : > { %9663 = vmatmul.mubr.bf16.vlgmr.msra.gmra.mxu1 %v2468_v4  ;;  %13466 = vmatprep.subr.bf16.mxu0 %v14929_v5  ;;  %v15033_v62 = vld [vmem:[%s15978_s11 + $0x628] sm:$0xff]  }
  0x79   : > { %13487 = vmatpush3.bf16.msra.mxu1 %v14928_v3  ;;  %9742 = vmatprep.mubr.bf16.mxu1 %v2471_v7  ;;  %v14985_v3 = vld [vmem:[%s15978_s11 + $0x488] sm:$0xff]   ;;  %v2487_v4 = vcombine.high %v2479_v0, %v2479_v0  ;;  %v16166_v5 = vrot.slane %v2472_v1, %v16016_v42  ;;  %v14987_v7 = vld [vmem:[%s15978_s11 + $0x4c0] sm:$0xff]  }
  0x7a   : > { %13488 = vmatprep.subr.bf16.mxu1 %v14930_v6  ;;  %v14986_v6 = vld [vmem:[%s15978_s11 + $0x440] sm:$0xff]  }
  0x7b   : > { %13467 = vmatpush3.bf16.msra.mxu0 %v14931_v8  ;;  %v2509_v8 = vrot.slane %v2487_v4, %v16016_v42  ;;  %v15036_v1 = vld [vmem:[%s15978_s11 + $0x6e0] sm:$0xff]   ;;  %v15039_v4 = vld [vmem:[%s15978_s11 + $0x658] sm:$0xff]  }
  0x7c   : > { %13468 = vmatprep.subr.bf16.mxu0 %v14933_v10  ;;  %v14988_v10 = vld [vmem:[%s15978_s11 + $0x400] sm:$0xff]  }
  0x7d   : > { %13489 = vmatpush3.bf16.msra.mxu1 %v14932_v9  ;;  %v2488_v9 = vcombine.high %v16166_v5, %v16166_v5 }
  0x7e   : > { %13490 = vmatprep.subr.bf16.mxu1 %v14934_v11  ;;  %v14989_v11 = vld [vmem:[%s15978_s11 + $0x480] sm:$0xff]  }
  0x7f   : > { %13469 = vmatpush3.bf16.msra.mxu0 %v14935_v12  ;;  %v2519_v12 = vcombine.high %v2509_v8, %v2509_v8 }
  0x80   : > { %13470 = vmatprep.subr.bf16.mxu0 %v14937_v14  ;;  %v14990_v14 = vld [vmem:[%s15978_s11 + $0x578] sm:$0xff]  }
  0x81   : > { %13491 = vmatpush3.bf16.msra.mxu1 %v14936_v13  ;;  %v2495_v13 = vrot.slane %v2479_v0, %v16016_v42  ;;  %v15035_v0 = vld [vmem:[%s15978_s11 + $0x660] sm:$0xff]  }
  0x82   : > { %13492 = vmatprep.subr.bf16.mxu1 %v14938_v15  ;;  %v14991_v15 = vld [vmem:[%s15978_s11 + $0x5f8] sm:$0xff]  }
  0x83   : > { %13471 = vmatpush3.bf16.msra.mxu0 %v14939_v16  ;;  %v2516_v16 = vrot.slane %v2488_v9, %v16016_v42  ;;  %v15044_v9 = vld [vmem:[%s15978_s11 + $0x6d0] sm:$0xff]  }
  0x84   : > { %13472 = vmatprep.subr.bf16.mxu0 %v14941_v18  ;;  %v14993_v18 = vld [vmem:[%s15978_s11 + $0x5b8] sm:$0xff]  }
  0x85   : > { %13493 = vmatpush3.bf16.msra.mxu1 %v14940_v17  ;;  %v14992_v17 = vld [vmem:[%s15978_s11 + $0x538] sm:$0xff]  }
  0x86   : > { %13494 = vmatprep.subr.bf16.mxu1 %v14942_v19  ;;  %v2517_v19 = vcombine.high %v2495_v13, %v2495_v13 }
  0x87   : > { %13473 = vmatpush3.bf16.msra.mxu0 %v14943_v20  ;;  %v14994_v20 = vld [vmem:[%s15978_s11 + $0x570] sm:$0xff]  }
  0x88   : > { %13474 = vmatprep.subr.bf16.mxu0 %v14945_v22  ;;  %v2520_v22 = vcombine.high %v2516_v16, %v2516_v16 }
  0x89   : > { %13495 = vmatpush3.bf16.msra.mxu1 %v14944_v21  ;;  %v14995_v21 = vld [vmem:[%s15978_s11 + $0x5f0] sm:$0xff]  }
  0x8a   : > { %13496 = vmatprep.subr.bf16.mxu1 %v14946_v23  ;;  %v14996_v23 = vld [vmem:[%s15978_s11 + $0x530] sm:$0xff]  }
  0x8b   : > { %13475 = vmatpush3.bf16.msra.mxu0 %v14947_v24  ;;  %v14997_v24 = vld [vmem:[%s15978_s11 + $0x5b0] sm:$0xff]  }
  0x8c   : > { %13476 = vmatprep.subr.bf16.mxu0 %v14949_v26  ;;  %v14999_v26 = vld [vmem:[%s15978_s11 + $0x5e8] sm:$0xff]  }
  0x8d   : > { %13497 = vmatpush3.bf16.msra.mxu1 %v14948_v25  ;;  %v14998_v25 = vld [vmem:[%s15978_s11 + $0x568] sm:$0xff]  }
  0x8e   : > { %13498 = vmatprep.subr.bf16.mxu1 %v14950_v27  ;;  %v15000_v27 = vld [vmem:[%s15978_s11 + $0x528] sm:$0xff]  }
  0x8f   : > { %13477 = vmatpush3.bf16.msra.mxu0 %v14951_v28  ;;  %v15001_v28 = vld [vmem:[%s15978_s11 + $0x5a8] sm:$0xff]  }
  0x90   : > { %13478 = vmatprep.subr.bf16.mxu0 %v14953_v30  ;;  %v15003_v30 = vld [vmem:[%s15978_s11 + $0x5e0] sm:$0xff]  }
  0x91   : > { %13499 = vmatpush3.bf16.msra.mxu1 %v14952_v29  ;;  %v15002_v29 = vld [vmem:[%s15978_s11 + $0x560] sm:$0xff]  }
  0x92   : > { %13500 = vmatprep.subr.bf16.mxu1 %v14954_v31  ;;  %v15004_v31 = vld [vmem:[%s15978_s11 + $0x520] sm:$0xff]  }
  0x93   : > { %13479 = vmatpush3.bf16.msra.mxu0 %v14955_v32  ;;  %v15005_v32 = vld [vmem:[%s15978_s11 + $0x5a0] sm:$0xff]  }
  0x94   : > { %13508 = vmatprep.subr.bf16.mxu0 %v14958_v35  ;;  %v15008_v35 = vld [vmem:[%s15978_s11 + $0x518] sm:$0xff]  }
  0x95   : > { %13501 = vmatpush3.bf16.msra.mxu1 %v14956_v33  ;;  %v15006_v33 = vld [vmem:[%s15978_s11 + $0x558] sm:$0xff]  }
  0x96   : > { %9703 = vmatmul.mubr.bf16.vlgmr.msra.gmra.mxu0 %v2453_v34  ;;  %13530 = vmatprep.subr.bf16.mxu1 %v14959_v36  ;;  %v15007_v34 = vld [vmem:[%s15978_s11 + $0x5d8] sm:$0xff]  }
  0x97   : > { %13509 = vmatpush3.bf16.msra.mxu0 %v14960_v37  ;;  %9782 = vmatprep.mubr.bf16.mxu0 %v2509_v8  ;;  %v15009_v36 = vld [vmem:[%s15978_s11 + $0x598] sm:$0xff]   ;;  %v15010_v37 = vld [vmem:[%s15978_s11 + $0x550] sm:$0xff]  }
  0x98   : > { %9743 = vmatmul.mubr.bf16.vlgmr.msra.gmra.mxu1 %v2469_v39  ;;  %13510 = vmatprep.subr.bf16.mxu0 %v14962_v40  ;;  %v15012_v39 = vld [vmem:[%s15978_s11 + $0x510] sm:$0xff]  }
  0x99   : > { %13531 = vmatpush3.bf16.msra.mxu1 %v14961_v38  ;;  %9822 = vmatprep.mubr.bf16.mxu1 %v2519_v12  ;;  %v15011_v38 = vld [vmem:[%s15978_s11 + $0x5d0] sm:$0xff]   ;;  %v15047_v12 = vld [vmem:[%s15978_s11 + $0x648] sm:$0xff]  }
  0x9a   : > { %13532 = vmatprep.subr.bf16.mxu1 %v14963_v41  ;;  %v15013_v40 = vld [vmem:[%s15978_s11 + $0x590] sm:$0xff]   ;;  %v15014_v41 = vld [vmem:[%s15978_s11 + $0x548] sm:$0xff]  }
  0x9b   : > { %13511 = vmatpush3.bf16.msra.mxu0 %v14964_v43  ;;  %v15015_v43 = vld [vmem:[%s15978_s11 + $0x5c8] sm:$0xff]   ;;  %v15043_v8 = vld [vmem:[%s15978_s11 + $0x650] sm:$0xff]  }
  0x9c   : > { %13512 = vmatprep.subr.bf16.mxu0 %v14966_v45  ;;  %v15017_v45 = vld [vmem:[%s15978_s11 + $0x588] sm:$0xff]  }
  0x9d   : > { %13533 = vmatpush3.bf16.msra.mxu1 %v14965_v44  ;;  %v15016_v44 = vld [vmem:[%s15978_s11 + $0x508] sm:$0xff]  }
  0x9e   : > { %13534 = vmatprep.subr.bf16.mxu1 %v14967_v46  ;;  %v15018_v46 = vld [vmem:[%s15978_s11 + $0x540] sm:$0xff]  }
  0x9f   : > { %13513 = vmatpush3.bf16.msra.mxu0 %v14968_v47  ;;  %v15019_v47 = vld [vmem:[%s15978_s11 + $0x5c0] sm:$0xff]  }
  0xa0   : > { %13514 = vmatprep.subr.bf16.mxu0 %v14970_v49  ;;  %v15021_v49 = vld [vmem:[%s15978_s11 + $0x580] sm:$0xff]  }
  0xa1   : > { %13535 = vmatpush3.bf16.msra.mxu1 %v14969_v48  ;;  %v15020_v48 = vld [vmem:[%s15978_s11 + $0x500] sm:$0xff]  }
  0xa2   : > { %13536 = vmatprep.subr.bf16.mxu1 %v14971_v50  ;;  %v2502_v50 = vrot.slane %v16166_v5, %v16016_v42  ;;  %v15040_v5 = vld [vmem:[%s15978_s11 + $0x6d8] sm:$0xff]  }
  0xa3   : > { %13515 = vmatpush3.bf16.msra.mxu0 %v14972_v51  ;;  %v15023_v51 = vld [vmem:[%s15978_s11 + $0x678] sm:$0xff]  }
  0xa4   : > { %13516 = vmatprep.subr.bf16.mxu0 %v14974_v53  ;;  %v15025_v53 = vld [vmem:[%s15978_s11 + $0x638] sm:$0xff]  }
  0xa5   : > { %13537 = vmatpush3.bf16.msra.mxu1 %v14973_v52  ;;  %v15024_v52 = vld [vmem:[%s15978_s11 + $0x6f8] sm:$0xff]  }
  0xa6   : > { %13538 = vmatprep.subr.bf16.mxu1 %v14975_v54  ;;  %v15026_v54 = vld [vmem:[%s15978_s11 + $0x6b8] sm:$0xff]  }
  0xa7   : > { %13517 = vmatpush3.bf16.msra.mxu0 %v14976_v55  ;;  %v2518_v55 = vcombine.high %v2502_v50, %v2502_v50 }
  0xa8   : > { %13518 = vmatprep.subr.bf16.mxu0 %v14978_v57  ;;  %v15028_v57 = vld [vmem:[%s15978_s11 + $0x6f0] sm:$0xff]  }
  0xa9   : > { %13539 = vmatpush3.bf16.msra.mxu1 %v14977_v56  ;;  %v15027_v56 = vld [vmem:[%s15978_s11 + $0x670] sm:$0xff]  }
  0xaa   : > { %13540 = vmatprep.subr.bf16.mxu1 %v14979_v58  ;;  %v15029_v58 = vld [vmem:[%s15978_s11 + $0x630] sm:$0xff]  }
  0xab   : > { %13519 = vmatpush3.bf16.msra.mxu0 %v14980_v59  ;;  %v15030_v59 = vld [vmem:[%s15978_s11 + $0x6b0] sm:$0xff]  }
  0xac   : > { %13520 = vmatprep.subr.bf16.mxu0 %v14982_v61  ;;  %v15032_v61 = vld [vmem:[%s15978_s11 + $0x6e8] sm:$0xff]  }
  0xad   : > { %13541 = vmatpush3.bf16.msra.mxu1 %v14981_v60  ;;  %v15031_v60 = vld [vmem:[%s15978_s11 + $0x668] sm:$0xff]  }
  0xae   : > { %13542 = vmatprep.subr.bf16.mxu1 %v14983_v63  ;;  %v15034_v63 = vld [vmem:[%s15978_s11 + $0x6a8] sm:$0xff]  }
  0xaf   : > { %13521 = vmatpush3.bf16.msra.mxu0 %v14984_v2  ;;  %v15037_v2 = vld [vmem:[%s15978_s11 + $0x620] sm:$0xff]  }
  0xb0   : > { %13522 = vmatprep.subr.bf16.mxu0 %v14986_v6  ;;  %v15041_v6 = vld [vmem:[%s15978_s11 + $0x618] sm:$0xff]  }
  0xb1   : > { %13543 = vmatpush3.bf16.msra.mxu1 %v14985_v3  ;;  %v15038_v3 = vld [vmem:[%s15978_s11 + $0x6a0] sm:$0xff]  }
  0xb2   : > { %13544 = vmatprep.subr.bf16.mxu1 %v14987_v7  ;;  %v15042_v7 = vld [vmem:[%s15978_s11 + $0x698] sm:$0xff]  }
  0xb3   : > { %13523 = vmatpush3.bf16.msra.mxu0 %v14988_v10  ;;  %v15045_v10 = vld [vmem:[%s15978_s11 + $0x610] sm:$0xff]  }
  0xb4   : > { %13552 = vmatprep.subr.bf16.mxu0 %v14990_v14  ;;  %v297_v14 = vld [vmem:[%s15973_s30 + $0x18] sm:$0xff] }
  0xb5   : > { %13545 = vmatpush3.bf16.msra.mxu1 %v14989_v11  ;;  %v15046_v11 = vld [vmem:[%s15978_s11 + $0x690] sm:$0xff]  }
  0xb6   : > { %9783 = vmatmul.mubr.bf16.vlgmr.msra.gmra.mxu0 %v2495_v13  ;;  %13574 = vmatprep.subr.bf16.mxu1 %v14991_v15  ;;  %v15048_v13 = vld [vmem:[%s15978_s11 + $0x6c8] sm:$0xff]  }
  0xb7   : > { %13553 = vmatpush3.bf16.msra.mxu0 %v14992_v17  ;;  %9862 = vmatprep.mubr.bf16.mxu0 %v2516_v16  ;;  %v15049_v15 = vld [vmem:[%s15978_s11 + $0x608] sm:$0xff]   ;;  %v2528_v16 = vrot.slane %v297_v14, %v16016_v42  ;;  %v2521_v17 = vcombine.high %v297_v14, %v297_v14  ;;  %v15089_v14 = vld [vmem:[%s15978_s11 + $0x8f8] sm:$0xff]  }
  0xb8   : > { %9823 = vmatmul.mubr.bf16.vlgmr.msra.gmra.mxu1 %v2517_v19  ;;  %13554 = vmatprep.subr.bf16.mxu0 %v14994_v20  ;;  %v15051_v19 = vld [vmem:[%s15978_s11 + $0x640] sm:$0xff]  }
  0xb9   : > { %13575 = vmatpush3.bf16.msra.mxu1 %v14993_v18  ;;  %9902 = vmatprep.mubr.bf16.mxu1 %v2520_v22  ;;  %v15050_v18 = vld [vmem:[%s15978_s11 + $0x688] sm:$0xff]   ;;  %v2536_v20 = vcombine.high %v2528_v16, %v2528_v16  ;;  %v15052_v22 = vld [vmem:[%s15978_s11 + $0x6c0] sm:$0xff]  }
  0xba   : > { %13576 = vmatprep.subr.bf16.mxu1 %v14995_v21  ;;  %v16243_v21 = vrot.slane %v2521_v17, %v16016_v42 }
  0xbb   : > { %13555 = vmatpush3.bf16.msra.mxu0 %v14996_v23  ;;  %v15053_v23 = vld [vmem:[%s15978_s11 + $0x600] sm:$0xff]  }
  0xbc   : > { %13556 = vmatprep.subr.bf16.mxu0 %v14998_v25  ;;  %v2537_v25 = vcombine.high %v16243_v21, %v16243_v21 }
  0xbd   : > { %13577 = vmatpush3.bf16.msra.mxu1 %v14997_v24  ;;  %v2558_v24 = vrot.slane %v2536_v20, %v16016_v42 }
  0xbe   : > { %13578 = vmatprep.subr.bf16.mxu1 %v14999_v26  ;;  %v15054_v26 = vld [vmem:[%s15978_s11 + $0x680] sm:$0xff]  }
  0xbf   : > { %13557 = vmatpush3.bf16.msra.mxu0 %v15000_v27  ;;  %v2568_v27 = vcombine.high %v2558_v24, %v2558_v24 }
  0xc0   : > { %13558 = vmatprep.subr.bf16.mxu0 %v15002_v29  ;;  %v15055_v29 = vld [vmem:[%s15978_s11 + $0x778] sm:$0xff]  }
  0xc1   : > { %13579 = vmatpush3.bf16.msra.mxu1 %v15001_v28  ;;  %v2544_v28 = vrot.slane %v2528_v16, %v16016_v42  ;;  %v15091_v16 = vld [vmem:[%s15978_s11 + $0x8b8] sm:$0xff]  }
  0xc2   : > { %13580 = vmatprep.subr.bf16.mxu1 %v15003_v30  ;;  %v15056_v30 = vld [vmem:[%s15978_s11 + $0x7f8] sm:$0xff]  }
  0xc3   : > { %13559 = vmatpush3.bf16.msra.mxu0 %v15004_v31  ;;  %v2565_v31 = vrot.slane %v2537_v25, %v16016_v42  ;;  %v15096_v25 = vld [vmem:[%s15978_s11 + $0x868] sm:$0xff]  }
  0xc4   : > { %13560 = vmatprep.subr.bf16.mxu0 %v15006_v33  ;;  %v15058_v33 = vld [vmem:[%s15978_s11 + $0x7b8] sm:$0xff]  }
  0xc5   : > { %13581 = vmatpush3.bf16.msra.mxu1 %v15005_v32  ;;  %v15057_v32 = vld [vmem:[%s15978_s11 + $0x738] sm:$0xff]  }
  0xc6   : > { %13582 = vmatprep.subr.bf16.mxu1 %v15007_v34  ;;  %v2566_v34 = vcombine.high %v2544_v28, %v2544_v28 }
  0xc7   : > { %13561 = vmatpush3.bf16.msra.mxu0 %v15008_v35  ;;  %v15059_v35 = vld [vmem:[%s15978_s11 + $0x770] sm:$0xff]  }
  0xc8   : > { %13562 = vmatprep.subr.bf16.mxu0 %v15010_v37  ;;  %v2569_v37 = vcombine.high %v2565_v31, %v2565_v31 }
  0xc9   : > { %13583 = vmatpush3.bf16.msra.mxu1 %v15009_v36  ;;  %v15060_v36 = vld [vmem:[%s15978_s11 + $0x7f0] sm:$0xff]  }
  0xca   : > { %13584 = vmatprep.subr.bf16.mxu1 %v15011_v38 }
  0xcb   : > { %13563 = vmatpush3.bf16.msra.mxu0 %v15012_v39  ;;  %v15061_v39 = vld [vmem:[%s15978_s11 + $0x730] sm:$0xff]  }
  0xcc   : > { %13564 = vmatprep.subr.bf16.mxu0 %v15014_v41 }
  0xcd   : > { %13585 = vmatpush3.bf16.msra.mxu1 %v15013_v40  ;;  %v15062_v40 = vld [vmem:[%s15978_s11 + $0x7b0] sm:$0xff]  }
  0xce   : > { %13586 = vmatprep.subr.bf16.mxu1 %v15015_v43 }
  0xcf   : > { %13565 = vmatpush3.bf16.msra.mxu0 %v15016_v44  ;;  %v15063_v44 = vld [vmem:[%s15978_s11 + $0x768] sm:$0xff]  }
  0xd0   : > { %13566 = vmatprep.subr.bf16.mxu0 %v15018_v46  ;;  %v15064_v46 = vld [vmem:[%s15978_s11 + $0x7e8] sm:$0xff]  }
  0xd1   : > { %13587 = vmatpush3.bf16.msra.mxu1 %v15017_v45 }
  0xd2   : > { %13588 = vmatprep.subr.bf16.mxu1 %v15019_v47 }
  0xd3   : > { %13567 = vmatpush3.bf16.msra.mxu0 %v15020_v48 }
  0xd4   : > { %13596 = vmatprep.subr.bf16.mxu0 %v15023_v51  ;;  %v15066_v51 = vld [vmem:[%s15978_s11 + $0x7a8] sm:$0xff]  }
  0xd5   : > { %13589 = vmatpush3.bf16.msra.mxu1 %v15021_v49  ;;  %v15065_v49 = vld [vmem:[%s15978_s11 + $0x728] sm:$0xff]  }
  0xd6   : > { %9863 = vmatmul.mubr.bf16.vlgmr.msra.gmra.mxu0 %v2502_v50  ;;  %13618 = vmatprep.subr.bf16.mxu1 %v15024_v52 }
  0xd7   : > { %13597 = vmatpush3.bf16.msra.mxu0 %v15025_v53  ;;  %9942 = vmatprep.mubr.bf16.mxu0 %v2558_v24 }
  0xd8   : > { %9903 = vmatmul.mubr.bf16.vlgmr.msra.gmra.mxu1 %v2518_v55  ;;  %13598 = vmatprep.subr.bf16.mxu0 %v15027_v56  ;;  %v15068_v56 = vld [vmem:[%s15978_s11 + $0x7e0] sm:$0xff]  }
  0xd9   : > { %13619 = vmatpush3.bf16.msra.mxu1 %v15026_v54  ;;  %9982 = vmatprep.mubr.bf16.mxu1 %v2568_v27  ;;  %v15067_v54 = vld [vmem:[%s15978_s11 + $0x760] sm:$0xff]   ;;  %v15097_v27 = vld [vmem:[%s15978_s11 + $0x8e8] sm:$0xff]  }
  0xda   : > { %13620 = vmatprep.subr.bf16.mxu1 %v15028_v57 }
  0xdb   : > { %13599 = vmatpush3.bf16.msra.mxu0 %v15029_v58  ;;  %v15069_v58 = vld [vmem:[%s15978_s11 + $0x720] sm:$0xff]  }
  0xdc   : > { %13600 = vmatprep.subr.bf16.mxu0 %v15031_v60  ;;  %v15071_v60 = vld [vmem:[%s15978_s11 + $0x758] sm:$0xff]  }
  0xdd   : > { %13621 = vmatpush3.bf16.msra.mxu1 %v15030_v59  ;;  %v15070_v59 = vld [vmem:[%s15978_s11 + $0x7a0] sm:$0xff]  }
  0xde   : > { %13622 = vmatprep.subr.bf16.mxu1 %v15032_v61  ;;  %v15072_v61 = vld [vmem:[%s15978_s11 + $0x7d8] sm:$0xff]  }
  0xdf   : > { %13601 = vmatpush3.bf16.msra.mxu0 %v15033_v62  ;;  %v15073_v62 = vld [vmem:[%s15978_s11 + $0x718] sm:$0xff]  }
  0xe0   : > { %13602 = vmatprep.subr.bf16.mxu0 %v15035_v0  ;;  %v15075_v0 = vld [vmem:[%s15978_s11 + $0x750] sm:$0xff]  }
  0xe1   : > { %13623 = vmatpush3.bf16.msra.mxu1 %v15034_v63  ;;  %v15074_v63 = vld [vmem:[%s15978_s11 + $0x798] sm:$0xff]  }
  0xe2   : > { %13624 = vmatprep.subr.bf16.mxu1 %v15036_v1  ;;  %v15076_v1 = vld [vmem:[%s15978_s11 + $0x7d0] sm:$0xff]  }
  0xe3   : > { %13603 = vmatpush3.bf16.msra.mxu0 %v15037_v2  ;;  %v15077_v2 = vld [vmem:[%s15978_s11 + $0x710] sm:$0xff]  }
  0xe4   : > { %13604 = vmatprep.subr.bf16.mxu0 %v15039_v4  ;;  %v15079_v4 = vld [vmem:[%s15978_s11 + $0x748] sm:$0xff]  }
  0xe5   : > { %13625 = vmatpush3.bf16.msra.mxu1 %v15038_v3  ;;  %v15078_v3 = vld [vmem:[%s15978_s11 + $0x790] sm:$0xff]  }
  0xe6   : > { %13626 = vmatprep.subr.bf16.mxu1 %v15040_v5  ;;  %v15080_v5 = vld [vmem:[%s15978_s11 + $0x7c8] sm:$0xff]  }
  0xe7   : > { %13605 = vmatpush3.bf16.msra.mxu0 %v15041_v6  ;;  %v15081_v6 = vld [vmem:[%s15978_s11 + $0x708] sm:$0xff]  }
  0xe8   : > { %13606 = vmatprep.subr.bf16.mxu0 %v15043_v8  ;;  %v15083_v8 = vld [vmem:[%s15978_s11 + $0x740] sm:$0xff]  }
  0xe9   : > { %13627 = vmatpush3.bf16.msra.mxu1 %v15042_v7  ;;  %v15082_v7 = vld [vmem:[%s15978_s11 + $0x788] sm:$0xff]  }
  0xea   : > { %13628 = vmatprep.subr.bf16.mxu1 %v15044_v9  ;;  %v15084_v9 = vld [vmem:[%s15978_s11 + $0x7c0] sm:$0xff]  }
  0xeb   : > { %13607 = vmatpush3.bf16.msra.mxu0 %v15045_v10  ;;  %v15085_v10 = vld [vmem:[%s15978_s11 + $0x700] sm:$0xff]  }
  0xec   : > { %13608 = vmatprep.subr.bf16.mxu0 %v15047_v12  ;;  %v2551_v12 = vrot.slane %v16243_v21, %v16016_v42  ;;  %v15094_v21 = vld [vmem:[%s15978_s11 + $0x830] sm:$0xff]  }
  0xed   : > { %13629 = vmatpush3.bf16.msra.mxu1 %v15046_v11  ;;  %v15086_v11 = vld [vmem:[%s15978_s11 + $0x780] sm:$0xff]  }
  0xee   : > { %13630 = vmatprep.subr.bf16.mxu1 %v15048_v13  ;;  %v15088_v13 = vld [vmem:[%s15978_s11 + $0x878] sm:$0xff]   ;;  %v2567_v17 = vcombine.high %v2551_v12, %v2551_v12 }
  0xef   : > { %13609 = vmatpush3.bf16.msra.mxu0 %v15049_v15  ;;  %v15090_v15 = vld [vmem:[%s15978_s11 + $0x838] sm:$0xff]  }
  0xf0   : > { %13610 = vmatprep.subr.bf16.mxu0 %v15051_v19  ;;  %v15093_v19 = vld [vmem:[%s15978_s11 + $0x8f0] sm:$0xff]  }
  0xf1   : > { %13631 = vmatpush3.bf16.msra.mxu1 %v15050_v18  ;;  %v15092_v18 = vld [vmem:[%s15978_s11 + $0x870] sm:$0xff]  }
  0xf2   : > { %13632 = vmatprep.subr.bf16.mxu1 %v15052_v22  ;;  %v15095_v22 = vld [vmem:[%s15978_s11 + $0x8b0] sm:$0xff]  }
  0xf3   : > { %13611 = vmatpush3.bf16.msra.mxu0 %v15053_v23 }
  0xf4   : > { %13640 = vmatprep.subr.bf16.mxu0 %v15055_v29 }
  0xf5   : > { %13633 = vmatpush3.bf16.msra.mxu1 %v15054_v26 }
  0xf6   : > { %v13348_v38 = vpop.f32.mrf.mxu0  ;;  %9943 = vmatmul.mubr.bf16.vlgmr.msra.gmra.mxu0 %v2544_v28  ;;  %13662 = vmatprep.subr.bf16.mxu1 %v15056_v30  ;;  %v15098_v30 = vld [vmem:[%s15978_s11 + $0x828] sm:$0xff]  }
  0xf7   : > { %13641 = vmatpush3.bf16.msra.mxu0 %v15057_v32  ;;  %10022 = vmatprep.mubr.bf16.mxu0 %v2565_v31  ;;  %v13370_v41 = vpop.f32.mrf.mxu1 }
  0xf8   : > { %9983 = vmatmul.mubr.bf16.vlgmr.msra.gmra.mxu1 %v2566_v34  ;;  %v13349_v43 = vpop.f32.mrf.mxu0  ;;  %13642 = vmatprep.subr.bf16.mxu0 %v15059_v35 }
  0xf9   : > { %13663 = vmatpush3.bf16.msra.mxu1 %v15058_v33  ;;  %v13350_v45 = vadd.f32 %v13349_v43, %v13348_v38  ;;  %10062 = vmatprep.mubr.bf16.mxu1 %v2569_v37  ;;  %v13371_v47 = vpop.f32.mrf.mxu1  ;;  %v15099_v33 = vld [vmem:[%s15978_s11 + $0x8a8] sm:$0xff]   ;;  %v15101_v38 = vld [vmem:[%s15978_s11 + $0x8e0] sm:$0xff]   ;;  %v15104_v43 = vld [vmem:[%s15978_s11 + $0x858] sm:$0xff]  }
  0xfa   : > { %v13351_v48 = vpop.f32.mrf.mxu0  ;;  %13664 = vmatprep.subr.bf16.mxu1 %v15060_v36  ;;  %v13372_v50 = vadd.f32 %v13371_v47, %v13370_v41  ;;  %v15100_v36 = vld [vmem:[%s15978_s11 + $0x860] sm:$0xff]   ;;  %v15108_v47 = vld [vmem:[%s15978_s11 + $0x850] sm:$0xff]  }
  0xfb   : > { %13643 = vmatpush3.bf16.msra.mxu0 %v15061_v39  ;;  %v13373_v52 = vpop.f32.mrf.mxu1  ;;  %v15103_v41 = vld [vmem:[%s15978_s11 + $0x8a0] sm:$0xff]   ;;  %v15109_v48 = vld [vmem:[%s15978_s11 + $0x8d0] sm:$0xff]  }
  0xfc   : > { %v13352_v53 = vpop.f32.mrf.mxu0  ;;  %13644 = vmatprep.subr.bf16.mxu0 %v15063_v44  ;;  %v16266_v55 = vadd.f32 %v13372_v50, %v13350_v45  ;;  %v15105_v44 = vld [vmem:[%s15978_s11 + $0x8d8] sm:$0xff]   ;;  %v15111_v50 = vld [vmem:[%s15978_s11 + $0x890] sm:$0xff]   ;;  %v15113_v52 = vld [vmem:[%s15978_s11 + $0x8c8] sm:$0xff]  }
  0xfd   : > { %13665 = vmatpush3.bf16.msra.mxu1 %v15062_v40  ;;  %v13374_v57 = vpop.f32.mrf.mxu1  ;;  %v15102_v40 = vld [vmem:[%s15978_s11 + $0x820] sm:$0xff]   ;;  %v15106_v45 = vld [vmem:[%s15978_s11 + $0x818] sm:$0xff]  }
  0xfe   : > { %13666 = vmatprep.subr.bf16.mxu1 %v15064_v46  ;;  %v15107_v46 = vld [vmem:[%s15978_s11 + $0x898] sm:$0xff]   ;;  %v298_v53 = vld [vmem:[%s15973_s30 + $0x20] sm:$0xff]  ;;  %v15115_v57 = vld [vmem:[%s15978_s11 + $0x888] sm:$0xff]  }
  0xff   : > { %13645 = vmatpush3.bf16.msra.mxu0 %v15065_v49  ;;  %v15110_v49 = vld [vmem:[%s15978_s11 + $0x810] sm:$0xff]  }
 0x100   : > { %13646 = vmatprep.subr.bf16.mxu0 %v15067_v54  ;;  %v15114_v54 = vld [vmem:[%s15978_s11 + $0x808] sm:$0xff]  }
 0x101   : > { %13667 = vmatpush3.bf16.msra.mxu1 %v15066_v51  ;;  %v15112_v51 = vld [vmem:[%s15978_s11 + $0x848] sm:$0xff]  }
 0x102   : > { %13668 = vmatprep.subr.bf16.mxu1 %v15068_v56  ;;  %v2570_v56 = vcombine.high %v298_v53, %v298_v53 }
 0x103   : > { %13647 = vmatpush3.bf16.msra.mxu0 %v15069_v58  ;;  %v15116_v58 = vld [vmem:[%s15978_s11 + $0x840] sm:$0xff]  }
 0x104   : > { %13648 = vmatprep.subr.bf16.mxu0 %v15071_v60  ;;  %v16324_v60 = vrot.slane %v2570_v56, %v16016_v42  ;;  %v15156_v56 = vld [vmem:[%s15978_s11 + $0xab8] sm:$0xff]  }
 0x105   : > { %13669 = vmatpush3.bf16.msra.mxu1 %v15070_v59 }
 0x106   : > { %13670 = vmatprep.subr.bf16.mxu1 %v15072_v61  ;;  %v15117_v61 = vld [vmem:[%s15978_s11 + $0x8c0] sm:$0xff]  }
 0x107   : > { %13649 = vmatpush3.bf16.msra.mxu0 %v15073_v62  ;;  %v15118_v62 = vld [vmem:[%s15978_s11 + $0x800] sm:$0xff]  }
 0x108   : > { %13650 = vmatprep.subr.bf16.mxu0 %v15075_v0  ;;  %v2586_v0 = vcombine.high %v16324_v60, %v16324_v60 }
 0x109   : > { %13671 = vmatpush3.bf16.msra.mxu1 %v15074_v63 }
 0x10a   : > { %13672 = vmatprep.subr.bf16.mxu1 %v15076_v1  ;;  %v15119_v1 = vld [vmem:[%s15978_s11 + $0x880] sm:$0xff]  }
 0x10b   : > { %13651 = vmatpush3.bf16.msra.mxu0 %v15077_v2 }
 0x10c   : > { %13652 = vmatprep.subr.bf16.mxu0 %v15079_v4  ;;  %v15120_v4 = vld [vmem:[%s15978_s11 + $0x978] sm:$0xff]  }
 0x10d   : > { %13673 = vmatpush3.bf16.msra.mxu1 %v15078_v3 }
 0x10e   : > { %13674 = vmatprep.subr.bf16.mxu1 %v15080_v5  ;;  %v15121_v5 = vld [vmem:[%s15978_s11 + $0x9f8] sm:$0xff]  }
 0x10f   : > { %13653 = vmatpush3.bf16.msra.mxu0 %v15081_v6  ;;  %v2614_v6 = vrot.slane %v2586_v0, %v16016_v42 }
 0x110   : > { %13654 = vmatprep.subr.bf16.mxu0 %v15083_v8  ;;  %v15123_v8 = vld [vmem:[%s15978_s11 + $0x9b8] sm:$0xff]  }
 0x111   : > { %13675 = vmatpush3.bf16.msra.mxu1 %v15082_v7  ;;  %v15122_v7 = vld [vmem:[%s15978_s11 + $0x938] sm:$0xff]  }
 0x112   : > { %13676 = vmatprep.subr.bf16.mxu1 %v15084_v9 }
 0x113   : > { %13655 = vmatpush3.bf16.msra.mxu0 %v15085_v10  ;;  %v15124_v10 = vld [vmem:[%s15978_s11 + $0x970] sm:$0xff]  }
 0x114   : > { %13684 = vmatprep.subr.bf16.mxu0 %v15088_v13 }
 0x115   : > { %13677 = vmatpush3.bf16.msra.mxu1 %v15086_v11  ;;  %v15125_v11 = vld [vmem:[%s15978_s11 + $0x9f0] sm:$0xff]  }
 0x116   : > { %v13392_v20 = vpop.f32.mrf.mxu0  ;;  %10023 = vmatmul.mubr.bf16.vlgmr.msra.gmra.mxu0 %v2551_v12  ;;  %13706 = vmatprep.subr.bf16.mxu1 %v15089_v14  ;;  %v2618_v12 = vcombine.high %v2614_v6, %v2614_v6  ;;  %v15126_v14 = vld [vmem:[%s15978_s11 + $0x930] sm:$0xff]  }
 0x117   : > { %13685 = vmatpush3.bf16.msra.mxu0 %v15090_v15  ;;  %v13414_v23 = vpop.f32.mrf.mxu1  ;;  %v15127_v15 = vld [vmem:[%s15978_s11 + $0x9b0] sm:$0xff]  }
 0x118   : > { %10063 = vmatmul.mubr.bf16.vlgmr.msra.gmra.mxu1 %v2567_v17  ;;  %v13393_v24 = vpop.f32.mrf.mxu0  ;;  %13686 = vmatprep.subr.bf16.mxu0 %v15092_v18  ;;  %v15128_v18 = vld [vmem:[%s15978_s11 + $0x968] sm:$0xff]  }
 0x119   : > { %13707 = vmatpush3.bf16.msra.mxu1 %v15091_v16  ;;  %v13394_v26 = vadd.f32 %v13393_v24, %v13392_v20  ;;  %v13415_v28 = vpop.f32.mrf.mxu1  ;;  %v15129_v20 = vld [vmem:[%s15978_s11 + $0x9e8] sm:$0xff]  }
 0x11a   : > { %v13395_v29 = vpop.f32.mrf.mxu0  ;;  %13708 = vmatprep.subr.bf16.mxu1 %v15093_v19  ;;  %v13416_v32 = vadd.f32 %v13415_v28, %v13414_v23  ;;  %v15130_v23 = vld [vmem:[%s15978_s11 + $0x928] sm:$0xff]  }
 0x11b   : > { %v9545_v31 = vadd.f32 %v13394_v26, %v16266_v55  ;;  %13687 = vmatpush3.bf16.msra.mxu0 %v15094_v21  ;;  %v13417_v34 = vpop.f32.mrf.mxu1  ;;  %v2577_v55 = vrot.slane %v298_v53, %v16016_v42  ;;  %v15131_v26 = vld [vmem:[%s15978_s11 + $0x9a8] sm:$0xff]   ;;  %v15132_v29 = vld [vmem:[%s15978_s11 + $0x960] sm:$0xff]   ;;  %v15153_v53 = vld [vmem:[%s15978_s11 + $0xa78] sm:$0xff]  }
 0x11c   : > { %v13396_v35 = vpop.f32.mrf.mxu0  ;;  %13688 = vmatprep.subr.bf16.mxu0 %v15096_v25  ;;  %v15135_v34 = vld [vmem:[%s15978_s11 + $0x9a0] sm:$0xff]  }
 0x11d   : > { %v16303_v37 = vadd.f32 %v13416_v32, %v9545_v31  ;;  %13709 = vmatpush3.bf16.msra.mxu1 %v15095_v22  ;;  %v13418_v39 = vpop.f32.mrf.mxu1  ;;  %v2585_v59 = vcombine.high %v2577_v55, %v2577_v55  ;;  %v2593_v3 = vrot.slane %v2577_v55, %v16016_v42  ;;  %v15133_v31 = vld [vmem:[%s15978_s11 + $0x9e0] sm:$0xff]   ;;  %v15136_v35 = vld [vmem:[%s15978_s11 + $0x958] sm:$0xff]  }
 0x11e   : > { %13710 = vmatprep.subr.bf16.mxu1 %v15097_v27  ;;  %v15140_v39 = vld [vmem:[%s15978_s11 + $0x950] sm:$0xff]   ;;  %v15155_v55 = vld [vmem:[%s15978_s11 + $0xa38] sm:$0xff]  }
 0x11f   : > { %13689 = vmatpush3.bf16.msra.mxu0 %v15098_v30  ;;  %v2607_v63 = vrot.slane %v2585_v59, %v16016_v42  ;;  %v2615_v9 = vcombine.high %v2593_v3, %v2593_v3  ;;  %v15158_v59 = vld [vmem:[%s15978_s11 + $0xaf0] sm:$0xff]  }
 0x120   : > { %13690 = vmatprep.subr.bf16.mxu0 %v15100_v36  ;;  %v15137_v36 = vld [vmem:[%s15978_s11 + $0x9d8] sm:$0xff]  }
 0x121   : > { %13711 = vmatpush3.bf16.msra.mxu1 %v15099_v33  ;;  %10102 = vmatprep.mubr.bf16.mxu0 %v2607_v63  ;;  %v2617_v2 = vcombine.high %v2607_v63, %v2607_v63  ;;  %v15134_v33 = vld [vmem:[%s15978_s11 + $0x920] sm:$0xff]  }
 0x122   : > { %13712 = vmatprep.subr.bf16.mxu1 %v15101_v38  ;;  %v15139_v38 = vld [vmem:[%s15978_s11 + $0x998] sm:$0xff]  }
 0x123   : > { %13691 = vmatpush3.bf16.msra.mxu0 %v15102_v40  ;;  %10142 = vmatprep.mubr.bf16.mxu1 %v2617_v2  ;;  %v15141_v40 = vld [vmem:[%s15978_s11 + $0x9d0] sm:$0xff]  }
 0x124   : > { %13692 = vmatprep.subr.bf16.mxu0 %v15104_v43  ;;  %v15143_v43 = vld [vmem:[%s15978_s11 + $0x990] sm:$0xff]  }
 0x125   : > { %13713 = vmatpush3.bf16.msra.mxu1 %v15103_v41  ;;  %v15142_v41 = vld [vmem:[%s15978_s11 + $0x910] sm:$0xff]  }
 0x126   : > { %13714 = vmatprep.subr.bf16.mxu1 %v15105_v44  ;;  %v15144_v44 = vld [vmem:[%s15978_s11 + $0x948] sm:$0xff]  }
 0x127   : > { %13693 = vmatpush3.bf16.msra.mxu0 %v15106_v45  ;;  %v15145_v45 = vld [vmem:[%s15978_s11 + $0x9c8] sm:$0xff]  }
 0x128   : > { %13694 = vmatprep.subr.bf16.mxu0 %v15108_v47  ;;  %v15147_v47 = vld [vmem:[%s15978_s11 + $0x988] sm:$0xff]  }
 0x129   : > { %13715 = vmatpush3.bf16.msra.mxu1 %v15107_v46  ;;  %v15146_v46 = vld [vmem:[%s15978_s11 + $0x908] sm:$0xff]  }
 0x12a   : > { %13716 = vmatprep.subr.bf16.mxu1 %v15109_v48  ;;  %v15148_v48 = vld [vmem:[%s15978_s11 + $0x940] sm:$0xff]  }
 0x12b   : > { %13695 = vmatpush3.bf16.msra.mxu0 %v15110_v49  ;;  %v15149_v49 = vld [vmem:[%s15978_s11 + $0x9c0] sm:$0xff]  }
 0x12c   : > { %13696 = vmatprep.subr.bf16.mxu0 %v15112_v51  ;;  %v15151_v51 = vld [vmem:[%s15978_s11 + $0x980] sm:$0xff]  }
 0x12d   : > { %13717 = vmatpush3.bf16.msra.mxu1 %v15111_v50  ;;  %v15150_v50 = vld [vmem:[%s15978_s11 + $0x900] sm:$0xff]  }
 0x12e   : > { %13718 = vmatprep.subr.bf16.mxu1 %v15113_v52  ;;  %v2600_v52 = vrot.slane %v16324_v60, %v16016_v42  ;;  %v15159_v60 = vld [vmem:[%s15978_s11 + $0xa30] sm:$0xff]  }
 0x12f   : > { %13697 = vmatpush3.bf16.msra.mxu0 %v15114_v54  ;;  %v15154_v54 = vld [vmem:[%s15978_s11 + $0xaf8] sm:$0xff]  }
 0x130   : > { %13698 = vmatprep.subr.bf16.mxu0 %v15116_v58  ;;  %v15157_v58 = vld [vmem:[%s15978_s11 + $0xa70] sm:$0xff]  }
 0x131   : > { %13719 = vmatpush3.bf16.msra.mxu1 %v15115_v57  ;;  %v2616_v57 = vcombine.high %v2600_v52, %v2600_v52 }
 0x132   : > { %13720 = vmatprep.subr.bf16.mxu1 %v15117_v61 }
 0x133   : > { %13699 = vmatpush3.bf16.msra.mxu0 %v15118_v62  ;;  %v15160_v62 = vld [vmem:[%s15978_s11 + $0xab0] sm:$0xff]  }
 0x134   : > { %13728 = vmatprep.subr.bf16.mxu0 %v15120_v4 }
 0x135   : > { %13721 = vmatpush3.bf16.msra.mxu1 %v15119_v1  ;;  %v15161_v1 = vld [vmem:[%s15978_s11 + $0xa68] sm:$0xff]  }
 0x136   : > { %v13436_v13 = vpop.f32.mrf.mxu0  ;;  %10103 = vmatmul.mubr.bf16.vlgmr.msra.gmra.mxu0 %v2593_v3  ;;  %13750 = vmatprep.subr.bf16.mxu1 %v15121_v5  ;;  %v15162_v3 = vld [vmem:[%s15978_s11 + $0xae8] sm:$0xff]  }
 0x137   : > { %13729 = vmatpush3.bf16.msra.mxu0 %v15122_v7  ;;  %10182 = vmatprep.mubr.bf16.mxu0 %v2614_v6  ;;  %v15163_v6 = vld [vmem:[%s15978_s11 + $0xa28] sm:$0xff]  }
 0x138   : > { %v13458_v16 = vpop.f32.mrf.mxu1  ;;  %10143 = vmatmul.mubr.bf16.vlgmr.msra.gmra.mxu1 %v2615_v9  ;;  %v13437_v17 = vpop.f32.mrf.mxu0  ;;  %13730 = vmatprep.subr.bf16.mxu0 %v15124_v10  ;;  %v15164_v9 = vld [vmem:[%s15978_s11 + $0xaa8] sm:$0xff]  }
 0x139   : > { %13751 = vmatpush3.bf16.msra.mxu1 %v15123_v8  ;;  %v13438_v19 = vadd.f32 %v13437_v17, %v13436_v13  ;;  %10222 = vmatprep.mubr.bf16.mxu1 %v2618_v12  ;;  %v15165_v12 = vld [vmem:[%s15978_s11 + $0xa60] sm:$0xff]  }
 0x13a   : > { %v13459_v21 = vpop.f32.mrf.mxu1  ;;  %v13439_v22 = vpop.f32.mrf.mxu0  ;;  %13752 = vmatprep.subr.bf16.mxu1 %v15125_v11  ;;  %v15168_v17 = vld [vmem:[%s15978_s11 + $0xaa0] sm:$0xff]  }
 0x13b   : > { %v9625_v24 = vadd.f32 %v13438_v19, %v16303_v37  ;;  %v13460_v25 = vadd.f32 %v13459_v21, %v13458_v16  ;;  %13731 = vmatpush3.bf16.msra.mxu0 %v15126_v14  ;;  %v15138_v37 = vld [vmem:[%s15978_s11 + $0x918] sm:$0xff]   ;;  %v15166_v14 = vld [vmem:[%s15978_s11 + $0xae0] sm:$0xff]   ;;  %v15173_v22 = vld [vmem:[%s15978_s11 + $0xa50] sm:$0xff]  }
 0x13c   : > { %v13461_v27 = vpop.f32.mrf.mxu1  ;;  %v13440_v28 = vpop.f32.mrf.mxu0  ;;  %13732 = vmatprep.subr.bf16.mxu0 %v15128_v18  ;;  %v15167_v16 = vld [vmem:[%s15978_s11 + $0xa20] sm:$0xff]   ;;  %v15169_v18 = vld [vmem:[%s15978_s11 + $0xa58] sm:$0xff]  }
 0x13d   : > { %v16348_v30 = vadd.f32 %v13460_v25, %v9625_v24  ;;  %13753 = vmatpush3.bf16.msra.mxu1 %v15127_v15  ;;  %v15170_v19 = vld [vmem:[%s15978_s11 + $0xad8] sm:$0xff]   ;;  %v15175_v24 = vld [vmem:[%s15978_s11 + $0xa10] sm:$0xff]   ;;  %v15178_v27 = vld [vmem:[%s15978_s11 + $0xac8] sm:$0xff]  }
 0x13e   : > { %v13462_v32 = vpop.f32.mrf.mxu1  ;;  %13754 = vmatprep.subr.bf16.mxu1 %v15129_v20  ;;  %v15171_v20 = vld [vmem:[%s15978_s11 + $0xa18] sm:$0xff]   ;;  %v15176_v25 = vld [vmem:[%s15978_s11 + $0xa90] sm:$0xff]   ;;  %v299_v28 = vld [vmem:[%s15973_s30 + $0x28] sm:$0xff] }
 0x13f   : > { %13733 = vmatpush3.bf16.msra.mxu0 %v15130_v23  ;;  %v15172_v21 = vld [vmem:[%s15978_s11 + $0xa98] sm:$0xff]   ;;  %v15174_v23 = vld [vmem:[%s15978_s11 + $0xad0] sm:$0xff]   ;;  %v15180_v32 = vld [vmem:[%s15978_s11 + $0xa88] sm:$0xff]  }
 0x140   : > { %13734 = vmatprep.subr.bf16.mxu0 %v15132_v29  ;;  %v15179_v29 = vld [vmem:[%s15978_s11 + $0xa08] sm:$0xff]  }
 0x141   : > { %13755 = vmatpush3.bf16.msra.mxu1 %v15131_v26  ;;  %v15177_v26 = vld [vmem:[%s15978_s11 + $0xa48] sm:$0xff]  }
 0x142   : > { %13756 = vmatprep.subr.bf16.mxu1 %v15133_v31  ;;  %v2619_v31 = vcombine.high %v299_v28, %v299_v28 }
 0x143   : > { %13735 = vmatpush3.bf16.msra.mxu0 %v15134_v33  ;;  %v15181_v33 = vld [vmem:[%s15978_s11 + $0xa40] sm:$0xff]  }
 0x144   : > { %13736 = vmatprep.subr.bf16.mxu0 %v15136_v35  ;;  %v16406_v35 = vrot.slane %v2619_v31, %v16016_v42  ;;  %v15221_v31 = vld [vmem:[%s15978_s11 + $0xcb8] sm:$0xff]  }
 0x145   : > { %13757 = vmatpush3.bf16.msra.mxu1 %v15135_v34 }
 0x146   : > { %13758 = vmatprep.subr.bf16.mxu1 %v15137_v36  ;;  %v15182_v36 = vld [vmem:[%s15978_s11 + $0xac0] sm:$0xff]  }
 0x147   : > { %13737 = vmatpush3.bf16.msra.mxu0 %v15138_v37  ;;  %v15183_v37 = vld [vmem:[%s15978_s11 + $0xa00] sm:$0xff]  }
 0x148   : > { %13738 = vmatprep.subr.bf16.mxu0 %v15140_v39  ;;  %v2635_v39 = vcombine.high %v16406_v35, %v16406_v35 }
 0x149   : > { %13759 = vmatpush3.bf16.msra.mxu1 %v15139_v38 }
 0x14a   : > { %13760 = vmatprep.subr.bf16.mxu1 %v15141_v40  ;;  %v15184_v40 = vld [vmem:[%s15978_s11 + $0xa80] sm:$0xff]  }
 0x14b   : > { %13739 = vmatpush3.bf16.msra.mxu0 %v15142_v41 }
 0x14c   : > { %13740 = vmatprep.subr.bf16.mxu0 %v15144_v44  ;;  %v15185_v44 = vld [vmem:[%s15978_s11 + $0xb78] sm:$0xff]  }
 0x14d   : > { %13761 = vmatpush3.bf16.msra.mxu1 %v15143_v43 }
 0x14e   : > { %13762 = vmatprep.subr.bf16.mxu1 %v15145_v45  ;;  %v15186_v45 = vld [vmem:[%s15978_s11 + $0xbf8] sm:$0xff]  }
 0x14f   : > { %13741 = vmatpush3.bf16.msra.mxu0 %v15146_v46  ;;  %v2663_v46 = vrot.slane %v2635_v39, %v16016_v42 }
 0x150   : > { %13742 = vmatprep.subr.bf16.mxu0 %v15148_v48  ;;  %v15188_v48 = vld [vmem:[%s15978_s11 + $0xbb8] sm:$0xff]  }
 0x151   : > { %13763 = vmatpush3.bf16.msra.mxu1 %v15147_v47  ;;  %v15187_v47 = vld [vmem:[%s15978_s11 + $0xb38] sm:$0xff]  }
 0x152   : > { %13764 = vmatprep.subr.bf16.mxu1 %v15149_v49 }
 0x153   : > { %13743 = vmatpush3.bf16.msra.mxu0 %v15150_v50  ;;  %v15189_v50 = vld [vmem:[%s15978_s11 + $0xb70] sm:$0xff]  }
 0x154   : > { %13772 = vmatprep.subr.bf16.mxu0 %v15153_v53 }
 0x155   : > { %13765 = vmatpush3.bf16.msra.mxu1 %v15151_v51  ;;  %v15190_v51 = vld [vmem:[%s15978_s11 + $0xbf0] sm:$0xff]  }
 0x156   : > { %v13480_v61 = vpop.f32.mrf.mxu0  ;;  %10183 = vmatmul.mubr.bf16.vlgmr.msra.gmra.mxu0 %v2600_v52  ;;  %13794 = vmatprep.subr.bf16.mxu1 %v15154_v54  ;;  %v2667_v52 = vcombine.high %v2663_v46, %v2663_v46  ;;  %v15191_v54 = vld [vmem:[%s15978_s11 + $0xb30] sm:$0xff]  }
 0x157   : > { %13773 = vmatpush3.bf16.msra.mxu0 %v15155_v55  ;;  %v15192_v55 = vld [vmem:[%s15978_s11 + $0xbb0] sm:$0xff]  }
 0x158   : > { %v13502_v63 = vpop.f32.mrf.mxu1  ;;  %10223 = vmatmul.mubr.bf16.vlgmr.msra.gmra.mxu1 %v2616_v57  ;;  %v13481_v0 = vpop.f32.mrf.mxu0  ;;  %13774 = vmatprep.subr.bf16.mxu0 %v15157_v58  ;;  %v15193_v58 = vld [vmem:[%s15978_s11 + $0xb68] sm:$0xff]  }
 0x159   : > { %13795 = vmatpush3.bf16.msra.mxu1 %v15156_v56  ;;  %v13482_v2 = vadd.f32 %v13481_v0, %v13480_v61  ;;  %v15194_v61 = vld [vmem:[%s15978_s11 + $0xbe8] sm:$0xff]  }
 0x15a   : > { %v13503_v4 = vpop.f32.mrf.mxu1  ;;  %v13483_v5 = vpop.f32.mrf.mxu0  ;;  %13796 = vmatprep.subr.bf16.mxu1 %v15158_v59 }
 0x15b   : > { %v9705_v7 = vadd.f32 %v13482_v2, %v16348_v30  ;;  %v13504_v8 = vadd.f32 %v13503_v4, %v13502_v63  ;;  %13775 = vmatpush3.bf16.msra.mxu0 %v15159_v60  ;;  %v2626_v30 = vrot.slane %v299_v28, %v16016_v42  ;;  %v15195_v63 = vld [vmem:[%s15978_s11 + $0xb28] sm:$0xff]   ;;  %v15197_v5 = vld [vmem:[%s15978_s11 + $0xb60] sm:$0xff]   ;;  %v15218_v28 = vld [vmem:[%s15978_s11 + $0xc78] sm:$0xff]  }
 0x15c   : > { %v13505_v10 = vpop.f32.mrf.mxu1  ;;  %v13484_v11 = vpop.f32.mrf.mxu0  ;;  %13776 = vmatprep.subr.bf16.mxu0 %v15161_v1  ;;  %v15196_v2 = vld [vmem:[%s15978_s11 + $0xba8] sm:$0xff]  }
 0x15d   : > { %v16385_v13 = vadd.f32 %v13504_v8, %v9705_v7  ;;  %13797 = vmatpush3.bf16.msra.mxu1 %v15160_v62  ;;  %v2634_v34 = vcombine.high %v2626_v30, %v2626_v30  ;;  %v2642_v43 = vrot.slane %v2626_v30, %v16016_v42  ;;  %v15198_v7 = vld [vmem:[%s15978_s11 + $0xbe0] sm:$0xff]   ;;  %v15201_v11 = vld [vmem:[%s15978_s11 + $0xb58] sm:$0xff]  }
 0x15e   : > { %v13506_v15 = vpop.f32.mrf.mxu1  ;;  %13798 = vmatprep.subr.bf16.mxu1 %v15162_v3  ;;  %v15200_v10 = vld [vmem:[%s15978_s11 + $0xba0] sm:$0xff]   ;;  %v15220_v30 = vld [vmem:[%s15978_s11 + $0xc38] sm:$0xff]  }
 0x15f   : > { %13777 = vmatpush3.bf16.msra.mxu0 %v15163_v6  ;;  %v2656_v38 = vrot.slane %v2634_v34, %v16016_v42  ;;  %v2664_v49 = vcombine.high %v2642_v43, %v2642_v43  ;;  %v15205_v15 = vld [vmem:[%s15978_s11 + $0xb50] sm:$0xff]  }
 0x160   : > { %13778 = vmatprep.subr.bf16.mxu0 %v15165_v12  ;;  %v15202_v12 = vld [vmem:[%s15978_s11 + $0xbd8] sm:$0xff]   ;;  %v15223_v34 = vld [vmem:[%s15978_s11 + $0xcf0] sm:$0xff]  }
 0x161   : > { %13799 = vmatpush3.bf16.msra.mxu1 %v15164_v9  ;;  %10262 = vmatprep.mubr.bf16.mxu0 %v2656_v38  ;;  %v2666_v41 = vcombine.high %v2656_v38, %v2656_v38  ;;  %v15199_v9 = vld [vmem:[%s15978_s11 + $0xb20] sm:$0xff]  }
 0x162   : > { %13800 = vmatprep.subr.bf16.mxu1 %v15166_v14  ;;  %v15204_v14 = vld [vmem:[%s15978_s11 + $0xb98] sm:$0xff]  }
 0x163   : > { %13779 = vmatpush3.bf16.msra.mxu0 %v15167_v16  ;;  %10302 = vmatprep.mubr.bf16.mxu1 %v2666_v41  ;;  %v15206_v16 = vld [vmem:[%s15978_s11 + $0xbd0] sm:$0xff]  }
 0x164   : > { %13780 = vmatprep.subr.bf16.mxu0 %v15169_v18  ;;  %v15208_v18 = vld [vmem:[%s15978_s11 + $0xb90] sm:$0xff]  }
 0x165   : > { %13801 = vmatpush3.bf16.msra.mxu1 %v15168_v17  ;;  %v15207_v17 = vld [vmem:[%s15978_s11 + $0xb10] sm:$0xff]  }
 0x166   : > { %13802 = vmatprep.subr.bf16.mxu1 %v15170_v19  ;;  %v15209_v19 = vld [vmem:[%s15978_s11 + $0xb48] sm:$0xff]  }
 0x167   : > { %13781 = vmatpush3.bf16.msra.mxu0 %v15171_v20  ;;  %v15210_v20 = vld [vmem:[%s15978_s11 + $0xbc8] sm:$0xff]  }
 0x168   : > { %13782 = vmatprep.subr.bf16.mxu0 %v15173_v22  ;;  %v15212_v22 = vld [vmem:[%s15978_s11 + $0xb88] sm:$0xff]  }
 0x169   : > { %13803 = vmatpush3.bf16.msra.mxu1 %v15172_v21  ;;  %v15211_v21 = vld [vmem:[%s15978_s11 + $0xb08] sm:$0xff]  }
 0x16a   : > { %13804 = vmatprep.subr.bf16.mxu1 %v15174_v23  ;;  %v15213_v23 = vld [vmem:[%s15978_s11 + $0xb40] sm:$0xff]  }
 0x16b   : > { %13783 = vmatpush3.bf16.msra.mxu0 %v15175_v24  ;;  %v15214_v24 = vld [vmem:[%s15978_s11 + $0xbc0] sm:$0xff]  }
 0x16c   : > { %13784 = vmatprep.subr.bf16.mxu0 %v15177_v26  ;;  %v15216_v26 = vld [vmem:[%s15978_s11 + $0xb80] sm:$0xff]  }
 0x16d   : > { %13805 = vmatpush3.bf16.msra.mxu1 %v15176_v25  ;;  %v15215_v25 = vld [vmem:[%s15978_s11 + $0xb00] sm:$0xff]  }
 0x16e   : > { %13806 = vmatprep.subr.bf16.mxu1 %v15178_v27  ;;  %v2649_v27 = vrot.slane %v16406_v35, %v16016_v42  ;;  %v15224_v35 = vld [vmem:[%s15978_s11 + $0xc30] sm:$0xff]  }
 0x16f   : > { %13785 = vmatpush3.bf16.msra.mxu0 %v15179_v29  ;;  %v15219_v29 = vld [vmem:[%s15978_s11 + $0xcf8] sm:$0xff]  }
 0x170   : > { %13786 = vmatprep.subr.bf16.mxu0 %v15181_v33  ;;  %v15222_v33 = vld [vmem:[%s15978_s11 + $0xc70] sm:$0xff]  }
 0x171   : > { %13807 = vmatpush3.bf16.msra.mxu1 %v15180_v32  ;;  %v2665_v32 = vcombine.high %v2649_v27, %v2649_v27 }
 0x172   : > { %13808 = vmatprep.subr.bf16.mxu1 %v15182_v36 }
 0x173   : > { %13787 = vmatpush3.bf16.msra.mxu0 %v15183_v37  ;;  %v15225_v37 = vld [vmem:[%s15978_s11 + $0xcb0] sm:$0xff]  }
 0x174   : > { %13816 = vmatprep.subr.bf16.mxu0 %v15185_v44 }
 0x175   : > { %13809 = vmatpush3.bf16.msra.mxu1 %v15184_v40  ;;  %v15226_v40 = vld [vmem:[%s15978_s11 + $0xc68] sm:$0xff]  }
 0x176   : > { %v13524_v53 = vpop.f32.mrf.mxu0  ;;  %10263 = vmatmul.mubr.bf16.vlgmr.msra.gmra.mxu0 %v2642_v43  ;;  %13838 = vmatprep.subr.bf16.mxu1 %v15186_v45  ;;  %v15227_v43 = vld [vmem:[%s15978_s11 + $0xce8] sm:$0xff]  }
 0x177   : > { %13817 = vmatpush3.bf16.msra.mxu0 %v15187_v47  ;;  %10342 = vmatprep.mubr.bf16.mxu0 %v2663_v46  ;;  %v15228_v46 = vld [vmem:[%s15978_s11 + $0xc28] sm:$0xff]  }
 0x178   : > { %v13546_v56 = vpop.f32.mrf.mxu1  ;;  %10303 = vmatmul.mubr.bf16.vlgmr.msra.gmra.mxu1 %v2664_v49  ;;  %v13525_v57 = vpop.f32.mrf.mxu0  ;;  %13818 = vmatprep.subr.bf16.mxu0 %v15189_v50  ;;  %v15229_v49 = vld [vmem:[%s15978_s11 + $0xca8] sm:$0xff]  }
 0x179   : > { %13839 = vmatpush3.bf16.msra.mxu1 %v15188_v48  ;;  %v13526_v59 = vadd.f32 %v13525_v57, %v13524_v53  ;;  %10382 = vmatprep.mubr.bf16.mxu1 %v2667_v52  ;;  %v15230_v52 = vld [vmem:[%s15978_s11 + $0xc60] sm:$0xff]  }
 0x17a   : > { %v13547_v60 = vpop.f32.mrf.mxu1  ;;  %v13527_v62 = vpop.f32.mrf.mxu0  ;;  %13840 = vmatprep.subr.bf16.mxu1 %v15190_v51  ;;  %v15233_v57 = vld [vmem:[%s15978_s11 + $0xca0] sm:$0xff]  }
 0x17b   : > { %v9785_v0 = vadd.f32 %v13526_v59, %v16385_v13  ;;  %v13548_v1 = vadd.f32 %v13547_v60, %v13546_v56  ;;  %13819 = vmatpush3.bf16.msra.mxu0 %v15191_v54  ;;  %v15203_v13 = vld [vmem:[%s15978_s11 + $0xb18] sm:$0xff]   ;;  %v15231_v54 = vld [vmem:[%s15978_s11 + $0xce0] sm:$0xff]   ;;  %v15238_v62 = vld [vmem:[%s15978_s11 + $0xc50] sm:$0xff]  }
 0x17c   : > { %v13549_v3 = vpop.f32.mrf.mxu1  ;;  %v13528_v4 = vpop.f32.mrf.mxu0  ;;  %13820 = vmatprep.subr.bf16.mxu0 %v15193_v58  ;;  %v15232_v56 = vld [vmem:[%s15978_s11 + $0xc20] sm:$0xff]   ;;  %v15234_v58 = vld [vmem:[%s15978_s11 + $0xc58] sm:$0xff]  }
 0x17d   : > { %v16430_v6 = vadd.f32 %v13548_v1, %v9785_v0  ;;  %13841 = vmatpush3.bf16.msra.mxu1 %v15192_v55  ;;  %v15235_v59 = vld [vmem:[%s15978_s11 + $0xcd8] sm:$0xff]   ;;  %v15240_v0 = vld [vmem:[%s15978_s11 + $0xc10] sm:$0xff]   ;;  %v15243_v3 = vld [vmem:[%s15978_s11 + $0xcc8] sm:$0xff]  }
 0x17e   : > { %v13550_v8 = vpop.f32.mrf.mxu1  ;;  %13842 = vmatprep.subr.bf16.mxu1 %v15194_v61  ;;  %v15236_v61 = vld [vmem:[%s15978_s11 + $0xc18] sm:$0xff]   ;;  %v15241_v1 = vld [vmem:[%s15978_s11 + $0xc90] sm:$0xff]   ;;  %v15244_v4 = vld [vmem:[%s15978_s11 + $0xc08] sm:$0xff]  }
 0x17f   : > { %13821 = vmatpush3.bf16.msra.mxu0 %v15195_v63  ;;  %v15237_v60 = vld [vmem:[%s15978_s11 + $0xc98] sm:$0xff]   ;;  %v15239_v63 = vld [vmem:[%s15978_s11 + $0xcd0] sm:$0xff]  }
 0x180   : > { %13822 = vmatprep.subr.bf16.mxu0 %v15197_v5  ;;  %v300_v5 = vld [vmem:[%s15973_s30 + $0x30] sm:$0xff] }
 0x181   : > { %13843 = vmatpush3.bf16.msra.mxu1 %v15196_v2  ;;  %v15242_v2 = vld [vmem:[%s15978_s11 + $0xc48] sm:$0xff]   ;;  %v2668_v8 = vcombine.high %v300_v5, %v300_v5 }
 0x182   : > { %13844 = vmatprep.subr.bf16.mxu1 %v15198_v7  ;;  %v2675_v7 = vrot.slane %v300_v5, %v16016_v42  ;;  %v15284_v5 = vld [vmem:[%s15978_s11 + $0xef8] sm:$0xff]  }
 0x183   : > { %13823 = vmatpush3.bf16.msra.mxu0 %v15199_v9  ;;  %v15246_v9 = vld [vmem:[%s15978_s11 + $0xc40] sm:$0xff]  }
 0x184   : > { %13824 = vmatprep.subr.bf16.mxu0 %v15201_v11  ;;  %v2683_v11 = vcombine.high %v2675_v7, %v2675_v7 }
 0x185   : > { %13845 = vmatpush3.bf16.msra.mxu1 %v15200_v10  ;;  %v15247_v10 = vld [vmem:[%s15978_s11 + $0xcc0] sm:$0xff]  }
 0x186   : > { %13846 = vmatprep.subr.bf16.mxu1 %v15202_v12  ;;  %v16489_v12 = vrot.slane %v2668_v8, %v16016_v42 }
 0x187   : > { %13825 = vmatpush3.bf16.msra.mxu0 %v15203_v13  ;;  %v15248_v13 = vld [vmem:[%s15978_s11 + $0xc00] sm:$0xff]  }
 0x188   : > { %13826 = vmatprep.subr.bf16.mxu0 %v15205_v15  ;;  %v2705_v15 = vrot.slane %v2683_v11, %v16016_v42 }
 0x189   : > { %13847 = vmatpush3.bf16.msra.mxu1 %v15204_v14  ;;  %v15249_v14 = vld [vmem:[%s15978_s11 + $0xc80] sm:$0xff]  }
 0x18a   : > { %13848 = vmatprep.subr.bf16.mxu1 %v15206_v16  ;;  %v2684_v16 = vcombine.high %v16489_v12, %v16489_v12 }
 0x18b   : > { %13827 = vmatpush3.bf16.msra.mxu0 %v15207_v17  ;;  %v2691_v17 = vrot.slane %v2675_v7, %v16016_v42  ;;  %v15286_v7 = vld [vmem:[%s15978_s11 + $0xeb8] sm:$0xff]  }
 0x18c   : > { %13828 = vmatprep.subr.bf16.mxu0 %v15209_v19  ;;  %v2715_v19 = vcombine.high %v2705_v15, %v2705_v15 }
 0x18d   : > { %13849 = vmatpush3.bf16.msra.mxu1 %v15208_v18  ;;  %v15250_v18 = vld [vmem:[%s15978_s11 + $0xd78] sm:$0xff]  }
 0x18e   : > { %13850 = vmatprep.subr.bf16.mxu1 %v15210_v20  ;;  %v15251_v20 = vld [vmem:[%s15978_s11 + $0xdf8] sm:$0xff]  }
 0x18f   : > { %13829 = vmatpush3.bf16.msra.mxu0 %v15211_v21  ;;  %v2712_v21 = vrot.slane %v2684_v16, %v16016_v42  ;;  %v15291_v16 = vld [vmem:[%s15978_s11 + $0xe68] sm:$0xff]  }
 0x190   : > { %13830 = vmatprep.subr.bf16.mxu0 %v15213_v23  ;;  %v15253_v23 = vld [vmem:[%s15978_s11 + $0xdb8] sm:$0xff]  }
 0x191   : > { %13851 = vmatpush3.bf16.msra.mxu1 %v15212_v22  ;;  %v15252_v22 = vld [vmem:[%s15978_s11 + $0xd38] sm:$0xff]  }
 0x192   : > { %13852 = vmatprep.subr.bf16.mxu1 %v15214_v24  ;;  %v2713_v24 = vcombine.high %v2691_v17, %v2691_v17 }
 0x193   : > { %13831 = vmatpush3.bf16.msra.mxu0 %v15215_v25  ;;  %v15254_v25 = vld [vmem:[%s15978_s11 + $0xd70] sm:$0xff]  }
 0x194   : > { %13860 = vmatprep.subr.bf16.mxu0 %v15218_v28 }
 0x195   : > { %13853 = vmatpush3.bf16.msra.mxu1 %v15216_v26  ;;  %v15255_v26 = vld [vmem:[%s15978_s11 + $0xdf0] sm:$0xff]  }
 0x196   : > { %v13568_v36 = vpop.f32.mrf.mxu0  ;;  %10343 = vmatmul.mubr.bf16.vlgmr.msra.gmra.mxu0 %v2649_v27  ;;  %13882 = vmatprep.subr.bf16.mxu1 %v15219_v29  ;;  %v2716_v27 = vcombine.high %v2712_v21, %v2712_v21  ;;  %v15256_v29 = vld [vmem:[%s15978_s11 + $0xd30] sm:$0xff]  }
 0x197   : > { %13861 = vmatpush3.bf16.msra.mxu0 %v15220_v30  ;;  %10422 = vmatprep.mubr.bf16.mxu0 %v2705_v15  ;;  %v15257_v30 = vld [vmem:[%s15978_s11 + $0xdb0] sm:$0xff]  }
 0x198   : > { %v13590_v38 = vpop.f32.mrf.mxu1  ;;  %10383 = vmatmul.mubr.bf16.vlgmr.msra.gmra.mxu1 %v2665_v32  ;;  %v13569_v39 = vpop.f32.mrf.mxu0  ;;  %13862 = vmatprep.subr.bf16.mxu0 %v15222_v33  ;;  %v15258_v33 = vld [vmem:[%s15978_s11 + $0xd68] sm:$0xff]  }
 0x199   : > { %13883 = vmatpush3.bf16.msra.mxu1 %v15221_v31  ;;  %v13570_v41 = vadd.f32 %v13569_v39, %v13568_v36  ;;  %10462 = vmatprep.mubr.bf16.mxu1 %v2715_v19  ;;  %v15259_v36 = vld [vmem:[%s15978_s11 + $0xde8] sm:$0xff]  }
 0x19a   : > { %v13591_v44 = vpop.f32.mrf.mxu1  ;;  %v13571_v45 = vpop.f32.mrf.mxu0  ;;  %13884 = vmatprep.subr.bf16.mxu1 %v15223_v34 }
 0x19b   : > { %v9865_v47 = vadd.f32 %v13570_v41, %v16430_v6  ;;  %v13592_v48 = vadd.f32 %v13591_v44, %v13590_v38  ;;  %13863 = vmatpush3.bf16.msra.mxu0 %v15224_v35  ;;  %v15245_v6 = vld [vmem:[%s15978_s11 + $0xc88] sm:$0xff]   ;;  %v15262_v45 = vld [vmem:[%s15978_s11 + $0xd60] sm:$0xff]  }
 0x19c   : > { %v13593_v50 = vpop.f32.mrf.mxu1  ;;  %v13572_v51 = vpop.f32.mrf.mxu0  ;;  %13864 = vmatprep.subr.bf16.mxu0 %v15226_v40  ;;  %v15260_v38 = vld [vmem:[%s15978_s11 + $0xd28] sm:$0xff]  }
 0x19d   : > { %v16467_v53 = vadd.f32 %v13592_v48, %v9865_v47  ;;  %13885 = vmatpush3.bf16.msra.mxu1 %v15225_v37  ;;  %v15261_v41 = vld [vmem:[%s15978_s11 + $0xda8] sm:$0xff]   ;;  %v15263_v47 = vld [vmem:[%s15978_s11 + $0xde0] sm:$0xff]   ;;  %v15266_v51 = vld [vmem:[%s15978_s11 + $0xd58] sm:$0xff]  }
 0x19e   : > { %v13594_v55 = vpop.f32.mrf.mxu1  ;;  %13886 = vmatprep.subr.bf16.mxu1 %v15227_v43  ;;  %v15265_v50 = vld [vmem:[%s15978_s11 + $0xda0] sm:$0xff]  }
 0x19f   : > { %13865 = vmatpush3.bf16.msra.mxu0 %v15228_v46  ;;  %v15270_v55 = vld [vmem:[%s15978_s11 + $0xd50] sm:$0xff]  }
 0x1a0   : > { %13866 = vmatprep.subr.bf16.mxu0 %v15230_v52  ;;  %v15267_v52 = vld [vmem:[%s15978_s11 + $0xdd8] sm:$0xff]  }
 0x1a1   : > { %13887 = vmatpush3.bf16.msra.mxu1 %v15229_v49  ;;  %v15264_v49 = vld [vmem:[%s15978_s11 + $0xd20] sm:$0xff]  }
 0x1a2   : > { %13888 = vmatprep.subr.bf16.mxu1 %v15231_v54  ;;  %v15269_v54 = vld [vmem:[%s15978_s11 + $0xd98] sm:$0xff]  }
 0x1a3   : > { %13867 = vmatpush3.bf16.msra.mxu0 %v15232_v56  ;;  %v15271_v56 = vld [vmem:[%s15978_s11 + $0xdd0] sm:$0xff]  }
 0x1a4   : > { %13868 = vmatprep.subr.bf16.mxu0 %v15234_v58  ;;  %v15273_v58 = vld [vmem:[%s15978_s11 + $0xd90] sm:$0xff]  }
 0x1a5   : > { %13889 = vmatpush3.bf16.msra.mxu1 %v15233_v57  ;;  %v15272_v57 = vld [vmem:[%s15978_s11 + $0xd10] sm:$0xff]  }
 0x1a6   : > { %13890 = vmatprep.subr.bf16.mxu1 %v15235_v59  ;;  %v15274_v59 = vld [vmem:[%s15978_s11 + $0xd48] sm:$0xff]  }
 0x1a7   : > { %13869 = vmatpush3.bf16.msra.mxu0 %v15236_v61  ;;  %v15275_v61 = vld [vmem:[%s15978_s11 + $0xdc8] sm:$0xff]  }
 0x1a8   : > { %13870 = vmatprep.subr.bf16.mxu0 %v15238_v62  ;;  %v15277_v62 = vld [vmem:[%s15978_s11 + $0xd88] sm:$0xff]  }
 0x1a9   : > { %13891 = vmatpush3.bf16.msra.mxu1 %v15237_v60  ;;  %v15276_v60 = vld [vmem:[%s15978_s11 + $0xd08] sm:$0xff]  }
 0x1aa   : > { %13892 = vmatprep.subr.bf16.mxu1 %v15239_v63  ;;  %v15278_v63 = vld [vmem:[%s15978_s11 + $0xd40] sm:$0xff]  }
 0x1ab   : > { %13871 = vmatpush3.bf16.msra.mxu0 %v15240_v0  ;;  %v15279_v0 = vld [vmem:[%s15978_s11 + $0xdc0] sm:$0xff]  }
 0x1ac   : > { %13872 = vmatprep.subr.bf16.mxu0 %v15242_v2  ;;  %v15281_v2 = vld [vmem:[%s15978_s11 + $0xd80] sm:$0xff]  }
 0x1ad   : > { %13893 = vmatpush3.bf16.msra.mxu1 %v15241_v1  ;;  %v15280_v1 = vld [vmem:[%s15978_s11 + $0xd00] sm:$0xff]  }
 0x1ae   : > { %13894 = vmatprep.subr.bf16.mxu1 %v15243_v3  ;;  %v2698_v3 = vrot.slane %v16489_v12, %v16016_v42  ;;  %v15289_v12 = vld [vmem:[%s15978_s11 + $0xe30] sm:$0xff]  }
 0x1af   : > { %13873 = vmatpush3.bf16.msra.mxu0 %v15244_v4  ;;  %v15283_v4 = vld [vmem:[%s15978_s11 + $0xe78] sm:$0xff]  }
 0x1b0   : > { %13874 = vmatprep.subr.bf16.mxu0 %v15246_v9  ;;  %v2714_v8 = vcombine.high %v2698_v3, %v2698_v3  ;;  %v15287_v9 = vld [vmem:[%s15978_s11 + $0xe70] sm:$0xff]  }
 0x1b1   : > { %13895 = vmatpush3.bf16.msra.mxu1 %v15245_v6  ;;  %v15285_v6 = vld [vmem:[%s15978_s11 + $0xe38] sm:$0xff]  }
 0x1b2   : > { %13896 = vmatprep.subr.bf16.mxu1 %v15247_v10  ;;  %v15288_v10 = vld [vmem:[%s15978_s11 + $0xef0] sm:$0xff]  }
 0x1b3   : > { %13875 = vmatpush3.bf16.msra.mxu0 %v15248_v13  ;;  %v15290_v13 = vld [vmem:[%s15978_s11 + $0xeb0] sm:$0xff]  }
 0x1b4   : > { %13904 = vmatprep.subr.bf16.mxu0 %v15250_v18  ;;  %v15292_v18 = vld [vmem:[%s15978_s11 + $0xee8] sm:$0xff]  }
 0x1b5   : > { %13897 = vmatpush3.bf16.msra.mxu1 %v15249_v14 }
 0x1b6   : > { %v13612_v28 = vpop.f32.mrf.mxu0  ;;  %10423 = vmatmul.mubr.bf16.vlgmr.msra.gmra.mxu0 %v2691_v17  ;;  %13926 = vmatprep.subr.bf16.mxu1 %v15251_v20 }
 0x1b7   : > { %13905 = vmatpush3.bf16.msra.mxu0 %v15252_v22  ;;  %10502 = vmatprep.mubr.bf16.mxu0 %v2712_v21  ;;  %v15293_v21 = vld [vmem:[%s15978_s11 + $0xe28] sm:$0xff]  }
 0x1b8   : > { %v13634_v31 = vpop.f32.mrf.mxu1  ;;  %10463 = vmatmul.mubr.bf16.vlgmr.msra.gmra.mxu1 %v2713_v24  ;;  %v13613_v32 = vpop.f32.mrf.mxu0  ;;  %13906 = vmatprep.subr.bf16.mxu0 %v15254_v25  ;;  %v15294_v24 = vld [vmem:[%s15978_s11 + $0xea8] sm:$0xff]  }
 0x1b9   : > { %13927 = vmatpush3.bf16.msra.mxu1 %v15253_v23  ;;  %v13614_v34 = vadd.f32 %v13613_v32, %v13612_v28  ;;  %10542 = vmatprep.mubr.bf16.mxu1 %v2716_v27  ;;  %v15295_v27 = vld [vmem:[%s15978_s11 + $0xe60] sm:$0xff]  }
 0x1ba   : > { %v13635_v35 = vpop.f32.mrf.mxu1  ;;  %v13615_v37 = vpop.f32.mrf.mxu0  ;;  %13928 = vmatprep.subr.bf16.mxu1 %v15255_v26  ;;  %v15298_v32 = vld [vmem:[%s15978_s11 + $0xea0] sm:$0xff]  }
 0x1bb   : > { %v9945_v39 = vadd.f32 %v13614_v34, %v16467_v53  ;;  %v13636_v40 = vadd.f32 %v13635_v35, %v13634_v31  ;;  %13907 = vmatpush3.bf16.msra.mxu0 %v15256_v29  ;;  %v15268_v53 = vld [vmem:[%s15978_s11 + $0xd18] sm:$0xff]   ;;  %v15296_v29 = vld [vmem:[%s15978_s11 + $0xee0] sm:$0xff]   ;;  %v15303_v37 = vld [vmem:[%s15978_s11 + $0xe50] sm:$0xff]  }
 0x1bc   : > { %v13637_v43 = vpop.f32.mrf.mxu1  ;;  %v13616_v44 = vpop.f32.mrf.mxu0  ;;  %13908 = vmatprep.subr.bf16.mxu0 %v15258_v33  ;;  %v15297_v31 = vld [vmem:[%s15978_s11 + $0xe20] sm:$0xff]   ;;  %v15299_v33 = vld [vmem:[%s15978_s11 + $0xe58] sm:$0xff]  }
 0x1bd   : > { %v16512_v46 = vadd.f32 %v13636_v40, %v9945_v39  ;;  %13929 = vmatpush3.bf16.msra.mxu1 %v15257_v30  ;;  %v15300_v34 = vld [vmem:[%s15978_s11 + $0xed8] sm:$0xff]   ;;  %v15305_v39 = vld [vmem:[%s15978_s11 + $0xe10] sm:$0xff]   ;;  %v15308_v43 = vld [vmem:[%s15978_s11 + $0xec8] sm:$0xff]  }
 0x1be   : > { %v13638_v48 = vpop.f32.mrf.mxu1  ;;  %13930 = vmatprep.subr.bf16.mxu1 %v15259_v36  ;;  %v15301_v36 = vld [vmem:[%s15978_s11 + $0xe18] sm:$0xff]   ;;  %v15306_v40 = vld [vmem:[%s15978_s11 + $0xe90] sm:$0xff]   ;;  %v15309_v44 = vld [vmem:[%s15978_s11 + $0xe08] sm:$0xff]  }
 0x1bf   : > { %13909 = vmatpush3.bf16.msra.mxu0 %v15260_v38  ;;  %v15302_v35 = vld [vmem:[%s15978_s11 + $0xe98] sm:$0xff]   ;;  %v15304_v38 = vld [vmem:[%s15978_s11 + $0xed0] sm:$0xff]  }
 0x1c0   : > { %13910 = vmatprep.subr.bf16.mxu0 %v15262_v45  ;;  %v301_v45 = vld [vmem:[%s15973_s30 + $0x38] sm:$0xff] }
 0x1c1   : > { %13931 = vmatpush3.bf16.msra.mxu1 %v15261_v41  ;;  %v15307_v41 = vld [vmem:[%s15978_s11 + $0xe48] sm:$0xff]   ;;  %v2717_v48 = vcombine.high %v301_v45, %v301_v45 }
 0x1c2   : > { %13932 = vmatprep.subr.bf16.mxu1 %v15263_v47  ;;  %v2724_v47 = vrot.slane %v301_v45, %v16016_v42  ;;  %v15349_v45 = vld [vmem:[%s15978_s11 + $0x10f8] sm:$0xff]  }
 0x1c3   : > { %13911 = vmatpush3.bf16.msra.mxu0 %v15264_v49  ;;  %v15311_v49 = vld [vmem:[%s15978_s11 + $0xe40] sm:$0xff]  }
 0x1c4   : > { %13912 = vmatprep.subr.bf16.mxu0 %v15266_v51  ;;  %v2732_v51 = vcombine.high %v2724_v47, %v2724_v47 }
 0x1c5   : > { %13933 = vmatpush3.bf16.msra.mxu1 %v15265_v50  ;;  %v15312_v50 = vld [vmem:[%s15978_s11 + $0xec0] sm:$0xff]  }
 0x1c6   : > { %13934 = vmatprep.subr.bf16.mxu1 %v15267_v52  ;;  %v16571_v52 = vrot.slane %v2717_v48, %v16016_v42 }
 0x1c7   : > { %13913 = vmatpush3.bf16.msra.mxu0 %v15268_v53  ;;  %v15313_v53 = vld [vmem:[%s15978_s11 + $0xe00] sm:$0xff]  }
 0x1c8   : > { %13914 = vmatprep.subr.bf16.mxu0 %v15270_v55  ;;  %v2754_v55 = vrot.slane %v2732_v51, %v16016_v42 }
 0x1c9   : > { %13935 = vmatpush3.bf16.msra.mxu1 %v15269_v54  ;;  %v15314_v54 = vld [vmem:[%s15978_s11 + $0xe80] sm:$0xff]  }
 0x1ca   : > { %13936 = vmatprep.subr.bf16.mxu1 %v15271_v56  ;;  %v2733_v56 = vcombine.high %v16571_v52, %v16571_v52 }
 0x1cb   : > { %13915 = vmatpush3.bf16.msra.mxu0 %v15272_v57  ;;  %v2740_v57 = vrot.slane %v2724_v47, %v16016_v42  ;;  %v15351_v47 = vld [vmem:[%s15978_s11 + $0x10b8] sm:$0xff]  }
 0x1cc   : > { %13916 = vmatprep.subr.bf16.mxu0 %v15274_v59  ;;  %v2764_v59 = vcombine.high %v2754_v55, %v2754_v55 }
 0x1cd   : > { %13937 = vmatpush3.bf16.msra.mxu1 %v15273_v58  ;;  %v15315_v58 = vld [vmem:[%s15978_s11 + $0xf78] sm:$0xff]  }
 0x1ce   : > { %13938 = vmatprep.subr.bf16.mxu1 %v15275_v61  ;;  %v15316_v61 = vld [vmem:[%s15978_s11 + $0xff8] sm:$0xff]  }
 0x1cf   : > { %13917 = vmatpush3.bf16.msra.mxu0 %v15276_v60  ;;  %v2761_v60 = vrot.slane %v2733_v56, %v16016_v42  ;;  %v15356_v56 = vld [vmem:[%s15978_s11 + $0x1068] sm:$0xff]  }
 0x1d0   : > { %13918 = vmatprep.subr.bf16.mxu0 %v15278_v63  ;;  %v15318_v63 = vld [vmem:[%s15978_s11 + $0xfb8] sm:$0xff]  }
 0x1d1   : > { %13939 = vmatpush3.bf16.msra.mxu1 %v15277_v62  ;;  %v15317_v62 = vld [vmem:[%s15978_s11 + $0xf38] sm:$0xff]  }
 0x1d2   : > { %13940 = vmatprep.subr.bf16.mxu1 %v15279_v0  ;;  %v2762_v0 = vcombine.high %v2740_v57, %v2740_v57 }
 0x1d3   : > { %13919 = vmatpush3.bf16.msra.mxu0 %v15280_v1  ;;  %v15319_v1 = vld [vmem:[%s15978_s11 + $0xf70] sm:$0xff]  }
 0x1d4   : > { %13948 = vmatprep.subr.bf16.mxu0 %v15283_v4 }
 0x1d5   : > { %13941 = vmatpush3.bf16.msra.mxu1 %v15281_v2  ;;  %v15320_v2 = vld [vmem:[%s15978_s11 + $0xff0] sm:$0xff]  }
 0x1d6   : > { %v13656_v11 = vpop.f32.mrf.mxu0  ;;  %10503 = vmatmul.mubr.bf16.vlgmr.msra.gmra.mxu0 %v2698_v3  ;;  %13970 = vmatprep.subr.bf16.mxu1 %v15284_v5  ;;  %v2765_v3 = vcombine.high %v2761_v60, %v2761_v60  ;;  %v15321_v5 = vld [vmem:[%s15978_s11 + $0xf30] sm:$0xff]  }
 0x1d7   : > { %13949 = vmatpush3.bf16.msra.mxu0 %v15285_v6  ;;  %10582 = vmatprep.mubr.bf16.mxu0 %v2754_v55  ;;  %v15322_v6 = vld [vmem:[%s15978_s11 + $0xfb0] sm:$0xff]  }
 0x1d8   : > { %v13678_v14 = vpop.f32.mrf.mxu1  ;;  %10543 = vmatmul.mubr.bf16.vlgmr.msra.gmra.mxu1 %v2714_v8  ;;  %v13657_v15 = vpop.f32.mrf.mxu0  ;;  %13950 = vmatprep.subr.bf16.mxu0 %v15287_v9  ;;  %v15323_v9 = vld [vmem:[%s15978_s11 + $0xf68] sm:$0xff]  }
 0x1d9   : > { %13971 = vmatpush3.bf16.msra.mxu1 %v15286_v7  ;;  %v13658_v17 = vadd.f32 %v13657_v15, %v13656_v11  ;;  %10622 = vmatprep.mubr.bf16.mxu1 %v2764_v59  ;;  %v15324_v11 = vld [vmem:[%s15978_s11 + $0xfe8] sm:$0xff]  }
 0x1da   : > { %v13679_v19 = vpop.f32.mrf.mxu1  ;;  %v13659_v20 = vpop.f32.mrf.mxu0  ;;  %13972 = vmatprep.subr.bf16.mxu1 %v15288_v10 }
 0x1db   : > { %v10025_v22 = vadd.f32 %v13658_v17, %v16512_v46  ;;  %v13680_v23 = vadd.f32 %v13679_v19, %v13678_v14  ;;  %13951 = vmatpush3.bf16.msra.mxu0 %v15289_v12  ;;  %v15310_v46 = vld [vmem:[%s15978_s11 + $0xe88] sm:$0xff]   ;;  %v15327_v20 = vld [vmem:[%s15978_s11 + $0xf60] sm:$0xff]  }
 0x1dc   : > { %v13681_v25 = vpop.f32.mrf.mxu1  ;;  %v13660_v26 = vpop.f32.mrf.mxu0  ;;  %13952 = vmatprep.subr.bf16.mxu0 %v15291_v16  ;;  %v15325_v14 = vld [vmem:[%s15978_s11 + $0xf28] sm:$0xff]  }
 0x1dd   : > { %v16549_v28 = vadd.f32 %v13680_v23, %v10025_v22  ;;  %13973 = vmatpush3.bf16.msra.mxu1 %v15290_v13  ;;  %v15326_v17 = vld [vmem:[%s15978_s11 + $0xfa8] sm:$0xff]   ;;  %v15328_v22 = vld [vmem:[%s15978_s11 + $0xfe0] sm:$0xff]   ;;  %v15331_v26 = vld [vmem:[%s15978_s11 + $0xf58] sm:$0xff]  }
 0x1de   : > { %v13682_v30 = vpop.f32.mrf.mxu1  ;;  %13974 = vmatprep.subr.bf16.mxu1 %v15292_v18  ;;  %v15330_v25 = vld [vmem:[%s15978_s11 + $0xfa0] sm:$0xff]  }
 0x1df   : > { %13953 = vmatpush3.bf16.msra.mxu0 %v15293_v21  ;;  %v15335_v30 = vld [vmem:[%s15978_s11 + $0xf50] sm:$0xff]  }
 0x1e0   : > { %13954 = vmatprep.subr.bf16.mxu0 %v15295_v27  ;;  %v15332_v27 = vld [vmem:[%s15978_s11 + $0xfd8] sm:$0xff]  }
 0x1e1   : > { %13975 = vmatpush3.bf16.msra.mxu1 %v15294_v24  ;;  %v15329_v24 = vld [vmem:[%s15978_s11 + $0xf20] sm:$0xff]  }
 0x1e2   : > { %13976 = vmatprep.subr.bf16.mxu1 %v15296_v29  ;;  %v15334_v29 = vld [vmem:[%s15978_s11 + $0xf98] sm:$0xff]  }
 0x1e3   : > { %13955 = vmatpush3.bf16.msra.mxu0 %v15297_v31  ;;  %v15336_v31 = vld [vmem:[%s15978_s11 + $0xfd0] sm:$0xff]  }
 0x1e4   : > { %13956 = vmatprep.subr.bf16.mxu0 %v15299_v33  ;;  %v15338_v33 = vld [vmem:[%s15978_s11 + $0xf90] sm:$0xff]  }
 0x1e5   : > { %13977 = vmatpush3.bf16.msra.mxu1 %v15298_v32  ;;  %v15337_v32 = vld [vmem:[%s15978_s11 + $0xf10] sm:$0xff]  }
 0x1e6   : > { %13978 = vmatprep.subr.bf16.mxu1 %v15300_v34  ;;  %v15339_v34 = vld [vmem:[%s15978_s11 + $0xf48] sm:$0xff]  }
 0x1e7   : > { %13957 = vmatpush3.bf16.msra.mxu0 %v15301_v36  ;;  %v15340_v36 = vld [vmem:[%s15978_s11 + $0xfc8] sm:$0xff]  }
 0x1e8   : > { %13958 = vmatprep.subr.bf16.mxu0 %v15303_v37  ;;  %v15342_v37 = vld [vmem:[%s15978_s11 + $0xf88] sm:$0xff]  }
 0x1e9   : > { %13979 = vmatpush3.bf16.msra.mxu1 %v15302_v35  ;;  %v15341_v35 = vld [vmem:[%s15978_s11 + $0xf08] sm:$0xff]  }
 0x1ea   : > { %13980 = vmatprep.subr.bf16.mxu1 %v15304_v38  ;;  %v15343_v38 = vld [vmem:[%s15978_s11 + $0xf40] sm:$0xff]  }
 0x1eb   : > { %13959 = vmatpush3.bf16.msra.mxu0 %v15305_v39  ;;  %v15344_v39 = vld [vmem:[%s15978_s11 + $0xfc0] sm:$0xff]  }
 0x1ec   : > { %13960 = vmatprep.subr.bf16.mxu0 %v15307_v41  ;;  %v15346_v41 = vld [vmem:[%s15978_s11 + $0xf80] sm:$0xff]  }
 0x1ed   : > { %13981 = vmatpush3.bf16.msra.mxu1 %v15306_v40  ;;  %v15345_v40 = vld [vmem:[%s15978_s11 + $0xf00] sm:$0xff]  }
 0x1ee   : > { %13982 = vmatprep.subr.bf16.mxu1 %v15308_v43  ;;  %v2747_v43 = vrot.slane %v16571_v52, %v16016_v42  ;;  %v15354_v52 = vld [vmem:[%s15978_s11 + $0x1030] sm:$0xff]  }
 0x1ef   : > { %13961 = vmatpush3.bf16.msra.mxu0 %v15309_v44  ;;  %v15348_v44 = vld [vmem:[%s15978_s11 + $0x1078] sm:$0xff]  }
 0x1f0   : > { %13962 = vmatprep.subr.bf16.mxu0 %v15311_v49  ;;  %v2763_v48 = vcombine.high %v2747_v43, %v2747_v43  ;;  %v15352_v49 = vld [vmem:[%s15978_s11 + $0x1070] sm:$0xff]  }
 0x1f1   : > { %13983 = vmatpush3.bf16.msra.mxu1 %v15310_v46  ;;  %v15350_v46 = vld [vmem:[%s15978_s11 + $0x1038] sm:$0xff]  }
 0x1f2   : > { %13984 = vmatprep.subr.bf16.mxu1 %v15312_v50  ;;  %v15353_v50 = vld [vmem:[%s15978_s11 + $0x10f0] sm:$0xff]  }
 0x1f3   : > { %13963 = vmatpush3.bf16.msra.mxu0 %v15313_v53  ;;  %v15355_v53 = vld [vmem:[%s15978_s11 + $0x10b0] sm:$0xff]  }
 0x1f4   : > { %13992 = vmatprep.subr.bf16.mxu0 %v15315_v58  ;;  %v15357_v58 = vld [vmem:[%s15978_s11 + $0x10e8] sm:$0xff]  }
 0x1f5   : > { %13985 = vmatpush3.bf16.msra.mxu1 %v15314_v54 }
 0x1f6   : > { %v13700_v4 = vpop.f32.mrf.mxu0  ;;  %10583 = vmatmul.mubr.bf16.vlgmr.msra.gmra.mxu0 %v2740_v57  ;;  %14014 = vmatprep.subr.bf16.mxu1 %v15316_v61 }
 0x1f7   : > { %13993 = vmatpush3.bf16.msra.mxu0 %v15317_v62  ;;  %10662 = vmatprep.mubr.bf16.mxu0 %v2761_v60  ;;  %v15358_v60 = vld [vmem:[%s15978_s11 + $0x1028] sm:$0xff]  }
 0x1f8   : > { %v13722_v7 = vpop.f32.mrf.mxu1  ;;  %10623 = vmatmul.mubr.bf16.vlgmr.msra.gmra.mxu1 %v2762_v0  ;;  %v13701_v8 = vpop.f32.mrf.mxu0  ;;  %13994 = vmatprep.subr.bf16.mxu0 %v15319_v1  ;;  %v15359_v0 = vld [vmem:[%s15978_s11 + $0x10a8] sm:$0xff]  }
 0x1f9   : > { %14015 = vmatpush3.bf16.msra.mxu1 %v15318_v63  ;;  %v13702_v10 = vadd.f32 %v13701_v8, %v13700_v4  ;;  %10702 = vmatprep.mubr.bf16.mxu1 %v2765_v3  ;;  %v15360_v3 = vld [vmem:[%s15978_s11 + $0x1060] sm:$0xff]  }
 0x1fa   : > { %v13723_v12 = vpop.f32.mrf.mxu1  ;;  %v13703_v13 = vpop.f32.mrf.mxu0  ;;  %14016 = vmatprep.subr.bf16.mxu1 %v15320_v2  ;;  %v15363_v8 = vld [vmem:[%s15978_s11 + $0x10a0] sm:$0xff]  }
 0x1fb   : > { %v10105_v15 = vadd.f32 %v13702_v10, %v16549_v28  ;;  %v13724_v16 = vadd.f32 %v13723_v12, %v13722_v7  ;;  %13995 = vmatpush3.bf16.msra.mxu0 %v15321_v5  ;;  %v15333_v28 = vld [vmem:[%s15978_s11 + $0xf18] sm:$0xff]   ;;  %v15361_v5 = vld [vmem:[%s15978_s11 + $0x10e0] sm:$0xff]   ;;  %v15368_v13 = vld [vmem:[%s15978_s11 + $0x1050] sm:$0xff]  }
 0x1fc   : > { %v13725_v18 = vpop.f32.mrf.mxu1  ;;  %v13704_v19 = vpop.f32.mrf.mxu0  ;;  %13996 = vmatprep.subr.bf16.mxu0 %v15323_v9  ;;  %v15362_v7 = vld [vmem:[%s15978_s11 + $0x1020] sm:$0xff]   ;;  %v15364_v9 = vld [vmem:[%s15978_s11 + $0x1058] sm:$0xff]  }
 0x1fd   : > { %v16594_v21 = vadd.f32 %v13724_v16, %v10105_v15  ;;  %14017 = vmatpush3.bf16.msra.mxu1 %v15322_v6  ;;  %v15365_v10 = vld [vmem:[%s15978_s11 + $0x10d8] sm:$0xff]   ;;  %v15370_v15 = vld [vmem:[%s15978_s11 + $0x1010] sm:$0xff]   ;;  %v15373_v18 = vld [vmem:[%s15978_s11 + $0x10c8] sm:$0xff]  }
 0x1fe   : > { %v13726_v23 = vpop.f32.mrf.mxu1  ;;  %14018 = vmatprep.subr.bf16.mxu1 %v15324_v11  ;;  %v15366_v11 = vld [vmem:[%s15978_s11 + $0x1018] sm:$0xff]   ;;  %v15371_v16 = vld [vmem:[%s15978_s11 + $0x1090] sm:$0xff]   ;;  %v15374_v19 = vld [vmem:[%s15978_s11 + $0x1008] sm:$0xff]  }
 0x1ff   : > { %13997 = vmatpush3.bf16.msra.mxu0 %v15325_v14  ;;  %v15367_v12 = vld [vmem:[%s15978_s11 + $0x1098] sm:$0xff]   ;;  %v15369_v14 = vld [vmem:[%s15978_s11 + $0x10d0] sm:$0xff]  }
 0x200   : > { %13998 = vmatprep.subr.bf16.mxu0 %v15327_v20  ;;  %v302_v20 = vld [vmem:[%s15973_s30 + $0x40] sm:$0xff] }
 0x201   : > { %14019 = vmatpush3.bf16.msra.mxu1 %v15326_v17  ;;  %v15372_v17 = vld [vmem:[%s15978_s11 + $0x1048] sm:$0xff]   ;;  %v2766_v23 = vcombine.high %v302_v20, %v302_v20 }
 0x202   : > { %14020 = vmatprep.subr.bf16.mxu1 %v15328_v22  ;;  %v2773_v22 = vrot.slane %v302_v20, %v16016_v42  ;;  %v15414_v20 = vld [vmem:[%s15978_s11 + $0x12f8] sm:$0xff]  }
 0x203   : > { %13999 = vmatpush3.bf16.msra.mxu0 %v15329_v24  ;;  %v15376_v24 = vld [vmem:[%s15978_s11 + $0x1040] sm:$0xff]  }
 0x204   : > { %14000 = vmatprep.subr.bf16.mxu0 %v15331_v26  ;;  %v2781_v26 = vcombine.high %v2773_v22, %v2773_v22 }
 0x205   : > { %14021 = vmatpush3.bf16.msra.mxu1 %v15330_v25  ;;  %v15377_v25 = vld [vmem:[%s15978_s11 + $0x10c0] sm:$0xff]  }
 0x206   : > { %14022 = vmatprep.subr.bf16.mxu1 %v15332_v27  ;;  %v16653_v27 = vrot.slane %v2766_v23, %v16016_v42 }
 0x207   : > { %14001 = vmatpush3.bf16.msra.mxu0 %v15333_v28  ;;  %v15378_v28 = vld [vmem:[%s15978_s11 + $0x1000] sm:$0xff]  }
 0x208   : > { %14002 = vmatprep.subr.bf16.mxu0 %v15335_v30  ;;  %v2803_v30 = vrot.slane %v2781_v26, %v16016_v42 }
 0x209   : > { %14023 = vmatpush3.bf16.msra.mxu1 %v15334_v29  ;;  %v15379_v29 = vld [vmem:[%s15978_s11 + $0x1080] sm:$0xff]  }
 0x20a   : > { %14024 = vmatprep.subr.bf16.mxu1 %v15336_v31  ;;  %v2782_v31 = vcombine.high %v16653_v27, %v16653_v27 }
 0x20b   : > { %14003 = vmatpush3.bf16.msra.mxu0 %v15337_v32  ;;  %v2789_v32 = vrot.slane %v2773_v22, %v16016_v42  ;;  %v15416_v22 = vld [vmem:[%s15978_s11 + $0x12b8] sm:$0xff]  }
 0x20c   : > { %14004 = vmatprep.subr.bf16.mxu0 %v15339_v34  ;;  %v2813_v34 = vcombine.high %v2803_v30, %v2803_v30 }
 0x20d   : > { %14025 = vmatpush3.bf16.msra.mxu1 %v15338_v33  ;;  %v15380_v33 = vld [vmem:[%s15978_s11 + $0x1178] sm:$0xff]  }
 0x20e   : > { %14026 = vmatprep.subr.bf16.mxu1 %v15340_v36  ;;  %v15381_v36 = vld [vmem:[%s15978_s11 + $0x11f8] sm:$0xff]  }
 0x20f   : > { %14005 = vmatpush3.bf16.msra.mxu0 %v15341_v35  ;;  %v2810_v35 = vrot.slane %v2782_v31, %v16016_v42  ;;  %v15421_v31 = vld [vmem:[%s15978_s11 + $0x1268] sm:$0xff]  }
 0x210   : > { %14006 = vmatprep.subr.bf16.mxu0 %v15343_v38  ;;  %v15383_v38 = vld [vmem:[%s15978_s11 + $0x11b8] sm:$0xff]  }
 0x211   : > { %14027 = vmatpush3.bf16.msra.mxu1 %v15342_v37  ;;  %v15382_v37 = vld [vmem:[%s15978_s11 + $0x1138] sm:$0xff]  }
 0x212   : > { %14028 = vmatprep.subr.bf16.mxu1 %v15344_v39  ;;  %v2811_v39 = vcombine.high %v2789_v32, %v2789_v32 }
 0x213   : > { %14007 = vmatpush3.bf16.msra.mxu0 %v15345_v40  ;;  %v15384_v40 = vld [vmem:[%s15978_s11 + $0x1170] sm:$0xff]  }
 0x214   : > { %14036 = vmatprep.subr.bf16.mxu0 %v15348_v44 }
 0x215   : > { %14029 = vmatpush3.bf16.msra.mxu1 %v15346_v41  ;;  %v15385_v41 = vld [vmem:[%s15978_s11 + $0x11f0] sm:$0xff]  }
 0x216   : > { %v13744_v51 = vpop.f32.mrf.mxu0  ;;  %10663 = vmatmul.mubr.bf16.vlgmr.msra.gmra.mxu0 %v2747_v43  ;;  %14058 = vmatprep.subr.bf16.mxu1 %v15349_v45  ;;  %v2814_v43 = vcombine.high %v2810_v35, %v2810_v35  ;;  %v15386_v45 = vld [vmem:[%s15978_s11 + $0x1130] sm:$0xff]  }
 0x217   : > { %14037 = vmatpush3.bf16.msra.mxu0 %v15350_v46  ;;  %10742 = vmatprep.mubr.bf16.mxu0 %v2803_v30  ;;  %v15387_v46 = vld [vmem:[%s15978_s11 + $0x11b0] sm:$0xff]  }
 0x218   : > { %v13766_v54 = vpop.f32.mrf.mxu1  ;;  %10703 = vmatmul.mubr.bf16.vlgmr.msra.gmra.mxu1 %v2763_v48  ;;  %v13745_v55 = vpop.f32.mrf.mxu0  ;;  %14038 = vmatprep.subr.bf16.mxu0 %v15352_v49  ;;  %v15388_v49 = vld [vmem:[%s15978_s11 + $0x1168] sm:$0xff]  }
 0x219   : > { %14059 = vmatpush3.bf16.msra.mxu1 %v15351_v47  ;;  %v13746_v57 = vadd.f32 %v13745_v55, %v13744_v51  ;;  %10782 = vmatprep.mubr.bf16.mxu1 %v2813_v34  ;;  %v15389_v51 = vld [vmem:[%s15978_s11 + $0x11e8] sm:$0xff]  }
 0x21a   : > { %v13767_v59 = vpop.f32.mrf.mxu1  ;;  %v13747_v61 = vpop.f32.mrf.mxu0  ;;  %14060 = vmatprep.subr.bf16.mxu1 %v15353_v50 }
 0x21b   : > { %v10185_v62 = vadd.f32 %v13746_v57, %v16594_v21  ;;  %v13768_v63 = vadd.f32 %v13767_v59, %v13766_v54  ;;  %14039 = vmatpush3.bf16.msra.mxu0 %v15354_v52  ;;  %v15375_v21 = vld [vmem:[%s15978_s11 + $0x1088] sm:$0xff]   ;;  %v15392_v61 = vld [vmem:[%s15978_s11 + $0x1160] sm:$0xff]  }
 0x21c   : > { %v13769_v1 = vpop.f32.mrf.mxu1  ;;  %v13748_v2 = vpop.f32.mrf.mxu0  ;;  %14040 = vmatprep.subr.bf16.mxu0 %v15356_v56  ;;  %v15390_v54 = vld [vmem:[%s15978_s11 + $0x1128] sm:$0xff]  }
 0x21d   : > { %v16631_v4 = vadd.f32 %v13768_v63, %v10185_v62  ;;  %14061 = vmatpush3.bf16.msra.mxu1 %v15355_v53  ;;  %v15391_v57 = vld [vmem:[%s15978_s11 + $0x11a8] sm:$0xff]   ;;  %v15393_v62 = vld [vmem:[%s15978_s11 + $0x11e0] sm:$0xff]   ;;  %v15396_v2 = vld [vmem:[%s15978_s11 + $0x1158] sm:$0xff]  }
 0x21e   : > { %v13770_v6 = vpop.f32.mrf.mxu1  ;;  %14062 = vmatprep.subr.bf16.mxu1 %v15357_v58  ;;  %v15395_v1 = vld [vmem:[%s15978_s11 + $0x11a0] sm:$0xff]  }
 0x21f   : > { %14041 = vmatpush3.bf16.msra.mxu0 %v15358_v60  ;;  %v15400_v6 = vld [vmem:[%s15978_s11 + $0x1150] sm:$0xff]  }
 0x220   : > { %14042 = vmatprep.subr.bf16.mxu0 %v15360_v3  ;;  %v15397_v3 = vld [vmem:[%s15978_s11 + $0x11d8] sm:$0xff]  }
 0x221   : > { %14063 = vmatpush3.bf16.msra.mxu1 %v15359_v0  ;;  %v15394_v0 = vld [vmem:[%s15978_s11 + $0x1120] sm:$0xff]  }
 0x222   : > { %14064 = vmatprep.subr.bf16.mxu1 %v15361_v5  ;;  %v15399_v5 = vld [vmem:[%s15978_s11 + $0x1198] sm:$0xff]  }
 0x223   : > { %14043 = vmatpush3.bf16.msra.mxu0 %v15362_v7  ;;  %v15401_v7 = vld [vmem:[%s15978_s11 + $0x11d0] sm:$0xff]  }
 0x224   : > { %14044 = vmatprep.subr.bf16.mxu0 %v15364_v9  ;;  %v15403_v9 = vld [vmem:[%s15978_s11 + $0x1190] sm:$0xff]  }
 0x225   : > { %14065 = vmatpush3.bf16.msra.mxu1 %v15363_v8  ;;  %v15402_v8 = vld [vmem:[%s15978_s11 + $0x1110] sm:$0xff]  }
 0x226   : > { %14066 = vmatprep.subr.bf16.mxu1 %v15365_v10  ;;  %v15404_v10 = vld [vmem:[%s15978_s11 + $0x1148] sm:$0xff]  }
 0x227   : > { %14045 = vmatpush3.bf16.msra.mxu0 %v15366_v11  ;;  %v15405_v11 = vld [vmem:[%s15978_s11 + $0x11c8] sm:$0xff]  }
 0x228   : > { %14046 = vmatprep.subr.bf16.mxu0 %v15368_v13  ;;  %v15407_v13 = vld [vmem:[%s15978_s11 + $0x1188] sm:$0xff]  }
 0x229   : > { %14067 = vmatpush3.bf16.msra.mxu1 %v15367_v12  ;;  %v15406_v12 = vld [vmem:[%s15978_s11 + $0x1108] sm:$0xff]  }
 0x22a   : > { %14068 = vmatprep.subr.bf16.mxu1 %v15369_v14  ;;  %v15408_v14 = vld [vmem:[%s15978_s11 + $0x1140] sm:$0xff]  }
 0x22b   : > { %14047 = vmatpush3.bf16.msra.mxu0 %v15370_v15  ;;  %v15409_v15 = vld [vmem:[%s15978_s11 + $0x11c0] sm:$0xff]  }
 0x22c   : > { %14048 = vmatprep.subr.bf16.mxu0 %v15372_v17  ;;  %v15411_v17 = vld [vmem:[%s15978_s11 + $0x1180] sm:$0xff]  }
 0x22d   : > { %14069 = vmatpush3.bf16.msra.mxu1 %v15371_v16  ;;  %v15410_v16 = vld [vmem:[%s15978_s11 + $0x1100] sm:$0xff]  }
 0x22e   : > { %14070 = vmatprep.subr.bf16.mxu1 %v15373_v18  ;;  %v2796_v18 = vrot.slane %v16653_v27, %v16016_v42  ;;  %v15419_v27 = vld [vmem:[%s15978_s11 + $0x1230] sm:$0xff]  }
 0x22f   : > { %14049 = vmatpush3.bf16.msra.mxu0 %v15374_v19  ;;  %v15413_v19 = vld [vmem:[%s15978_s11 + $0x1278] sm:$0xff]  }
 0x230   : > { %14050 = vmatprep.subr.bf16.mxu0 %v15376_v24  ;;  %v2812_v23 = vcombine.high %v2796_v18, %v2796_v18  ;;  %v15417_v24 = vld [vmem:[%s15978_s11 + $0x1270] sm:$0xff]  }
 0x231   : > { %14071 = vmatpush3.bf16.msra.mxu1 %v15375_v21  ;;  %v15415_v21 = vld [vmem:[%s15978_s11 + $0x1238] sm:$0xff]  }
 0x232   : > { %14072 = vmatprep.subr.bf16.mxu1 %v15377_v25  ;;  %v15418_v25 = vld [vmem:[%s15978_s11 + $0x12f0] sm:$0xff]  }
 0x233   : > { %14051 = vmatpush3.bf16.msra.mxu0 %v15378_v28  ;;  %v15420_v28 = vld [vmem:[%s15978_s11 + $0x12b0] sm:$0xff]  }
 0x234   : > { %14080 = vmatprep.subr.bf16.mxu0 %v15380_v33  ;;  %v15422_v33 = vld [vmem:[%s15978_s11 + $0x12e8] sm:$0xff]  }
 0x235   : > { %14073 = vmatpush3.bf16.msra.mxu1 %v15379_v29 }
 0x236   : > { %v13788_v44 = vpop.f32.mrf.mxu0  ;;  %10743 = vmatmul.mubr.bf16.vlgmr.msra.gmra.mxu0 %v2789_v32  ;;  %14102 = vmatprep.subr.bf16.mxu1 %v15381_v36 }
 0x237   : > { %14081 = vmatpush3.bf16.msra.mxu0 %v15382_v37  ;;  %10822 = vmatprep.mubr.bf16.mxu0 %v2810_v35  ;;  %v15423_v35 = vld [vmem:[%s15978_s11 + $0x1228] sm:$0xff]  }
 0x238   : > { %v13810_v47 = vpop.f32.mrf.mxu1  ;;  %10783 = vmatmul.mubr.bf16.vlgmr.msra.gmra.mxu1 %v2811_v39  ;;  %v13789_v48 = vpop.f32.mrf.mxu0  ;;  %14082 = vmatprep.subr.bf16.mxu0 %v15384_v40  ;;  %v15424_v39 = vld [vmem:[%s15978_s11 + $0x12a8] sm:$0xff]  }
 0x239   : > { %14103 = vmatpush3.bf16.msra.mxu1 %v15383_v38  ;;  %v13790_v50 = vadd.f32 %v13789_v48, %v13788_v44  ;;  %10862 = vmatprep.mubr.bf16.mxu1 %v2814_v43  ;;  %v15425_v43 = vld [vmem:[%s15978_s11 + $0x1260] sm:$0xff]  }
 0x23a   : > { %v13811_v52 = vpop.f32.mrf.mxu1  ;;  %v13791_v53 = vpop.f32.mrf.mxu0  ;;  %14104 = vmatprep.subr.bf16.mxu1 %v15385_v41  ;;  %v15428_v48 = vld [vmem:[%s15978_s11 + $0x12a0] sm:$0xff]  }
 0x23b   : > { %v10265_v55 = vadd.f32 %v13790_v50, %v16631_v4  ;;  %v13812_v56 = vadd.f32 %v13811_v52, %v13810_v47  ;;  %14083 = vmatpush3.bf16.msra.mxu0 %v15386_v45  ;;  %v15398_v4 = vld [vmem:[%s15978_s11 + $0x1118] sm:$0xff]   ;;  %v15426_v45 = vld [vmem:[%s15978_s11 + $0x12e0] sm:$0xff]   ;;  %v15433_v53 = vld [vmem:[%s15978_s11 + $0x1250] sm:$0xff]  }
 0x23c   : > { %v13813_v58 = vpop.f32.mrf.mxu1  ;;  %v13792_v59 = vpop.f32.mrf.mxu0  ;;  %14084 = vmatprep.subr.bf16.mxu0 %v15388_v49  ;;  %v15427_v47 = vld [vmem:[%s15978_s11 + $0x1220] sm:$0xff]   ;;  %v15429_v49 = vld [vmem:[%s15978_s11 + $0x1258] sm:$0xff]  }
 0x23d   : > { %v16676_v60 = vadd.f32 %v13812_v56, %v10265_v55  ;;  %14105 = vmatpush3.bf16.msra.mxu1 %v15387_v46  ;;  %v15430_v50 = vld [vmem:[%s15978_s11 + $0x12d8] sm:$0xff]   ;;  %v15435_v55 = vld [vmem:[%s15978_s11 + $0x1210] sm:$0xff]   ;;  %v15438_v58 = vld [vmem:[%s15978_s11 + $0x12c8] sm:$0xff]  }
 0x23e   : > { %v13814_v63 = vpop.f32.mrf.mxu1  ;;  %14106 = vmatprep.subr.bf16.mxu1 %v15389_v51  ;;  %v15431_v51 = vld [vmem:[%s15978_s11 + $0x1218] sm:$0xff]   ;;  %v15436_v56 = vld [vmem:[%s15978_s11 + $0x1290] sm:$0xff]   ;;  %v15439_v59 = vld [vmem:[%s15978_s11 + $0x1208] sm:$0xff]  }
 0x23f   : > { %14085 = vmatpush3.bf16.msra.mxu0 %v15390_v54  ;;  %v15432_v52 = vld [vmem:[%s15978_s11 + $0x1298] sm:$0xff]   ;;  %v15434_v54 = vld [vmem:[%s15978_s11 + $0x12d0] sm:$0xff]  }
 0x240   : > { %14086 = vmatprep.subr.bf16.mxu0 %v15392_v61  ;;  %v15440_v61 = vld [vmem:[%s15978_s11 + $0x1288] sm:$0xff]  }
 0x241   : > { %14107 = vmatpush3.bf16.msra.mxu1 %v15391_v57  ;;  %v15437_v57 = vld [vmem:[%s15978_s11 + $0x1248] sm:$0xff]  }
 0x242   : > { %14108 = vmatprep.subr.bf16.mxu1 %v15393_v62  ;;  %v15441_v62 = vld [vmem:[%s15978_s11 + $0x1240] sm:$0xff]  }
 0x243   : > { %14087 = vmatpush3.bf16.msra.mxu0 %v15394_v0 }
 0x244   : > { %14088 = vmatprep.subr.bf16.mxu0 %v15396_v2  ;;  %v15443_v2 = vld [vmem:[%s15978_s11 + $0x1200] sm:$0xff]  }
 0x245   : > { %14109 = vmatpush3.bf16.msra.mxu1 %v15395_v1  ;;  %v15442_v1 = vld [vmem:[%s15978_s11 + $0x12c0] sm:$0xff]  }
 0x246   : > { %14110 = vmatprep.subr.bf16.mxu1 %v15397_v3 }
 0x247   : > { %14089 = vmatpush3.bf16.msra.mxu0 %v15398_v4 }
 0x248   : > { %14090 = vmatprep.subr.bf16.mxu0 %v15400_v6 }
 0x249   : > { %14111 = vmatpush3.bf16.msra.mxu1 %v15399_v5  ;;  %v15444_v5 = vld [vmem:[%s15978_s11 + $0x1280] sm:$0xff]  }
 0x24a   : > { %14112 = vmatprep.subr.bf16.mxu1 %v15401_v7 }
 0x24b   : > { %14091 = vmatpush3.bf16.msra.mxu0 %v15402_v8  ;;  %v15445_v8 = vld [vmem:[%s15978_s11 + $0x1378] sm:$0xff]  }
 0x24c   : > { %14092 = vmatprep.subr.bf16.mxu0 %v15404_v10  ;;  %v15446_v10 = vld [vmem:[%s15978_s11 + $0x13f8] sm:$0xff]  }
 0x24d   : > { %14113 = vmatpush3.bf16.msra.mxu1 %v15403_v9 }
 0x24e   : > { %14114 = vmatprep.subr.bf16.mxu1 %v15405_v11 }
 0x24f   : > { %14093 = vmatpush3.bf16.msra.mxu0 %v15406_v12  ;;  %v15447_v12 = vld [vmem:[%s15978_s11 + $0x1338] sm:$0xff]  }
 0x250   : > { %14094 = vmatprep.subr.bf16.mxu0 %v15408_v14  ;;  %v15448_v14 = vld [vmem:[%s15978_s11 + $0x13b8] sm:$0xff]  }
 0x251   : > { %14115 = vmatpush3.bf16.msra.mxu1 %v15407_v13 }
 0x252   : > { %14116 = vmatprep.subr.bf16.mxu1 %v15409_v15 }
 0x253   : > { %14095 = vmatpush3.bf16.msra.mxu0 %v15410_v16  ;;  %v15449_v16 = vld [vmem:[%s15978_s11 + $0x1370] sm:$0xff]  }
 0x254   : > { %14124 = vmatprep.subr.bf16.mxu0 %v15413_v19 }
 0x255   : > { %14117 = vmatpush3.bf16.msra.mxu1 %v15411_v17  ;;  %v15450_v17 = vld [vmem:[%s15978_s11 + $0x13f0] sm:$0xff]  }
 0x256   : > { %v13832_v26 = vpop.f32.mrf.mxu0  ;;  %10823 = vmatmul.mubr.bf16.vlgmr.msra.gmra.mxu0 %v2796_v18  ;;  %14146 = vmatprep.subr.bf16.mxu1 %v15414_v20  ;;  %v15451_v20 = vld [vmem:[%s15978_s11 + $0x1330] sm:$0xff]  }
 0x257   : > { %14125 = vmatpush3.bf16.msra.mxu0 %v15415_v21  ;;  %v15452_v21 = vld [vmem:[%s15978_s11 + $0x13b0] sm:$0xff]  }
 0x258   : > { %v13854_v29 = vpop.f32.mrf.mxu1  ;;  %10863 = vmatmul.mubr.bf16.vlgmr.msra.gmra.mxu1 %v2812_v23  ;;  %v13833_v30 = vpop.f32.mrf.mxu0  ;;  %14126 = vmatprep.subr.bf16.mxu0 %v15417_v24  ;;  %v15453_v24 = vld [vmem:[%s15978_s11 + $0x1368] sm:$0xff]  }
 0x259   : > { %14147 = vmatpush3.bf16.msra.mxu1 %v15416_v22  ;;  %v13834_v32 = vadd.f32 %v13833_v30, %v13832_v26  ;;  %v15454_v26 = vld [vmem:[%s15978_s11 + $0x13e8] sm:$0xff]  }
 0x25a   : > { %v13855_v34 = vpop.f32.mrf.mxu1  ;;  %v13835_v36 = vpop.f32.mrf.mxu0  ;;  %14148 = vmatprep.subr.bf16.mxu1 %v15418_v25 }
 0x25b   : > { %v10345_v37 = vadd.f32 %v13834_v32, %v16676_v60  ;;  %v13856_v38 = vadd.f32 %v13855_v34, %v13854_v29  ;;  %14127 = vmatpush3.bf16.msra.mxu0 %v15419_v27  ;;  %v303_v60 = vld [vmem:[%s15973_s30 + $0x48] sm:$0xff]  ;;  %v15457_v36 = vld [vmem:[%s15978_s11 + $0x1360] sm:$0xff]  }
 0x25c   : > { %v13857_v40 = vpop.f32.mrf.mxu1  ;;  %v13836_v41 = vpop.f32.mrf.mxu0  ;;  %14128 = vmatprep.subr.bf16.mxu0 %v15421_v31  ;;  %v2822_v63 = vrot.slane %v303_v60, %v16016_v42  ;;  %v2815_v0 = vcombine.high %v303_v60, %v303_v60  ;;  %v15455_v29 = vld [vmem:[%s15978_s11 + $0x1328] sm:$0xff]   ;;  %v15480_v60 = vld [vmem:[%s15978_s11 + $0x1438] sm:$0xff]  }
 0x25d   : > { %v16713_v44 = vadd.f32 %v13856_v38, %v10345_v37  ;;  %14149 = vmatpush3.bf16.msra.mxu1 %v15420_v28  ;;  %v15456_v32 = vld [vmem:[%s15978_s11 + $0x13a8] sm:$0xff]   ;;  %v15458_v37 = vld [vmem:[%s15978_s11 + $0x13e0] sm:$0xff]   ;;  %v15461_v41 = vld [vmem:[%s15978_s11 + $0x1358] sm:$0xff]  }
 0x25e   : > { %v13858_v46 = vpop.f32.mrf.mxu1  ;;  %14150 = vmatprep.subr.bf16.mxu1 %v15422_v33  ;;  %v2830_v3 = vcombine.high %v2822_v63, %v2822_v63  ;;  %v16736_v4 = vrot.slane %v2815_v0, %v16016_v42  ;;  %v2838_v7 = vrot.slane %v2822_v63, %v16016_v42  ;;  %v15460_v40 = vld [vmem:[%s15978_s11 + $0x13a0] sm:$0xff]   ;;  %v15482_v0 = vld [vmem:[%s15978_s11 + $0x1470] sm:$0xff]  }
 0x25f   : > { %14129 = vmatpush3.bf16.msra.mxu0 %v15423_v35  ;;  %v15465_v46 = vld [vmem:[%s15978_s11 + $0x1350] sm:$0xff]  }
 0x260   : > { %14130 = vmatprep.subr.bf16.mxu0 %v15425_v43  ;;  %v2852_v6 = vrot.slane %v2830_v3, %v16016_v42  ;;  %v2831_v9 = vcombine.high %v16736_v4, %v16736_v4  ;;  %v2860_v15 = vcombine.high %v2838_v7, %v2838_v7  ;;  %v15462_v43 = vld [vmem:[%s15978_s11 + $0x13d8] sm:$0xff]   ;;  %v15484_v3 = vld [vmem:[%s15978_s11 + $0x1430] sm:$0xff]  }
 0x261   : > { %14151 = vmatpush3.bf16.msra.mxu1 %v15424_v39  ;;  %v15459_v39 = vld [vmem:[%s15978_s11 + $0x1320] sm:$0xff]  }
 0x262   : > { %14152 = vmatprep.subr.bf16.mxu1 %v15426_v45  ;;  %10902 = vmatprep.mubr.bf16.mxu0 %v2852_v6  ;;  %v2862_v11 = vcombine.high %v2852_v6, %v2852_v6  ;;  %v2859_v13 = vrot.slane %v2831_v9, %v16016_v42  ;;  %v15464_v45 = vld [vmem:[%s15978_s11 + $0x1398] sm:$0xff]   ;;  %v15487_v9 = vld [vmem:[%s15978_s11 + $0x14e8] sm:$0xff]  }
 0x263   : > { %14131 = vmatpush3.bf16.msra.mxu0 %v15427_v47  ;;  %v15466_v47 = vld [vmem:[%s15978_s11 + $0x13d0] sm:$0xff]  }
 0x264   : > { %14132 = vmatprep.subr.bf16.mxu0 %v15429_v49  ;;  %10942 = vmatprep.mubr.bf16.mxu1 %v2862_v11  ;;  %v2863_v18 = vcombine.high %v2859_v13, %v2859_v13  ;;  %v15468_v49 = vld [vmem:[%s15978_s11 + $0x1390] sm:$0xff]  }
 0x265   : > { %14153 = vmatpush3.bf16.msra.mxu1 %v15428_v48  ;;  %v15467_v48 = vld [vmem:[%s15978_s11 + $0x1310] sm:$0xff]  }
 0x266   : > { %14154 = vmatprep.subr.bf16.mxu1 %v15430_v50  ;;  %v15469_v50 = vld [vmem:[%s15978_s11 + $0x1348] sm:$0xff]  }
 0x267   : > { %14133 = vmatpush3.bf16.msra.mxu0 %v15431_v51  ;;  %v15470_v51 = vld [vmem:[%s15978_s11 + $0x13c8] sm:$0xff]  }
 0x268   : > { %14134 = vmatprep.subr.bf16.mxu0 %v15433_v53  ;;  %v15472_v53 = vld [vmem:[%s15978_s11 + $0x1388] sm:$0xff]  }
 0x269   : > { %14155 = vmatpush3.bf16.msra.mxu1 %v15432_v52  ;;  %v15471_v52 = vld [vmem:[%s15978_s11 + $0x1308] sm:$0xff]  }
 0x26a   : > { %14156 = vmatprep.subr.bf16.mxu1 %v15434_v54  ;;  %v15473_v54 = vld [vmem:[%s15978_s11 + $0x1340] sm:$0xff]  }
 0x26b   : > { %14135 = vmatpush3.bf16.msra.mxu0 %v15435_v55  ;;  %v15474_v55 = vld [vmem:[%s15978_s11 + $0x13c0] sm:$0xff]  }
 0x26c   : > { %14136 = vmatprep.subr.bf16.mxu0 %v15437_v57  ;;  %v15476_v57 = vld [vmem:[%s15978_s11 + $0x1380] sm:$0xff]  }
 0x26d   : > { %14157 = vmatpush3.bf16.msra.mxu1 %v15436_v56  ;;  %v15475_v56 = vld [vmem:[%s15978_s11 + $0x1300] sm:$0xff]  }
 0x26e   : > { %14158 = vmatprep.subr.bf16.mxu1 %v15438_v58  ;;  %v2845_v58 = vrot.slane %v16736_v4, %v16016_v42  ;;  %v15485_v4 = vld [vmem:[%s15978_s11 + $0x14b0] sm:$0xff]  }
 0x26f   : > { %14137 = vmatpush3.bf16.msra.mxu0 %v15439_v59  ;;  %v15478_v59 = vld [vmem:[%s15978_s11 + $0x1478] sm:$0xff]  }
 0x270   : > { %14138 = vmatprep.subr.bf16.mxu0 %v15441_v62  ;;  %v15481_v62 = vld [vmem:[%s15978_s11 + $0x14b8] sm:$0xff]   ;;  %v2861_v63 = vcombine.high %v2845_v58, %v2845_v58 }
 0x271   : > { %14159 = vmatpush3.bf16.msra.mxu1 %v15440_v61  ;;  %v15479_v61 = vld [vmem:[%s15978_s11 + $0x14f8] sm:$0xff]  }
 0x272   : > { %14160 = vmatprep.subr.bf16.mxu1 %v15442_v1  ;;  %v15483_v1 = vld [vmem:[%s15978_s11 + $0x14f0] sm:$0xff]  }
 0x273   : > { %14139 = vmatpush3.bf16.msra.mxu0 %v15443_v2 }
 0x274   : > { %14168 = vmatprep.subr.bf16.mxu0 %v15445_v8 }
 0x275   : > { %14161 = vmatpush3.bf16.msra.mxu1 %v15444_v5 }
 0x276   : > { %v13876_v19 = vpop.f32.mrf.mxu0  ;;  %10903 = vmatmul.mubr.bf16.vlgmr.msra.gmra.mxu0 %v2838_v7  ;;  %14190 = vmatprep.subr.bf16.mxu1 %v15446_v10  ;;  %v15486_v7 = vld [vmem:[%s15978_s11 + $0x1468] sm:$0xff]  }
 0x277   : > { %14169 = vmatpush3.bf16.msra.mxu0 %v15447_v12  ;;  %10982 = vmatprep.mubr.bf16.mxu0 %v2859_v13  ;;  %v15488_v12 = vld [vmem:[%s15978_s11 + $0x1428] sm:$0xff]  }
 0x278   : > { %v13898_v22 = vpop.f32.mrf.mxu1  ;;  %10943 = vmatmul.mubr.bf16.vlgmr.msra.gmra.mxu1 %v2860_v15  ;;  %v13877_v23 = vpop.f32.mrf.mxu0  ;;  %14170 = vmatprep.subr.bf16.mxu0 %v15449_v16  ;;  %v15489_v15 = vld [vmem:[%s15978_s11 + $0x14a8] sm:$0xff]  }
 0x279   : > { %14191 = vmatpush3.bf16.msra.mxu1 %v15448_v14  ;;  %v13878_v25 = vadd.f32 %v13877_v23, %v13876_v19  ;;  %11022 = vmatprep.mubr.bf16.mxu1 %v2863_v18  ;;  %v15490_v18 = vld [vmem:[%s15978_s11 + $0x1460] sm:$0xff]  }
 0x27a   : > { %v13899_v27 = vpop.f32.mrf.mxu1  ;;  %v13879_v28 = vpop.f32.mrf.mxu0  ;;  %14192 = vmatprep.subr.bf16.mxu1 %v15450_v17  ;;  %v15493_v23 = vld [vmem:[%s15978_s11 + $0x14a0] sm:$0xff]  }
 0x27b   : > { %v10425_v30 = vadd.f32 %v13878_v25, %v16713_v44  ;;  %v13900_v31 = vadd.f32 %v13899_v27, %v13898_v22  ;;  %14171 = vmatpush3.bf16.msra.mxu0 %v15451_v20  ;;  %v15463_v44 = vld [vmem:[%s15978_s11 + $0x1318] sm:$0xff]   ;;  %v15491_v20 = vld [vmem:[%s15978_s11 + $0x14e0] sm:$0xff]   ;;  %v15498_v28 = vld [vmem:[%s15978_s11 + $0x1450] sm:$0xff]  }
 0x27c   : > { %v13901_v33 = vpop.f32.mrf.mxu1  ;;  %v13880_v34 = vpop.f32.mrf.mxu0  ;;  %14172 = vmatprep.subr.bf16.mxu0 %v15453_v24  ;;  %v15492_v22 = vld [vmem:[%s15978_s11 + $0x1420] sm:$0xff]   ;;  %v15494_v24 = vld [vmem:[%s15978_s11 + $0x1458] sm:$0xff]  }
 0x27d   : > { %v16758_v35 = vadd.f32 %v13900_v31, %v10425_v30  ;;  %14193 = vmatpush3.bf16.msra.mxu1 %v15452_v21  ;;  %v15495_v25 = vld [vmem:[%s15978_s11 + $0x14d8] sm:$0xff]   ;;  %v15500_v30 = vld [vmem:[%s15978_s11 + $0x1410] sm:$0xff]   ;;  %v15503_v33 = vld [vmem:[%s15978_s11 + $0x14c8] sm:$0xff]  }
 0x27e   : > { %v13902_v38 = vpop.f32.mrf.mxu1  ;;  %14194 = vmatprep.subr.bf16.mxu1 %v15454_v26  ;;  %v15496_v26 = vld [vmem:[%s15978_s11 + $0x1418] sm:$0xff]   ;;  %v15501_v31 = vld [vmem:[%s15978_s11 + $0x1490] sm:$0xff]   ;;  %v15504_v34 = vld [vmem:[%s15978_s11 + $0x1408] sm:$0xff]  }
 0x27f   : > { %14173 = vmatpush3.bf16.msra.mxu0 %v15455_v29  ;;  %v15497_v27 = vld [vmem:[%s15978_s11 + $0x1498] sm:$0xff]   ;;  %v15499_v29 = vld [vmem:[%s15978_s11 + $0x14d0] sm:$0xff]  }
 0x280   : > { %14174 = vmatprep.subr.bf16.mxu0 %v15457_v36  ;;  %v15505_v36 = vld [vmem:[%s15978_s11 + $0x1488] sm:$0xff]  }
 0x281   : > { %14195 = vmatpush3.bf16.msra.mxu1 %v15456_v32  ;;  %v15502_v32 = vld [vmem:[%s15978_s11 + $0x1448] sm:$0xff]  }
 0x282   : > { %14196 = vmatprep.subr.bf16.mxu1 %v15458_v37  ;;  %v15506_v37 = vld [vmem:[%s15978_s11 + $0x1440] sm:$0xff]  }
 0x283   : > { %14175 = vmatpush3.bf16.msra.mxu0 %v15459_v39 }
 0x284   : > { %14176 = vmatprep.subr.bf16.mxu0 %v15461_v41  ;;  %v15508_v41 = vld [vmem:[%s15978_s11 + $0x1400] sm:$0xff]  }
 0x285   : > { %14197 = vmatpush3.bf16.msra.mxu1 %v15460_v40  ;;  %v15507_v40 = vld [vmem:[%s15978_s11 + $0x14c0] sm:$0xff]  }
 0x286   : > { %14198 = vmatprep.subr.bf16.mxu1 %v15462_v43 }
 0x287   : > { %14177 = vmatpush3.bf16.msra.mxu0 %v15463_v44 }
 0x288   : > { %14178 = vmatprep.subr.bf16.mxu0 %v15465_v46 }
 0x289   : > { %14199 = vmatpush3.bf16.msra.mxu1 %v15464_v45  ;;  %v15509_v45 = vld [vmem:[%s15978_s11 + $0x1480] sm:$0xff]  }
 0x28a   : > { %14200 = vmatprep.subr.bf16.mxu1 %v15466_v47 }
 0x28b   : > { %14179 = vmatpush3.bf16.msra.mxu0 %v15467_v48  ;;  %v15510_v48 = vld [vmem:[%s15978_s11 + $0x1578] sm:$0xff]  }
 0x28c   : > { %14180 = vmatprep.subr.bf16.mxu0 %v15469_v50  ;;  %v15511_v50 = vld [vmem:[%s15978_s11 + $0x15f8] sm:$0xff]  }
 0x28d   : > { %14201 = vmatpush3.bf16.msra.mxu1 %v15468_v49 }
 0x28e   : > { %14202 = vmatprep.subr.bf16.mxu1 %v15470_v51 }
 0x28f   : > { %14181 = vmatpush3.bf16.msra.mxu0 %v15471_v52  ;;  %v15512_v52 = vld [vmem:[%s15978_s11 + $0x1538] sm:$0xff]  }
 0x290   : > { %14182 = vmatprep.subr.bf16.mxu0 %v15473_v54  ;;  %v15513_v54 = vld [vmem:[%s15978_s11 + $0x15b8] sm:$0xff]  }
 0x291   : > { %14203 = vmatpush3.bf16.msra.mxu1 %v15472_v53 }
 0x292   : > { %14204 = vmatprep.subr.bf16.mxu1 %v15474_v55 }
 0x293   : > { %14183 = vmatpush3.bf16.msra.mxu0 %v15475_v56  ;;  %v15514_v56 = vld [vmem:[%s15978_s11 + $0x1570] sm:$0xff]  }
 0x294   : > { %14212 = vmatprep.subr.bf16.mxu0 %v15478_v59 }
 0x295   : > { %14205 = vmatpush3.bf16.msra.mxu1 %v15476_v57  ;;  %v15515_v57 = vld [vmem:[%s15978_s11 + $0x15f0] sm:$0xff]  }
 0x296   : > { %v13920_v2 = vpop.f32.mrf.mxu0  ;;  %10983 = vmatmul.mubr.bf16.vlgmr.msra.gmra.mxu0 %v2845_v58  ;;  %14234 = vmatprep.subr.bf16.mxu1 %v15479_v61  ;;  %v15516_v61 = vld [vmem:[%s15978_s11 + $0x1530] sm:$0xff]  }
 0x297   : > { %14213 = vmatpush3.bf16.msra.mxu0 %v15480_v60  ;;  %v15517_v60 = vld [vmem:[%s15978_s11 + $0x15b0] sm:$0xff]  }
 0x298   : > { %v13942_v5 = vpop.f32.mrf.mxu1  ;;  %11023 = vmatmul.mubr.bf16.vlgmr.msra.gmra.mxu1 %v2861_v63  ;;  %v13921_v6 = vpop.f32.mrf.mxu0  ;;  %14214 = vmatprep.subr.bf16.mxu0 %v15482_v0  ;;  %v15518_v0 = vld [vmem:[%s15978_s11 + $0x1568] sm:$0xff]  }
 0x299   : > { %14235 = vmatpush3.bf16.msra.mxu1 %v15481_v62  ;;  %v13922_v8 = vadd.f32 %v13921_v6, %v13920_v2  ;;  %v15519_v2 = vld [vmem:[%s15978_s11 + $0x15e8] sm:$0xff]  }
 0x29a   : > { %v13943_v10 = vpop.f32.mrf.mxu1  ;;  %v13923_v11 = vpop.f32.mrf.mxu0  ;;  %14236 = vmatprep.subr.bf16.mxu1 %v15483_v1 }
 0x29b   : > { %v10505_v13 = vadd.f32 %v13922_v8, %v16758_v35  ;;  %v13944_v14 = vadd.f32 %v13943_v10, %v13942_v5  ;;  %14215 = vmatpush3.bf16.msra.mxu0 %v15484_v3  ;;  %v304_v35 = vld [vmem:[%s15973_s30 + $0x50] sm:$0xff]  ;;  %v15520_v5 = vld [vmem:[%s15978_s11 + $0x1528] sm:$0xff]   ;;  %v15522_v11 = vld [vmem:[%s15978_s11 + $0x1560] sm:$0xff]  }
 0x29c   : > { %v13945_v16 = vpop.f32.mrf.mxu1  ;;  %v13924_v17 = vpop.f32.mrf.mxu0  ;;  %14216 = vmatprep.subr.bf16.mxu0 %v15486_v7  ;;  %v2871_v38 = vrot.slane %v304_v35, %v16016_v42  ;;  %v2864_v39 = vcombine.high %v304_v35, %v304_v35  ;;  %v15521_v8 = vld [vmem:[%s15978_s11 + $0x15a8] sm:$0xff]   ;;  %v15545_v35 = vld [vmem:[%s15978_s11 + $0x1638] sm:$0xff]  }
 0x29d   : > { %v16795_v19 = vadd.f32 %v13944_v14, %v10505_v13  ;;  %14237 = vmatpush3.bf16.msra.mxu1 %v15485_v4  ;;  %v15523_v13 = vld [vmem:[%s15978_s11 + $0x15e0] sm:$0xff]   ;;  %v15526_v17 = vld [vmem:[%s15978_s11 + $0x1558] sm:$0xff]  }
 0x29e   : > { %v13946_v21 = vpop.f32.mrf.mxu1  ;;  %14238 = vmatprep.subr.bf16.mxu1 %v15487_v9  ;;  %v2879_v43 = vcombine.high %v2871_v38, %v2871_v38  ;;  %v16818_v44 = vrot.slane %v2864_v39, %v16016_v42  ;;  %v2887_v47 = vrot.slane %v2871_v38, %v16016_v42  ;;  %v15525_v16 = vld [vmem:[%s15978_s11 + $0x15a0] sm:$0xff]   ;;  %v15547_v39 = vld [vmem:[%s15978_s11 + $0x1670] sm:$0xff]  }
 0x29f   : > { %14217 = vmatpush3.bf16.msra.mxu0 %v15488_v12  ;;  %v15530_v21 = vld [vmem:[%s15978_s11 + $0x1550] sm:$0xff]  }
 0x2a0   : > { %14218 = vmatprep.subr.bf16.mxu0 %v15490_v18  ;;  %v2901_v46 = vrot.slane %v2879_v43, %v16016_v42  ;;  %v2880_v49 = vcombine.high %v16818_v44, %v16818_v44  ;;  %v2909_v55 = vcombine.high %v2887_v47, %v2887_v47  ;;  %v15527_v18 = vld [vmem:[%s15978_s11 + $0x15d8] sm:$0xff]   ;;  %v15549_v43 = vld [vmem:[%s15978_s11 + $0x1630] sm:$0xff]  }
 0x2a1   : > { %14239 = vmatpush3.bf16.msra.mxu1 %v15489_v15  ;;  %v15524_v15 = vld [vmem:[%s15978_s11 + $0x1520] sm:$0xff]  }
 0x2a2   : > { %14240 = vmatprep.subr.bf16.mxu1 %v15491_v20  ;;  %11062 = vmatprep.mubr.bf16.mxu0 %v2901_v46  ;;  %v2911_v51 = vcombine.high %v2901_v46, %v2901_v46  ;;  %v2908_v53 = vrot.slane %v2880_v49, %v16016_v42  ;;  %v15529_v20 = vld [vmem:[%s15978_s11 + $0x1598] sm:$0xff]   ;;  %v15552_v49 = vld [vmem:[%s15978_s11 + $0x16e8] sm:$0xff]  }
 0x2a3   : > { %14219 = vmatpush3.bf16.msra.mxu0 %v15492_v22  ;;  %v15531_v22 = vld [vmem:[%s15978_s11 + $0x15d0] sm:$0xff]  }
 0x2a4   : > { %14220 = vmatprep.subr.bf16.mxu0 %v15494_v24  ;;  %11102 = vmatprep.mubr.bf16.mxu1 %v2911_v51  ;;  %v2912_v58 = vcombine.high %v2908_v53, %v2908_v53  ;;  %v15533_v24 = vld [vmem:[%s15978_s11 + $0x1590] sm:$0xff]  }
 0x2a5   : > { %14241 = vmatpush3.bf16.msra.mxu1 %v15493_v23  ;;  %v15532_v23 = vld [vmem:[%s15978_s11 + $0x1510] sm:$0xff]  }
 0x2a6   : > { %14242 = vmatprep.subr.bf16.mxu1 %v15495_v25  ;;  %v15534_v25 = vld [vmem:[%s15978_s11 + $0x1548] sm:$0xff]  }
 0x2a7   : > { %14221 = vmatpush3.bf16.msra.mxu0 %v15496_v26  ;;  %v15535_v26 = vld [vmem:[%s15978_s11 + $0x15c8] sm:$0xff]  }
 0x2a8   : > { %14222 = vmatprep.subr.bf16.mxu0 %v15498_v28  ;;  %v15537_v28 = vld [vmem:[%s15978_s11 + $0x1588] sm:$0xff]  }
 0x2a9   : > { %14243 = vmatpush3.bf16.msra.mxu1 %v15497_v27  ;;  %v15536_v27 = vld [vmem:[%s15978_s11 + $0x1508] sm:$0xff]  }
 0x2aa   : > { %14244 = vmatprep.subr.bf16.mxu1 %v15499_v29  ;;  %v15538_v29 = vld [vmem:[%s15978_s11 + $0x1540] sm:$0xff]  }
 0x2ab   : > { %14223 = vmatpush3.bf16.msra.mxu0 %v15500_v30  ;;  %v15539_v30 = vld [vmem:[%s15978_s11 + $0x15c0] sm:$0xff]  }
 0x2ac   : > { %14224 = vmatprep.subr.bf16.mxu0 %v15502_v32  ;;  %v15541_v32 = vld [vmem:[%s15978_s11 + $0x1580] sm:$0xff]  }
 0x2ad   : > { %14245 = vmatpush3.bf16.msra.mxu1 %v15501_v31  ;;  %v15540_v31 = vld [vmem:[%s15978_s11 + $0x1500] sm:$0xff]  }
 0x2ae   : > { %14246 = vmatprep.subr.bf16.mxu1 %v15503_v33  ;;  %v2894_v33 = vrot.slane %v16818_v44, %v16016_v42  ;;  %v15550_v44 = vld [vmem:[%s15978_s11 + $0x16b0] sm:$0xff]  }
 0x2af   : > { %14225 = vmatpush3.bf16.msra.mxu0 %v15504_v34  ;;  %v15543_v34 = vld [vmem:[%s15978_s11 + $0x1678] sm:$0xff]  }
 0x2b0   : > { %14226 = vmatprep.subr.bf16.mxu0 %v15506_v37  ;;  %v15546_v37 = vld [vmem:[%s15978_s11 + $0x16b8] sm:$0xff]   ;;  %v2910_v38 = vcombine.high %v2894_v33, %v2894_v33 }
 0x2b1   : > { %14247 = vmatpush3.bf16.msra.mxu1 %v15505_v36  ;;  %v15544_v36 = vld [vmem:[%s15978_s11 + $0x16f8] sm:$0xff]  }
 0x2b2   : > { %14248 = vmatprep.subr.bf16.mxu1 %v15507_v40  ;;  %v15548_v40 = vld [vmem:[%s15978_s11 + $0x16f0] sm:$0xff]  }
 0x2b3   : > { %14227 = vmatpush3.bf16.msra.mxu0 %v15508_v41 }
 0x2b4   : > { %14256 = vmatprep.subr.bf16.mxu0 %v15510_v48 }
 0x2b5   : > { %14249 = vmatpush3.bf16.msra.mxu1 %v15509_v45 }
 0x2b6   : > { %v13964_v59 = vpop.f32.mrf.mxu0  ;;  %11063 = vmatmul.mubr.bf16.vlgmr.msra.gmra.mxu0 %v2887_v47  ;;  %14278 = vmatprep.subr.bf16.mxu1 %v15511_v50  ;;  %v15551_v47 = vld [vmem:[%s15978_s11 + $0x1668] sm:$0xff]  }
 0x2b7   : > { %14257 = vmatpush3.bf16.msra.mxu0 %v15512_v52  ;;  %11142 = vmatprep.mubr.bf16.mxu0 %v2908_v53  ;;  %v15553_v52 = vld [vmem:[%s15978_s11 + $0x1628] sm:$0xff]  }
 0x2b8   : > { %v13986_v62 = vpop.f32.mrf.mxu1  ;;  %11103 = vmatmul.mubr.bf16.vlgmr.msra.gmra.mxu1 %v2909_v55  ;;  %v13965_v63 = vpop.f32.mrf.mxu0  ;;  %14258 = vmatprep.subr.bf16.mxu0 %v15514_v56  ;;  %v15554_v55 = vld [vmem:[%s15978_s11 + $0x16a8] sm:$0xff]  }
 0x2b9   : > { %14279 = vmatpush3.bf16.msra.mxu1 %v15513_v54  ;;  %v13966_v1 = vadd.f32 %v13965_v63, %v13964_v59  ;;  %11182 = vmatprep.mubr.bf16.mxu1 %v2912_v58  ;;  %v15555_v58 = vld [vmem:[%s15978_s11 + $0x1660] sm:$0xff]  }
 0x2ba   : > { %v13987_v3 = vpop.f32.mrf.mxu1  ;;  %v13967_v4 = vpop.f32.mrf.mxu0  ;;  %14280 = vmatprep.subr.bf16.mxu1 %v15515_v57  ;;  %v15558_v63 = vld [vmem:[%s15978_s11 + $0x16a0] sm:$0xff]  }
 0x2bb   : > { %v10585_v6 = vadd.f32 %v13966_v1, %v16795_v19  ;;  %v13988_v7 = vadd.f32 %v13987_v3, %v13986_v62  ;;  %14259 = vmatpush3.bf16.msra.mxu0 %v15516_v61  ;;  %v15528_v19 = vld [vmem:[%s15978_s11 + $0x1518] sm:$0xff]   ;;  %v15556_v61 = vld [vmem:[%s15978_s11 + $0x16e0] sm:$0xff]   ;;  %v15563_v4 = vld [vmem:[%s15978_s11 + $0x1650] sm:$0xff]  }
 0x2bc   : > { %v13989_v9 = vpop.f32.mrf.mxu1  ;;  %v13968_v10 = vpop.f32.mrf.mxu0  ;;  %14260 = vmatprep.subr.bf16.mxu0 %v15518_v0  ;;  %v15557_v62 = vld [vmem:[%s15978_s11 + $0x1620] sm:$0xff]   ;;  %v15559_v0 = vld [vmem:[%s15978_s11 + $0x1658] sm:$0xff]  }
 0x2bd   : > { %v16840_v12 = vadd.f32 %v13988_v7, %v10585_v6  ;;  %14281 = vmatpush3.bf16.msra.mxu1 %v15517_v60  ;;  %v15560_v1 = vld [vmem:[%s15978_s11 + $0x16d8] sm:$0xff]   ;;  %v15565_v6 = vld [vmem:[%s15978_s11 + $0x1610] sm:$0xff]   ;;  %v15568_v9 = vld [vmem:[%s15978_s11 + $0x16c8] sm:$0xff]  }
 0x2be   : > { %v13990_v14 = vpop.f32.mrf.mxu1  ;;  %14282 = vmatprep.subr.bf16.mxu1 %v15519_v2  ;;  %v15561_v2 = vld [vmem:[%s15978_s11 + $0x1618] sm:$0xff]   ;;  %v15566_v7 = vld [vmem:[%s15978_s11 + $0x1690] sm:$0xff]   ;;  %v15569_v10 = vld [vmem:[%s15978_s11 + $0x1608] sm:$0xff]  }
 0x2bf   : > { %14261 = vmatpush3.bf16.msra.mxu0 %v15520_v5  ;;  %v15562_v3 = vld [vmem:[%s15978_s11 + $0x1698] sm:$0xff]   ;;  %v15564_v5 = vld [vmem:[%s15978_s11 + $0x16d0] sm:$0xff]  }
 0x2c0   : > { %14262 = vmatprep.subr.bf16.mxu0 %v15522_v11  ;;  %v15570_v11 = vld [vmem:[%s15978_s11 + $0x1688] sm:$0xff]  }
 0x2c1   : > { %14283 = vmatpush3.bf16.msra.mxu1 %v15521_v8  ;;  %v15567_v8 = vld [vmem:[%s15978_s11 + $0x1648] sm:$0xff]  }
 0x2c2   : > { %14284 = vmatprep.subr.bf16.mxu1 %v15523_v13  ;;  %v15571_v13 = vld [vmem:[%s15978_s11 + $0x1640] sm:$0xff]  }
 0x2c3   : > { %14263 = vmatpush3.bf16.msra.mxu0 %v15524_v15 }
 0x2c4   : > { %14264 = vmatprep.subr.bf16.mxu0 %v15526_v17  ;;  %v15573_v17 = vld [vmem:[%s15978_s11 + $0x1600] sm:$0xff]  }
 0x2c5   : > { %14285 = vmatpush3.bf16.msra.mxu1 %v15525_v16  ;;  %v15572_v16 = vld [vmem:[%s15978_s11 + $0x16c0] sm:$0xff]  }
 0x2c6   : > { %14286 = vmatprep.subr.bf16.mxu1 %v15527_v18 }
 0x2c7   : > { %14265 = vmatpush3.bf16.msra.mxu0 %v15528_v19 }
 0x2c8   : > { %14266 = vmatprep.subr.bf16.mxu0 %v15530_v21 }
 0x2c9   : > { %14287 = vmatpush3.bf16.msra.mxu1 %v15529_v20  ;;  %v15574_v20 = vld [vmem:[%s15978_s11 + $0x1680] sm:$0xff]  }
 0x2ca   : > { %14288 = vmatprep.subr.bf16.mxu1 %v15531_v22 }
 0x2cb   : > { %14267 = vmatpush3.bf16.msra.mxu0 %v15532_v23  ;;  %v15575_v23 = vld [vmem:[%s15978_s11 + $0x1778] sm:$0xff]  }
 0x2cc   : > { %14268 = vmatprep.subr.bf16.mxu0 %v15534_v25  ;;  %v15576_v25 = vld [vmem:[%s15978_s11 + $0x17f8] sm:$0xff]  }
 0x2cd   : > { %14289 = vmatpush3.bf16.msra.mxu1 %v15533_v24 }
 0x2ce   : > { %14290 = vmatprep.subr.bf16.mxu1 %v15535_v26 }
 0x2cf   : > { %14269 = vmatpush3.bf16.msra.mxu0 %v15536_v27  ;;  %v15577_v27 = vld [vmem:[%s15978_s11 + $0x1738] sm:$0xff]  }
 0x2d0   : > { %14270 = vmatprep.subr.bf16.mxu0 %v15538_v29  ;;  %v15578_v29 = vld [vmem:[%s15978_s11 + $0x17b8] sm:$0xff]  }
 0x2d1   : > { %14291 = vmatpush3.bf16.msra.mxu1 %v15537_v28 }
 0x2d2   : > { %14292 = vmatprep.subr.bf16.mxu1 %v15539_v30 }
 0x2d3   : > { %14271 = vmatpush3.bf16.msra.mxu0 %v15540_v31  ;;  %v15579_v31 = vld [vmem:[%s15978_s11 + $0x1770] sm:$0xff]  }
 0x2d4   : > { %14300 = vmatprep.subr.bf16.mxu0 %v15543_v34 }
 0x2d5   : > { %14293 = vmatpush3.bf16.msra.mxu1 %v15541_v32  ;;  %v15580_v32 = vld [vmem:[%s15978_s11 + $0x17f0] sm:$0xff]  }
 0x2d6   : > { %v14008_v41 = vpop.f32.mrf.mxu0  ;;  %11143 = vmatmul.mubr.bf16.vlgmr.msra.gmra.mxu0 %v2894_v33  ;;  %14322 = vmatprep.subr.bf16.mxu1 %v15544_v36  ;;  %v15581_v36 = vld [vmem:[%s15978_s11 + $0x1730] sm:$0xff]  }
 0x2d7   : > { %14301 = vmatpush3.bf16.msra.mxu0 %v15545_v35  ;;  %v15582_v35 = vld [vmem:[%s15978_s11 + $0x17b0] sm:$0xff]  }
 0x2d8   : > { %v14030_v45 = vpop.f32.mrf.mxu1  ;;  %11183 = vmatmul.mubr.bf16.vlgmr.msra.gmra.mxu1 %v2910_v38  ;;  %v14009_v46 = vpop.f32.mrf.mxu0  ;;  %14302 = vmatprep.subr.bf16.mxu0 %v15547_v39  ;;  %v15583_v39 = vld [vmem:[%s15978_s11 + $0x1768] sm:$0xff]  }
 0x2d9   : > { %14323 = vmatpush3.bf16.msra.mxu1 %v15546_v37  ;;  %v14010_v48 = vadd.f32 %v14009_v46, %v14008_v41  ;;  %v15584_v41 = vld [vmem:[%s15978_s11 + $0x17e8] sm:$0xff]  }
 0x2da   : > { %v14031_v50 = vpop.f32.mrf.mxu1  ;;  %v14011_v51 = vpop.f32.mrf.mxu0  ;;  %14324 = vmatprep.subr.bf16.mxu1 %v15548_v40 }
 0x2db   : > { %v10665_v53 = vadd.f32 %v14010_v48, %v16840_v12  ;;  %v14032_v54 = vadd.f32 %v14031_v50, %v14030_v45  ;;  %14303 = vmatpush3.bf16.msra.mxu0 %v15549_v43  ;;  %v305_v12 = vld [vmem:[%s15973_s30 + $0x58] sm:$0xff]  ;;  %v15585_v45 = vld [vmem:[%s15978_s11 + $0x1728] sm:$0xff]   ;;  %v15587_v51 = vld [vmem:[%s15978_s11 + $0x1760] sm:$0xff]  }
 0x2dc   : > { %v14033_v56 = vpop.f32.mrf.mxu1  ;;  %v14012_v57 = vpop.f32.mrf.mxu0  ;;  %14304 = vmatprep.subr.bf16.mxu0 %v15551_v47  ;;  %v2920_v14 = vrot.slane %v305_v12, %v16016_v42  ;;  %v2913_v15 = vcombine.high %v305_v12, %v305_v12  ;;  %v15586_v48 = vld [vmem:[%s15978_s11 + $0x17a8] sm:$0xff]   ;;  %v15610_v12 = vld [vmem:[%s15978_s11 + $0x1838] sm:$0xff]  }
 0x2dd   : > { %v16877_v59 = vadd.f32 %v14032_v54, %v10665_v53  ;;  %14325 = vmatpush3.bf16.msra.mxu1 %v15550_v44  ;;  %v15588_v53 = vld [vmem:[%s15978_s11 + $0x17e0] sm:$0xff]   ;;  %v15591_v57 = vld [vmem:[%s15978_s11 + $0x1758] sm:$0xff]  }
 0x2de   : > { %v14034_v60 = vpop.f32.mrf.mxu1  ;;  %14326 = vmatprep.subr.bf16.mxu1 %v15552_v49  ;;  %v2928_v18 = vcombine.high %v2920_v14, %v2920_v14  ;;  %v16900_v19 = vrot.slane %v2913_v15, %v16016_v42  ;;  %v2936_v22 = vrot.slane %v2920_v14, %v16016_v42  ;;  %v15590_v56 = vld [vmem:[%s15978_s11 + $0x17a0] sm:$0xff]   ;;  %v15612_v15 = vld [vmem:[%s15978_s11 + $0x1870] sm:$0xff]  }
 0x2df   : > { %14305 = vmatpush3.bf16.msra.mxu0 %v15553_v52  ;;  %v15595_v60 = vld [vmem:[%s15978_s11 + $0x1750] sm:$0xff]  }
 0x2e0   : > { %14306 = vmatprep.subr.bf16.mxu0 %v15555_v58  ;;  %v2950_v21 = vrot.slane %v2928_v18, %v16016_v42  ;;  %v2929_v24 = vcombine.high %v16900_v19, %v16900_v19  ;;  %v2958_v30 = vcombine.high %v2936_v22, %v2936_v22  ;;  %v15592_v58 = vld [vmem:[%s15978_s11 + $0x17d8] sm:$0xff]   ;;  %v15614_v18 = vld [vmem:[%s15978_s11 + $0x1830] sm:$0xff]  }
 0x2e1   : > { %14327 = vmatpush3.bf16.msra.mxu1 %v15554_v55  ;;  %v15589_v55 = vld [vmem:[%s15978_s11 + $0x1720] sm:$0xff]  }
 0x2e2   : > { %14328 = vmatprep.subr.bf16.mxu1 %v15556_v61  ;;  %11222 = vmatprep.mubr.bf16.mxu0 %v2950_v21  ;;  %v2960_v26 = vcombine.high %v2950_v21, %v2950_v21  ;;  %v2957_v28 = vrot.slane %v2929_v24, %v16016_v42  ;;  %v15594_v61 = vld [vmem:[%s15978_s11 + $0x1798] sm:$0xff]   ;;  %v15617_v24 = vld [vmem:[%s15978_s11 + $0x18e8] sm:$0xff]  }
 0x2e3   : > { %14307 = vmatpush3.bf16.msra.mxu0 %v15557_v62  ;;  %v15596_v62 = vld [vmem:[%s15978_s11 + $0x17d0] sm:$0xff]  }
 0x2e4   : > { %14308 = vmatprep.subr.bf16.mxu0 %v15559_v0  ;;  %11262 = vmatprep.mubr.bf16.mxu1 %v2960_v26  ;;  %v2961_v33 = vcombine.high %v2957_v28, %v2957_v28  ;;  %v15598_v0 = vld [vmem:[%s15978_s11 + $0x1790] sm:$0xff]  }
 0x2e5   : > { %14329 = vmatpush3.bf16.msra.mxu1 %v15558_v63  ;;  %v15597_v63 = vld [vmem:[%s15978_s11 + $0x1710] sm:$0xff]  }
 0x2e6   : > { %14330 = vmatprep.subr.bf16.mxu1 %v15560_v1  ;;  %v15599_v1 = vld [vmem:[%s15978_s11 + $0x1748] sm:$0xff]  }
 0x2e7   : > { %14309 = vmatpush3.bf16.msra.mxu0 %v15561_v2  ;;  %v15600_v2 = vld [vmem:[%s15978_s11 + $0x17c8] sm:$0xff]  }
 0x2e8   : > { %14310 = vmatprep.subr.bf16.mxu0 %v15563_v4  ;;  %v15602_v4 = vld [vmem:[%s15978_s11 + $0x1788] sm:$0xff]  }
 0x2e9   : > { %14331 = vmatpush3.bf16.msra.mxu1 %v15562_v3  ;;  %v15601_v3 = vld [vmem:[%s15978_s11 + $0x1708] sm:$0xff]  }
 0x2ea   : > { %14332 = vmatprep.subr.bf16.mxu1 %v15564_v5  ;;  %v15603_v5 = vld [vmem:[%s15978_s11 + $0x1740] sm:$0xff]  }
 0x2eb   : > { %14311 = vmatpush3.bf16.msra.mxu0 %v15565_v6  ;;  %v15604_v6 = vld [vmem:[%s15978_s11 + $0x17c0] sm:$0xff]  }
 0x2ec   : > { %14312 = vmatprep.subr.bf16.mxu0 %v15567_v8  ;;  %v15606_v8 = vld [vmem:[%s15978_s11 + $0x1780] sm:$0xff]  }
 0x2ed   : > { %14333 = vmatpush3.bf16.msra.mxu1 %v15566_v7  ;;  %v15605_v7 = vld [vmem:[%s15978_s11 + $0x1700] sm:$0xff]  }
 0x2ee   : > { %14334 = vmatprep.subr.bf16.mxu1 %v15568_v9  ;;  %v2943_v9 = vrot.slane %v16900_v19, %v16016_v42  ;;  %v15615_v19 = vld [vmem:[%s15978_s11 + $0x18b0] sm:$0xff]  }
 0x2ef   : > { %14313 = vmatpush3.bf16.msra.mxu0 %v15569_v10  ;;  %v15608_v10 = vld [vmem:[%s15978_s11 + $0x1878] sm:$0xff]  }
 0x2f0   : > { %14314 = vmatprep.subr.bf16.mxu0 %v15571_v13  ;;  %v15611_v13 = vld [vmem:[%s15978_s11 + $0x18b8] sm:$0xff]   ;;  %v2959_v14 = vcombine.high %v2943_v9, %v2943_v9 }
 0x2f1   : > { %14335 = vmatpush3.bf16.msra.mxu1 %v15570_v11  ;;  %v15609_v11 = vld [vmem:[%s15978_s11 + $0x18f8] sm:$0xff]  }
 0x2f2   : > { %14336 = vmatprep.subr.bf16.mxu1 %v15572_v16  ;;  %v15613_v16 = vld [vmem:[%s15978_s11 + $0x18f0] sm:$0xff]  }
 0x2f3   : > { %14315 = vmatpush3.bf16.msra.mxu0 %v15573_v17 }
 0x2f4   : > { %14344 = vmatprep.subr.bf16.mxu0 %v15575_v23 }
 0x2f5   : > { %14337 = vmatpush3.bf16.msra.mxu1 %v15574_v20 }
 0x2f6   : > { %v14052_v34 = vpop.f32.mrf.mxu0  ;;  %11223 = vmatmul.mubr.bf16.vlgmr.msra.gmra.mxu0 %v2936_v22  ;;  %14366 = vmatprep.subr.bf16.mxu1 %v15576_v25  ;;  %v15616_v22 = vld [vmem:[%s15978_s11 + $0x1868] sm:$0xff]  }
 0x2f7   : > { %14345 = vmatpush3.bf16.msra.mxu0 %v15577_v27  ;;  %11302 = vmatprep.mubr.bf16.mxu0 %v2957_v28  ;;  %v15618_v27 = vld [vmem:[%s15978_s11 + $0x1828] sm:$0xff]  }
 0x2f8   : > { %v14074_v37 = vpop.f32.mrf.mxu1  ;;  %11263 = vmatmul.mubr.bf16.vlgmr.msra.gmra.mxu1 %v2958_v30  ;;  %v14053_v38 = vpop.f32.mrf.mxu0  ;;  %14346 = vmatprep.subr.bf16.mxu0 %v15579_v31  ;;  %v15619_v30 = vld [vmem:[%s15978_s11 + $0x18a8] sm:$0xff]  }
 0x2f9   : > { %14367 = vmatpush3.bf16.msra.mxu1 %v15578_v29  ;;  %v14054_v40 = vadd.f32 %v14053_v38, %v14052_v34  ;;  %11342 = vmatprep.mubr.bf16.mxu1 %v2961_v33  ;;  %v15620_v33 = vld [vmem:[%s15978_s11 + $0x1860] sm:$0xff]  }
 0x2fa   : > { %v14075_v43 = vpop.f32.mrf.mxu1  ;;  %v14055_v44 = vpop.f32.mrf.mxu0  ;;  %14368 = vmatprep.subr.bf16.mxu1 %v15580_v32  ;;  %v15623_v38 = vld [vmem:[%s15978_s11 + $0x18a0] sm:$0xff]  }
 0x2fb   : > { %v10745_v46 = vadd.f32 %v14054_v40, %v16877_v59  ;;  %v14076_v47 = vadd.f32 %v14075_v43, %v14074_v37  ;;  %14347 = vmatpush3.bf16.msra.mxu0 %v15581_v36  ;;  %v15593_v59 = vld [vmem:[%s15978_s11 + $0x1718] sm:$0xff]   ;;  %v15621_v36 = vld [vmem:[%s15978_s11 + $0x18e0] sm:$0xff]   ;;  %v15628_v44 = vld [vmem:[%s15978_s11 + $0x1850] sm:$0xff]  }
 0x2fc   : > { %v14077_v49 = vpop.f32.mrf.mxu1  ;;  %v14056_v50 = vpop.f32.mrf.mxu0  ;;  %14348 = vmatprep.subr.bf16.mxu0 %v15583_v39  ;;  %v15622_v37 = vld [vmem:[%s15978_s11 + $0x1820] sm:$0xff]   ;;  %v15624_v39 = vld [vmem:[%s15978_s11 + $0x1858] sm:$0xff]  }
 0x2fd   : > { %v16922_v52 = vadd.f32 %v14076_v47, %v10745_v46  ;;  %14369 = vmatpush3.bf16.msra.mxu1 %v15582_v35  ;;  %v15625_v40 = vld [vmem:[%s15978_s11 + $0x18d8] sm:$0xff]   ;;  %v15630_v46 = vld [vmem:[%s15978_s11 + $0x1810] sm:$0xff]   ;;  %v15633_v49 = vld [vmem:[%s15978_s11 + $0x18c8] sm:$0xff]  }
 0x2fe   : > { %v14078_v54 = vpop.f32.mrf.mxu1  ;;  %14370 = vmatprep.subr.bf16.mxu1 %v15584_v41  ;;  %v15626_v41 = vld [vmem:[%s15978_s11 + $0x1818] sm:$0xff]   ;;  %v15631_v47 = vld [vmem:[%s15978_s11 + $0x1890] sm:$0xff]   ;;  %v15634_v50 = vld [vmem:[%s15978_s11 + $0x1808] sm:$0xff]  }
 0x2ff   : > { %14349 = vmatpush3.bf16.msra.mxu0 %v15585_v45  ;;  %v15627_v43 = vld [vmem:[%s15978_s11 + $0x1898] sm:$0xff]   ;;  %v15629_v45 = vld [vmem:[%s15978_s11 + $0x18d0] sm:$0xff]   ;;  %v15637_v54 = vld [vmem:[%s15978_s11 + $0x18c0] sm:$0xff]  }
 0x300   : > { %14350 = vmatprep.subr.bf16.mxu0 %v15587_v51  ;;  %v15635_v51 = vld [vmem:[%s15978_s11 + $0x1888] sm:$0xff]  }
 0x301   : > { %14371 = vmatpush3.bf16.msra.mxu1 %v15586_v48  ;;  %v15632_v48 = vld [vmem:[%s15978_s11 + $0x1848] sm:$0xff]  }
 0x302   : > { %14372 = vmatprep.subr.bf16.mxu1 %v15588_v53  ;;  %v306_v53 = vld [vmem:[%s15973_s30 + $0x60] sm:$0xff] }
 0x303   : > { %14351 = vmatpush3.bf16.msra.mxu0 %v15589_v55  ;;  %v2969_v55 = vrot.slane %v306_v53, %v16016_v42 }
 0x304   : > { %14352 = vmatprep.subr.bf16.mxu0 %v15591_v57  ;;  %v15638_v57 = vld [vmem:[%s15978_s11 + $0x1800] sm:$0xff]  }
 0x305   : > { %14373 = vmatpush3.bf16.msra.mxu1 %v15590_v56  ;;  %v2962_v56 = vcombine.high %v306_v53, %v306_v53  ;;  %v15676_v53 = vld [vmem:[%s15978_s11 + $0x1ab8] sm:$0xff]  }
 0x306   : > { %14374 = vmatprep.subr.bf16.mxu1 %v15592_v58  ;;  %v15639_v58 = vld [vmem:[%s15978_s11 + $0x1880] sm:$0xff]  }
 0x307   : > { %14353 = vmatpush3.bf16.msra.mxu0 %v15593_v59  ;;  %v2977_v59 = vcombine.high %v2969_v55, %v2969_v55 }
 0x308   : > { %14354 = vmatprep.subr.bf16.mxu0 %v15595_v60  ;;  %v2985_v60 = vrot.slane %v2969_v55, %v16016_v42  ;;  %v15677_v55 = vld [vmem:[%s15978_s11 + $0x1a70] sm:$0xff]  }
 0x309   : > { %14375 = vmatpush3.bf16.msra.mxu1 %v15594_v61  ;;  %v16983_v61 = vrot.slane %v2962_v56, %v16016_v42  ;;  %v15678_v56 = vld [vmem:[%s15978_s11 + $0x1af0] sm:$0xff]  }
 0x30a   : > { %14376 = vmatprep.subr.bf16.mxu1 %v15596_v62  ;;  %v15640_v62 = vld [vmem:[%s15978_s11 + $0x1978] sm:$0xff]  }
 0x30b   : > { %14355 = vmatpush3.bf16.msra.mxu0 %v15597_v63  ;;  %v2999_v63 = vrot.slane %v2977_v59, %v16016_v42  ;;  %v15680_v59 = vld [vmem:[%s15978_s11 + $0x1ab0] sm:$0xff]  }
 0x30c   : > { %14356 = vmatprep.subr.bf16.mxu0 %v15599_v1  ;;  %v2978_v1 = vcombine.high %v16983_v61, %v16983_v61 }
 0x30d   : > { %14377 = vmatpush3.bf16.msra.mxu1 %v15598_v0  ;;  %v15641_v0 = vld [vmem:[%s15978_s11 + $0x19f8] sm:$0xff]  }
 0x30e   : > { %14378 = vmatprep.subr.bf16.mxu1 %v15600_v2  ;;  %v15642_v2 = vld [vmem:[%s15978_s11 + $0x1938] sm:$0xff]  }
 0x30f   : > { %14357 = vmatpush3.bf16.msra.mxu0 %v15601_v3  ;;  %v3009_v3 = vcombine.high %v2999_v63, %v2999_v63 }
 0x310   : > { %14358 = vmatprep.subr.bf16.mxu0 %v15603_v5  ;;  %v3006_v5 = vrot.slane %v2978_v1, %v16016_v42 }
 0x311   : > { %14379 = vmatpush3.bf16.msra.mxu1 %v15602_v4  ;;  %v15643_v4 = vld [vmem:[%s15978_s11 + $0x19b8] sm:$0xff]  }
 0x312   : > { %14380 = vmatprep.subr.bf16.mxu1 %v15604_v6  ;;  %v3007_v6 = vcombine.high %v2985_v60, %v2985_v60 }
 0x313   : > { %14359 = vmatpush3.bf16.msra.mxu0 %v15605_v7  ;;  %v15644_v7 = vld [vmem:[%s15978_s11 + $0x1970] sm:$0xff]  }
 0x314   : > { %14388 = vmatprep.subr.bf16.mxu0 %v15608_v10 }
 0x315   : > { %14381 = vmatpush3.bf16.msra.mxu1 %v15606_v8  ;;  %v15645_v8 = vld [vmem:[%s15978_s11 + $0x19f0] sm:$0xff]  }
 0x316   : > { %v14096_v17 = vpop.f32.mrf.mxu0  ;;  %11303 = vmatmul.mubr.bf16.vlgmr.msra.gmra.mxu0 %v2943_v9  ;;  %14410 = vmatprep.subr.bf16.mxu1 %v15609_v11  ;;  %v3010_v9 = vcombine.high %v3006_v5, %v3006_v5  ;;  %v15646_v11 = vld [vmem:[%s15978_s11 + $0x1930] sm:$0xff]  }
 0x317   : > { %14389 = vmatpush3.bf16.msra.mxu0 %v15610_v12  ;;  %11382 = vmatprep.mubr.bf16.mxu0 %v2999_v63  ;;  %v15647_v12 = vld [vmem:[%s15978_s11 + $0x19b0] sm:$0xff]  }
 0x318   : > { %v14118_v20 = vpop.f32.mrf.mxu1  ;;  %11343 = vmatmul.mubr.bf16.vlgmr.msra.gmra.mxu1 %v2959_v14  ;;  %v14097_v21 = vpop.f32.mrf.mxu0  ;;  %14390 = vmatprep.subr.bf16.mxu0 %v15612_v15  ;;  %v15648_v15 = vld [vmem:[%s15978_s11 + $0x1968] sm:$0xff]  }
 0x319   : > { %14411 = vmatpush3.bf16.msra.mxu1 %v15611_v13  ;;  %v14098_v23 = vadd.f32 %v14097_v21, %v14096_v17  ;;  %11422 = vmatprep.mubr.bf16.mxu1 %v3009_v3  ;;  %v15649_v17 = vld [vmem:[%s15978_s11 + $0x19e8] sm:$0xff]  }
 0x31a   : > { %v14119_v25 = vpop.f32.mrf.mxu1  ;;  %v14099_v26 = vpop.f32.mrf.mxu0  ;;  %14412 = vmatprep.subr.bf16.mxu1 %v15613_v16  ;;  %v15683_v3 = vld [vmem:[%s15978_s11 + $0x1a28] sm:$0xff]  }
 0x31b   : > { %v10825_v28 = vadd.f32 %v14098_v23, %v16922_v52  ;;  %v14120_v29 = vadd.f32 %v14119_v25, %v14118_v20  ;;  %14391 = vmatpush3.bf16.msra.mxu0 %v15614_v18  ;;  %v15636_v52 = vld [vmem:[%s15978_s11 + $0x1840] sm:$0xff]   ;;  %v15650_v20 = vld [vmem:[%s15978_s11 + $0x1928] sm:$0xff]  }
 0x31c   : > { %v14121_v31 = vpop.f32.mrf.mxu1  ;;  %v14100_v32 = vpop.f32.mrf.mxu0  ;;  %14392 = vmatprep.subr.bf16.mxu0 %v15616_v22  ;;  %v15651_v23 = vld [vmem:[%s15978_s11 + $0x19a8] sm:$0xff]   ;;  %v15652_v26 = vld [vmem:[%s15978_s11 + $0x1960] sm:$0xff]  }
 0x31d   : > { %v16959_v34 = vadd.f32 %v14120_v29, %v10825_v28  ;;  %14413 = vmatpush3.bf16.msra.mxu1 %v15615_v19  ;;  %v15653_v28 = vld [vmem:[%s15978_s11 + $0x19e0] sm:$0xff]   ;;  %v15656_v32 = vld [vmem:[%s15978_s11 + $0x1958] sm:$0xff]  }
 0x31e   : > { %v14122_v35 = vpop.f32.mrf.mxu1  ;;  %14414 = vmatprep.subr.bf16.mxu1 %v15617_v24  ;;  %v15655_v31 = vld [vmem:[%s15978_s11 + $0x19a0] sm:$0xff]  }
 0x31f   : > { %14393 = vmatpush3.bf16.msra.mxu0 %v15618_v27  ;;  %v15660_v35 = vld [vmem:[%s15978_s11 + $0x1950] sm:$0xff]  }
 0x320   : > { %14394 = vmatprep.subr.bf16.mxu0 %v15620_v33  ;;  %v15657_v33 = vld [vmem:[%s15978_s11 + $0x19d8] sm:$0xff]  }
 0x321   : > { %14415 = vmatpush3.bf16.msra.mxu1 %v15619_v30  ;;  %v15654_v30 = vld [vmem:[%s15978_s11 + $0x1920] sm:$0xff]  }
 0x322   : > { %14416 = vmatprep.subr.bf16.mxu1 %v15621_v36  ;;  %v15659_v36 = vld [vmem:[%s15978_s11 + $0x1998] sm:$0xff]  }
 0x323   : > { %14395 = vmatpush3.bf16.msra.mxu0 %v15622_v37  ;;  %v15661_v37 = vld [vmem:[%s15978_s11 + $0x19d0] sm:$0xff]  }
 0x324   : > { %14396 = vmatprep.subr.bf16.mxu0 %v15624_v39  ;;  %v15663_v39 = vld [vmem:[%s15978_s11 + $0x1990] sm:$0xff]  }
 0x325   : > { %14417 = vmatpush3.bf16.msra.mxu1 %v15623_v38  ;;  %v15662_v38 = vld [vmem:[%s15978_s11 + $0x1910] sm:$0xff]  }
 0x326   : > { %14418 = vmatprep.subr.bf16.mxu1 %v15625_v40  ;;  %v15664_v40 = vld [vmem:[%s15978_s11 + $0x1948] sm:$0xff]  }
 0x327   : > { %14397 = vmatpush3.bf16.msra.mxu0 %v15626_v41  ;;  %v15665_v41 = vld [vmem:[%s15978_s11 + $0x19c8] sm:$0xff]  }
 0x328   : > { %14398 = vmatprep.subr.bf16.mxu0 %v15628_v44  ;;  %v15667_v44 = vld [vmem:[%s15978_s11 + $0x1988] sm:$0xff]  }
 0x329   : > { %14419 = vmatpush3.bf16.msra.mxu1 %v15627_v43  ;;  %v15666_v43 = vld [vmem:[%s15978_s11 + $0x1908] sm:$0xff]  }
 0x32a   : > { %14420 = vmatprep.subr.bf16.mxu1 %v15629_v45  ;;  %v15668_v45 = vld [vmem:[%s15978_s11 + $0x1940] sm:$0xff]  }
 0x32b   : > { %14399 = vmatpush3.bf16.msra.mxu0 %v15630_v46  ;;  %v15669_v46 = vld [vmem:[%s15978_s11 + $0x19c0] sm:$0xff]  }
 0x32c   : > { %14400 = vmatprep.subr.bf16.mxu0 %v15632_v48  ;;  %v15671_v48 = vld [vmem:[%s15978_s11 + $0x1980] sm:$0xff]  }
 0x32d   : > { %14421 = vmatpush3.bf16.msra.mxu1 %v15631_v47  ;;  %v15670_v47 = vld [vmem:[%s15978_s11 + $0x1900] sm:$0xff]  }
 0x32e   : > { %14422 = vmatprep.subr.bf16.mxu1 %v15633_v49  ;;  %v2992_v49 = vrot.slane %v16983_v61, %v16016_v42 }
 0x32f   : > { %14401 = vmatpush3.bf16.msra.mxu0 %v15634_v50  ;;  %v15673_v50 = vld [vmem:[%s15978_s11 + $0x1a78] sm:$0xff]  }
 0x330   : > { %14402 = vmatprep.subr.bf16.mxu0 %v15636_v52  ;;  %v15675_v52 = vld [vmem:[%s15978_s11 + $0x1a38] sm:$0xff]  }
 0x331   : > { %14423 = vmatpush3.bf16.msra.mxu1 %v15635_v51  ;;  %v15674_v51 = vld [vmem:[%s15978_s11 + $0x1af8] sm:$0xff]  }
 0x332   : > { %14424 = vmatprep.subr.bf16.mxu1 %v15637_v54  ;;  %v3008_v54 = vcombine.high %v2992_v49, %v2992_v49 }
 0x333   : > { %14403 = vmatpush3.bf16.msra.mxu0 %v15638_v57 }
 0x334   : > { %14432 = vmatprep.subr.bf16.mxu0 %v15640_v62  ;;  %v15681_v62 = vld [vmem:[%s15978_s11 + $0x1a68] sm:$0xff]  }
 0x335   : > { %14425 = vmatpush3.bf16.msra.mxu1 %v15639_v58  ;;  %v15679_v58 = vld [vmem:[%s15978_s11 + $0x1a30] sm:$0xff]  }
 0x336   : > { %v14140_v10 = vpop.f32.mrf.mxu0  ;;  %11383 = vmatmul.mubr.bf16.vlgmr.msra.gmra.mxu0 %v2985_v60  ;;  %14454 = vmatprep.subr.bf16.mxu1 %v15641_v0  ;;  %v15682_v0 = vld [vmem:[%s15978_s11 + $0x1ae8] sm:$0xff]  }
 0x337   : > { %14433 = vmatpush3.bf16.msra.mxu0 %v15642_v2  ;;  %11462 = vmatprep.mubr.bf16.mxu0 %v3006_v5 }
 0x338   : > { %v14162_v13 = vpop.f32.mrf.mxu1  ;;  %11423 = vmatmul.mubr.bf16.vlgmr.msra.gmra.mxu1 %v3007_v6  ;;  %v14141_v14 = vpop.f32.mrf.mxu0  ;;  %14434 = vmatprep.subr.bf16.mxu0 %v15644_v7  ;;  %v15684_v6 = vld [vmem:[%s15978_s11 + $0x1aa8] sm:$0xff]  }
 0x339   : > { %14455 = vmatpush3.bf16.msra.mxu1 %v15643_v4  ;;  %v14142_v16 = vadd.f32 %v14141_v14, %v14140_v10  ;;  %11502 = vmatprep.mubr.bf16.mxu1 %v3010_v9  ;;  %v15685_v9 = vld [vmem:[%s15978_s11 + $0x1a60] sm:$0xff]  }
 0x33a   : > { %v14163_v18 = vpop.f32.mrf.mxu1  ;;  %v14143_v19 = vpop.f32.mrf.mxu0  ;;  %14456 = vmatprep.subr.bf16.mxu1 %v15645_v8  ;;  %v15688_v14 = vld [vmem:[%s15978_s11 + $0x1aa0] sm:$0xff]  }
 0x33b   : > { %v10905_v21 = vadd.f32 %v14142_v16, %v16959_v34  ;;  %v14164_v22 = vadd.f32 %v14163_v18, %v14162_v13  ;;  %14435 = vmatpush3.bf16.msra.mxu0 %v15646_v11  ;;  %v15658_v34 = vld [vmem:[%s15978_s11 + $0x1918] sm:$0xff]   ;;  %v15686_v11 = vld [vmem:[%s15978_s11 + $0x1ae0] sm:$0xff]   ;;  %v15693_v19 = vld [vmem:[%s15978_s11 + $0x1a50] sm:$0xff]  }
 0x33c   : > { %v14165_v24 = vpop.f32.mrf.mxu1  ;;  %v14144_v25 = vpop.f32.mrf.mxu0  ;;  %14436 = vmatprep.subr.bf16.mxu0 %v15648_v15  ;;  %v15687_v13 = vld [vmem:[%s15978_s11 + $0x1a20] sm:$0xff]   ;;  %v15689_v15 = vld [vmem:[%s15978_s11 + $0x1a58] sm:$0xff]  }
 0x33d   : > { %v17004_v27 = vadd.f32 %v14164_v22, %v10905_v21  ;;  %14457 = vmatpush3.bf16.msra.mxu1 %v15647_v12  ;;  %v15690_v16 = vld [vmem:[%s15978_s11 + $0x1ad8] sm:$0xff]   ;;  %v15695_v21 = vld [vmem:[%s15978_s11 + $0x1a10] sm:$0xff]   ;;  %v15698_v24 = vld [vmem:[%s15978_s11 + $0x1ac8] sm:$0xff]  }
 0x33e   : > { %v14166_v29 = vpop.f32.mrf.mxu1  ;;  %14458 = vmatprep.subr.bf16.mxu1 %v15649_v17  ;;  %v15691_v17 = vld [vmem:[%s15978_s11 + $0x1a18] sm:$0xff]   ;;  %v15696_v22 = vld [vmem:[%s15978_s11 + $0x1a90] sm:$0xff]   ;;  %v15699_v25 = vld [vmem:[%s15978_s11 + $0x1a08] sm:$0xff]  }
 0x33f   : > { %14437 = vmatpush3.bf16.msra.mxu0 %v15650_v20  ;;  %v15692_v18 = vld [vmem:[%s15978_s11 + $0x1a98] sm:$0xff]   ;;  %v15694_v20 = vld [vmem:[%s15978_s11 + $0x1ad0] sm:$0xff]   ;;  %v15702_v29 = vld [vmem:[%s15978_s11 + $0x1ac0] sm:$0xff]  }
 0x340   : > { %14438 = vmatprep.subr.bf16.mxu0 %v15652_v26  ;;  %v15700_v26 = vld [vmem:[%s15978_s11 + $0x1a88] sm:$0xff]  }
 0x341   : > { %14459 = vmatpush3.bf16.msra.mxu1 %v15651_v23  ;;  %v15697_v23 = vld [vmem:[%s15978_s11 + $0x1a48] sm:$0xff]  }
 0x342   : > { %14460 = vmatprep.subr.bf16.mxu1 %v15653_v28  ;;  %v307_v28 = vld [vmem:[%s15973_s30 + $0x68] sm:$0xff] }
 0x343   : > { %14439 = vmatpush3.bf16.msra.mxu0 %v15654_v30  ;;  %v3018_v30 = vrot.slane %v307_v28, %v16016_v42 }
 0x344   : > { %14440 = vmatprep.subr.bf16.mxu0 %v15656_v32  ;;  %v15703_v32 = vld [vmem:[%s15978_s11 + $0x1a00] sm:$0xff]  }
 0x345   : > { %14461 = vmatpush3.bf16.msra.mxu1 %v15655_v31  ;;  %v3011_v31 = vcombine.high %v307_v28, %v307_v28  ;;  %v15741_v28 = vld [vmem:[%s15978_s11 + $0x1cb8] sm:$0xff]  }
 0x346   : > { %14462 = vmatprep.subr.bf16.mxu1 %v15657_v33  ;;  %v15704_v33 = vld [vmem:[%s15978_s11 + $0x1a80] sm:$0xff]  }
 0x347   : > { %14441 = vmatpush3.bf16.msra.mxu0 %v15658_v34  ;;  %v3026_v34 = vcombine.high %v3018_v30, %v3018_v30 }
 0x348   : > { %14442 = vmatprep.subr.bf16.mxu0 %v15660_v35  ;;  %v3034_v35 = vrot.slane %v3018_v30, %v16016_v42  ;;  %v15742_v30 = vld [vmem:[%s15978_s11 + $0x1c70] sm:$0xff]  }
 0x349   : > { %14463 = vmatpush3.bf16.msra.mxu1 %v15659_v36  ;;  %v17065_v36 = vrot.slane %v3011_v31, %v16016_v42  ;;  %v15743_v31 = vld [vmem:[%s15978_s11 + $0x1cf0] sm:$0xff]  }
 0x34a   : > { %14464 = vmatprep.subr.bf16.mxu1 %v15661_v37  ;;  %v15705_v37 = vld [vmem:[%s15978_s11 + $0x1b78] sm:$0xff]  }
 0x34b   : > { %14443 = vmatpush3.bf16.msra.mxu0 %v15662_v38  ;;  %v3048_v38 = vrot.slane %v3026_v34, %v16016_v42  ;;  %v15745_v34 = vld [vmem:[%s15978_s11 + $0x1cb0] sm:$0xff]  }
 0x34c   : > { %14444 = vmatprep.subr.bf16.mxu0 %v15664_v40  ;;  %v3027_v40 = vcombine.high %v17065_v36, %v17065_v36 }
 0x34d   : > { %14465 = vmatpush3.bf16.msra.mxu1 %v15663_v39  ;;  %v15706_v39 = vld [vmem:[%s15978_s11 + $0x1bf8] sm:$0xff]  }
 0x34e   : > { %14466 = vmatprep.subr.bf16.mxu1 %v15665_v41  ;;  %v15707_v41 = vld [vmem:[%s15978_s11 + $0x1b38] sm:$0xff]  }
 0x34f   : > { %14445 = vmatpush3.bf16.msra.mxu0 %v15666_v43  ;;  %v3058_v43 = vcombine.high %v3048_v38, %v3048_v38 }
 0x350   : > { %14446 = vmatprep.subr.bf16.mxu0 %v15668_v45  ;;  %v3055_v45 = vrot.slane %v3027_v40, %v16016_v42 }
 0x351   : > { %14467 = vmatpush3.bf16.msra.mxu1 %v15667_v44  ;;  %v15708_v44 = vld [vmem:[%s15978_s11 + $0x1bb8] sm:$0xff]  }
 0x352   : > { %14468 = vmatprep.subr.bf16.mxu1 %v15669_v46  ;;  %v3056_v46 = vcombine.high %v3034_v35, %v3034_v35 }
 0x353   : > { %14447 = vmatpush3.bf16.msra.mxu0 %v15670_v47  ;;  %v15709_v47 = vld [vmem:[%s15978_s11 + $0x1b70] sm:$0xff]  }
 0x354   : > { %14476 = vmatprep.subr.bf16.mxu0 %v15673_v50 }
 0x355   : > { %14469 = vmatpush3.bf16.msra.mxu1 %v15671_v48  ;;  %v15710_v48 = vld [vmem:[%s15978_s11 + $0x1bf0] sm:$0xff]  }
 0x356   : > { %v14184_v57 = vpop.f32.mrf.mxu0  ;;  %11463 = vmatmul.mubr.bf16.vlgmr.msra.gmra.mxu0 %v2992_v49  ;;  %14498 = vmatprep.subr.bf16.mxu1 %v15674_v51  ;;  %v3059_v49 = vcombine.high %v3055_v45, %v3055_v45  ;;  %v15711_v51 = vld [vmem:[%s15978_s11 + $0x1b30] sm:$0xff]  }
 0x357   : > { %14477 = vmatpush3.bf16.msra.mxu0 %v15675_v52  ;;  %11542 = vmatprep.mubr.bf16.mxu0 %v3048_v38  ;;  %v15712_v52 = vld [vmem:[%s15978_s11 + $0x1bb0] sm:$0xff]  }
 0x358   : > { %v14206_v61 = vpop.f32.mrf.mxu1  ;;  %11503 = vmatmul.mubr.bf16.vlgmr.msra.gmra.mxu1 %v3008_v54  ;;  %v14185_v60 = vpop.f32.mrf.mxu0  ;;  %14478 = vmatprep.subr.bf16.mxu0 %v15677_v55  ;;  %v15713_v55 = vld [vmem:[%s15978_s11 + $0x1b68] sm:$0xff]  }
 0x359   : > { %14499 = vmatpush3.bf16.msra.mxu1 %v15676_v53  ;;  %v14186_v63 = vadd.f32 %v14185_v60, %v14184_v57  ;;  %11582 = vmatprep.mubr.bf16.mxu1 %v3058_v43  ;;  %v15714_v57 = vld [vmem:[%s15978_s11 + $0x1be8] sm:$0xff]  }
 0x35a   : > { %v14207_v1 = vpop.f32.mrf.mxu1  ;;  %v14187_v2 = vpop.f32.mrf.mxu0  ;;  %14500 = vmatprep.subr.bf16.mxu1 %v15678_v56  ;;  %v15748_v43 = vld [vmem:[%s15978_s11 + $0x1c28] sm:$0xff]  }
 0x35b   : > { %v10985_v4 = vadd.f32 %v14186_v63, %v17004_v27  ;;  %v14208_v5 = vadd.f32 %v14207_v1, %v14206_v61  ;;  %14479 = vmatpush3.bf16.msra.mxu0 %v15679_v58  ;;  %v15701_v27 = vld [vmem:[%s15978_s11 + $0x1a40] sm:$0xff]   ;;  %v15715_v61 = vld [vmem:[%s15978_s11 + $0x1b28] sm:$0xff]  }
 0x35c   : > { %v14209_v7 = vpop.f32.mrf.mxu1  ;;  %v14188_v8 = vpop.f32.mrf.mxu0  ;;  %14480 = vmatprep.subr.bf16.mxu0 %v15681_v62  ;;  %v15716_v63 = vld [vmem:[%s15978_s11 + $0x1ba8] sm:$0xff]   ;;  %v15717_v2 = vld [vmem:[%s15978_s11 + $0x1b60] sm:$0xff]  }
 0x35d   : > { %v17041_v10 = vadd.f32 %v14208_v5, %v10985_v4  ;;  %14501 = vmatpush3.bf16.msra.mxu1 %v15680_v59  ;;  %v15718_v4 = vld [vmem:[%s15978_s11 + $0x1be0] sm:$0xff]   ;;  %v15721_v8 = vld [vmem:[%s15978_s11 + $0x1b58] sm:$0xff]  }
 0x35e   : > { %v14210_v12 = vpop.f32.mrf.mxu1  ;;  %14502 = vmatprep.subr.bf16.mxu1 %v15682_v0  ;;  %v15720_v7 = vld [vmem:[%s15978_s11 + $0x1ba0] sm:$0xff]  }
 0x35f   : > { %14481 = vmatpush3.bf16.msra.mxu0 %v15683_v3  ;;  %v15725_v12 = vld [vmem:[%s15978_s11 + $0x1b50] sm:$0xff]  }
 0x360   : > { %14482 = vmatprep.subr.bf16.mxu0 %v15685_v9  ;;  %v15722_v9 = vld [vmem:[%s15978_s11 + $0x1bd8] sm:$0xff]  }
 0x361   : > { %14503 = vmatpush3.bf16.msra.mxu1 %v15684_v6  ;;  %v15719_v6 = vld [vmem:[%s15978_s11 + $0x1b20] sm:$0xff]  }
 0x362   : > { %14504 = vmatprep.subr.bf16.mxu1 %v15686_v11  ;;  %v15724_v11 = vld [vmem:[%s15978_s11 + $0x1b98] sm:$0xff]  }
 0x363   : > { %14483 = vmatpush3.bf16.msra.mxu0 %v15687_v13  ;;  %v15726_v13 = vld [vmem:[%s15978_s11 + $0x1bd0] sm:$0xff]  }
 0x364   : > { %14484 = vmatprep.subr.bf16.mxu0 %v15689_v15  ;;  %v15728_v15 = vld [vmem:[%s15978_s11 + $0x1b90] sm:$0xff]  }
 0x365   : > { %14505 = vmatpush3.bf16.msra.mxu1 %v15688_v14  ;;  %v15727_v14 = vld [vmem:[%s15978_s11 + $0x1b10] sm:$0xff]  }
 0x366   : > { %14506 = vmatprep.subr.bf16.mxu1 %v15690_v16  ;;  %v15729_v16 = vld [vmem:[%s15978_s11 + $0x1b48] sm:$0xff]  }
 0x367   : > { %14485 = vmatpush3.bf16.msra.mxu0 %v15691_v17  ;;  %v15730_v17 = vld [vmem:[%s15978_s11 + $0x1bc8] sm:$0xff]  }
 0x368   : > { %14486 = vmatprep.subr.bf16.mxu0 %v15693_v19  ;;  %v15732_v19 = vld [vmem:[%s15978_s11 + $0x1b88] sm:$0xff]  }
 0x369   : > { %14507 = vmatpush3.bf16.msra.mxu1 %v15692_v18  ;;  %v15731_v18 = vld [vmem:[%s15978_s11 + $0x1b08] sm:$0xff]  }
 0x36a   : > { %14508 = vmatprep.subr.bf16.mxu1 %v15694_v20  ;;  %v15733_v20 = vld [vmem:[%s15978_s11 + $0x1b40] sm:$0xff]  }
 0x36b   : > { %14487 = vmatpush3.bf16.msra.mxu0 %v15695_v21  ;;  %v15734_v21 = vld [vmem:[%s15978_s11 + $0x1bc0] sm:$0xff]  }
 0x36c   : > { %14488 = vmatprep.subr.bf16.mxu0 %v15697_v23  ;;  %v15736_v23 = vld [vmem:[%s15978_s11 + $0x1b80] sm:$0xff]  }
 0x36d   : > { %14509 = vmatpush3.bf16.msra.mxu1 %v15696_v22  ;;  %v15735_v22 = vld [vmem:[%s15978_s11 + $0x1b00] sm:$0xff]  }
 0x36e   : > { %14510 = vmatprep.subr.bf16.mxu1 %v15698_v24  ;;  %v3041_v24 = vrot.slane %v17065_v36, %v16016_v42 }
 0x36f   : > { %14489 = vmatpush3.bf16.msra.mxu0 %v15699_v25  ;;  %v15738_v25 = vld [vmem:[%s15978_s11 + $0x1c78] sm:$0xff]  }
 0x370   : > { %14490 = vmatprep.subr.bf16.mxu0 %v15701_v27  ;;  %v15740_v27 = vld [vmem:[%s15978_s11 + $0x1c38] sm:$0xff]  }
 0x371   : > { %14511 = vmatpush3.bf16.msra.mxu1 %v15700_v26  ;;  %v15739_v26 = vld [vmem:[%s15978_s11 + $0x1cf8] sm:$0xff]  }
 0x372   : > { %14512 = vmatprep.subr.bf16.mxu1 %v15702_v29  ;;  %v3057_v29 = vcombine.high %v3041_v24, %v3041_v24 }
 0x373   : > { %14491 = vmatpush3.bf16.msra.mxu0 %v15703_v32 }
 0x374   : > { %14520 = vmatprep.subr.bf16.mxu0 %v15705_v37  ;;  %v15746_v37 = vld [vmem:[%s15978_s11 + $0x1c68] sm:$0xff]  }
 0x375   : > { %14513 = vmatpush3.bf16.msra.mxu1 %v15704_v33  ;;  %v15744_v33 = vld [vmem:[%s15978_s11 + $0x1c30] sm:$0xff]  }
 0x376   : > { %v14228_v50 = vpop.f32.mrf.mxu0  ;;  %11543 = vmatmul.mubr.bf16.vlgmr.msra.gmra.mxu0 %v3034_v35  ;;  %14542 = vmatprep.subr.bf16.mxu1 %v15706_v39  ;;  %v15747_v39 = vld [vmem:[%s15978_s11 + $0x1ce8] sm:$0xff]  }
 0x377   : > { %14521 = vmatpush3.bf16.msra.mxu0 %v15707_v41  ;;  %11622 = vmatprep.mubr.bf16.mxu0 %v3055_v45 }
 0x378   : > { %v14250_v53 = vpop.f32.mrf.mxu1  ;;  %11583 = vmatmul.mubr.bf16.vlgmr.msra.gmra.mxu1 %v3056_v46  ;;  %v14229_v54 = vpop.f32.mrf.mxu0  ;;  %14522 = vmatprep.subr.bf16.mxu0 %v15709_v47  ;;  %v15749_v46 = vld [vmem:[%s15978_s11 + $0x1ca8] sm:$0xff]  }
 0x379   : > { %14543 = vmatpush3.bf16.msra.mxu1 %v15708_v44  ;;  %v14230_v56 = vadd.f32 %v14229_v54, %v14228_v50  ;;  %11662 = vmatprep.mubr.bf16.mxu1 %v3059_v49  ;;  %v15750_v49 = vld [vmem:[%s15978_s11 + $0x1c60] sm:$0xff]  }
 0x37a   : > { %v14251_v58 = vpop.f32.mrf.mxu1  ;;  %v14231_v59 = vpop.f32.mrf.mxu0  ;;  %14544 = vmatprep.subr.bf16.mxu1 %v15710_v48  ;;  %v15753_v54 = vld [vmem:[%s15978_s11 + $0x1ca0] sm:$0xff]  }
 0x37b   : > { %v11065_v60 = vadd.f32 %v14230_v56, %v17041_v10  ;;  %v14252_v62 = vadd.f32 %v14251_v58, %v14250_v53  ;;  %14523 = vmatpush3.bf16.msra.mxu0 %v15711_v51  ;;  %v15723_v10 = vld [vmem:[%s15978_s11 + $0x1b18] sm:$0xff]   ;;  %v15751_v51 = vld [vmem:[%s15978_s11 + $0x1ce0] sm:$0xff]   ;;  %v15758_v59 = vld [vmem:[%s15978_s11 + $0x1c50] sm:$0xff]  }
 0x37c   : > { %v14253_v0 = vpop.f32.mrf.mxu1  ;;  %v14232_v1 = vpop.f32.mrf.mxu0  ;;  %14524 = vmatprep.subr.bf16.mxu0 %v15713_v55  ;;  %v15752_v53 = vld [vmem:[%s15978_s11 + $0x1c20] sm:$0xff]   ;;  %v15754_v55 = vld [vmem:[%s15978_s11 + $0x1c58] sm:$0xff]  }
 0x37d   : > { %v17086_v3 = vadd.f32 %v14252_v62, %v11065_v60  ;;  %14545 = vmatpush3.bf16.msra.mxu1 %v15712_v52  ;;  %v15755_v56 = vld [vmem:[%s15978_s11 + $0x1cd8] sm:$0xff]   ;;  %v15760_v60 = vld [vmem:[%s15978_s11 + $0x1c10] sm:$0xff]   ;;  %v15763_v0 = vld [vmem:[%s15978_s11 + $0x1cc8] sm:$0xff]  }
 0x37e   : > { %v14254_v5 = vpop.f32.mrf.mxu1  ;;  %14546 = vmatprep.subr.bf16.mxu1 %v15714_v57  ;;  %v15756_v57 = vld [vmem:[%s15978_s11 + $0x1c18] sm:$0xff]   ;;  %v15761_v62 = vld [vmem:[%s15978_s11 + $0x1c90] sm:$0xff]   ;;  %v15764_v1 = vld [vmem:[%s15978_s11 + $0x1c08] sm:$0xff]  }
 0x37f   : > { %14525 = vmatpush3.bf16.msra.mxu0 %v15715_v61  ;;  %v15757_v58 = vld [vmem:[%s15978_s11 + $0x1c98] sm:$0xff]   ;;  %v15759_v61 = vld [vmem:[%s15978_s11 + $0x1cd0] sm:$0xff]   ;;  %v15767_v5 = vld [vmem:[%s15978_s11 + $0x1cc0] sm:$0xff]  }
 0x380   : > { %14526 = vmatprep.subr.bf16.mxu0 %v15717_v2  ;;  %v15765_v2 = vld [vmem:[%s15978_s11 + $0x1c88] sm:$0xff]  }
 0x381   : > { %14547 = vmatpush3.bf16.msra.mxu1 %v15716_v63  ;;  %v15762_v63 = vld [vmem:[%s15978_s11 + $0x1c48] sm:$0xff]  }
 0x382   : > { %14548 = vmatprep.subr.bf16.mxu1 %v15718_v4  ;;  %v308_v4 = vld [vmem:[%s15973_s30 + $0x70] sm:$0xff] }
 0x383   : > { %14527 = vmatpush3.bf16.msra.mxu0 %v15719_v6  ;;  %v3067_v6 = vrot.slane %v308_v4, %v16016_v42 }
 0x384   : > { %14528 = vmatprep.subr.bf16.mxu0 %v15721_v8  ;;  %v15768_v8 = vld [vmem:[%s15978_s11 + $0x1c00] sm:$0xff]  }
 0x385   : > { %14549 = vmatpush3.bf16.msra.mxu1 %v15720_v7  ;;  %v3060_v7 = vcombine.high %v308_v4, %v308_v4  ;;  %v15806_v4 = vld [vmem:[%s15978_s11 + $0x1eb8] sm:$0xff]  }
 0x386   : > { %14550 = vmatprep.subr.bf16.mxu1 %v15722_v9  ;;  %v15769_v9 = vld [vmem:[%s15978_s11 + $0x1c80] sm:$0xff]  }
 0x387   : > { %14529 = vmatpush3.bf16.msra.mxu0 %v15723_v10  ;;  %v3075_v10 = vcombine.high %v3067_v6, %v3067_v6 }
 0x388   : > { %14530 = vmatprep.subr.bf16.mxu0 %v15725_v12  ;;  %v3083_v12 = vrot.slane %v3067_v6, %v16016_v42  ;;  %v15807_v6 = vld [vmem:[%s15978_s11 + $0x1e70] sm:$0xff]  }
 0x389   : > { %14551 = vmatpush3.bf16.msra.mxu1 %v15724_v11  ;;  %v17147_v11 = vrot.slane %v3060_v7, %v16016_v42  ;;  %v15808_v7 = vld [vmem:[%s15978_s11 + $0x1ef0] sm:$0xff]  }
 0x38a   : > { %14552 = vmatprep.subr.bf16.mxu1 %v15726_v13  ;;  %v15770_v13 = vld [vmem:[%s15978_s11 + $0x1d78] sm:$0xff]  }
 0x38b   : > { %14531 = vmatpush3.bf16.msra.mxu0 %v15727_v14  ;;  %v3097_v14 = vrot.slane %v3075_v10, %v16016_v42  ;;  %v15810_v10 = vld [vmem:[%s15978_s11 + $0x1eb0] sm:$0xff]  }
 0x38c   : > { %14532 = vmatprep.subr.bf16.mxu0 %v15729_v16  ;;  %v3076_v16 = vcombine.high %v17147_v11, %v17147_v11 }
 0x38d   : > { %14553 = vmatpush3.bf16.msra.mxu1 %v15728_v15  ;;  %v15771_v15 = vld [vmem:[%s15978_s11 + $0x1df8] sm:$0xff]  }
 0x38e   : > { %14554 = vmatprep.subr.bf16.mxu1 %v15730_v17  ;;  %v15772_v17 = vld [vmem:[%s15978_s11 + $0x1d38] sm:$0xff]  }
 0x38f   : > { %14533 = vmatpush3.bf16.msra.mxu0 %v15731_v18  ;;  %v3107_v18 = vcombine.high %v3097_v14, %v3097_v14 }
 0x390   : > { %14534 = vmatprep.subr.bf16.mxu0 %v15733_v20  ;;  %v3104_v20 = vrot.slane %v3076_v16, %v16016_v42 }
 0x391   : > { %14555 = vmatpush3.bf16.msra.mxu1 %v15732_v19  ;;  %v15773_v19 = vld [vmem:[%s15978_s11 + $0x1db8] sm:$0xff]  }
 0x392   : > { %14556 = vmatprep.subr.bf16.mxu1 %v15734_v21  ;;  %v3105_v21 = vcombine.high %v3083_v12, %v3083_v12 }
 0x393   : > { %14535 = vmatpush3.bf16.msra.mxu0 %v15735_v22  ;;  %v15774_v22 = vld [vmem:[%s15978_s11 + $0x1d70] sm:$0xff]  }
 0x394   : > { %14564 = vmatprep.subr.bf16.mxu0 %v15738_v25 }
 0x395   : > { %14557 = vmatpush3.bf16.msra.mxu1 %v15736_v23  ;;  %v15775_v23 = vld [vmem:[%s15978_s11 + $0x1df0] sm:$0xff]  }
 0x396   : > { %v14272_v32 = vpop.f32.mrf.mxu0  ;;  %11623 = vmatmul.mubr.bf16.vlgmr.msra.gmra.mxu0 %v3041_v24  ;;  %14586 = vmatprep.subr.bf16.mxu1 %v15739_v26  ;;  %v3108_v24 = vcombine.high %v3104_v20, %v3104_v20  ;;  %v15776_v26 = vld [vmem:[%s15978_s11 + $0x1d30] sm:$0xff]  }
 0x397   : > { %14565 = vmatpush3.bf16.msra.mxu0 %v15740_v27  ;;  %11702 = vmatprep.mubr.bf16.mxu0 %v3097_v14  ;;  %v15777_v27 = vld [vmem:[%s15978_s11 + $0x1db0] sm:$0xff]  }
 0x398   : > { %v14294_v36 = vpop.f32.mrf.mxu1  ;;  %11663 = vmatmul.mubr.bf16.vlgmr.msra.gmra.mxu1 %v3057_v29  ;;  %v14273_v35 = vpop.f32.mrf.mxu0  ;;  %14566 = vmatprep.subr.bf16.mxu0 %v15742_v30  ;;  %v15778_v30 = vld [vmem:[%s15978_s11 + $0x1d68] sm:$0xff]  }
 0x399   : > { %14587 = vmatpush3.bf16.msra.mxu1 %v15741_v28  ;;  %v14274_v38 = vadd.f32 %v14273_v35, %v14272_v32  ;;  %11742 = vmatprep.mubr.bf16.mxu1 %v3107_v18  ;;  %v15779_v32 = vld [vmem:[%s15978_s11 + $0x1de8] sm:$0xff]  }
 0x39a   : > { %v14295_v40 = vpop.f32.mrf.mxu1  ;;  %v14275_v41 = vpop.f32.mrf.mxu0  ;;  %14588 = vmatprep.subr.bf16.mxu1 %v15743_v31  ;;  %v15813_v18 = vld [vmem:[%s15978_s11 + $0x1e28] sm:$0xff]  }
 0x39b   : > { %v11145_v44 = vadd.f32 %v14274_v38, %v17086_v3  ;;  %v14296_v45 = vadd.f32 %v14295_v40, %v14294_v36  ;;  %14567 = vmatpush3.bf16.msra.mxu0 %v15744_v33  ;;  %v15766_v3 = vld [vmem:[%s15978_s11 + $0x1c40] sm:$0xff]   ;;  %v15780_v36 = vld [vmem:[%s15978_s11 + $0x1d28] sm:$0xff]  }
 0x39c   : > { %v14297_v47 = vpop.f32.mrf.mxu1  ;;  %v14276_v48 = vpop.f32.mrf.mxu0  ;;  %14568 = vmatprep.subr.bf16.mxu0 %v15746_v37  ;;  %v15781_v38 = vld [vmem:[%s15978_s11 + $0x1da8] sm:$0xff]   ;;  %v15782_v41 = vld [vmem:[%s15978_s11 + $0x1d60] sm:$0xff]  }
 0x39d   : > { %v17123_v50 = vadd.f32 %v14296_v45, %v11145_v44  ;;  %14589 = vmatpush3.bf16.msra.mxu1 %v15745_v34  ;;  %v15783_v44 = vld [vmem:[%s15978_s11 + $0x1de0] sm:$0xff]   ;;  %v15786_v48 = vld [vmem:[%s15978_s11 + $0x1d58] sm:$0xff]  }
 0x39e   : > { %v14298_v52 = vpop.f32.mrf.mxu1  ;;  %14590 = vmatprep.subr.bf16.mxu1 %v15747_v39  ;;  %v15785_v47 = vld [vmem:[%s15978_s11 + $0x1da0] sm:$0xff]  }
 0x39f   : > { %14569 = vmatpush3.bf16.msra.mxu0 %v15748_v43  ;;  %v15790_v52 = vld [vmem:[%s15978_s11 + $0x1d50] sm:$0xff]  }
 0x3a0   : > { %14570 = vmatprep.subr.bf16.mxu0 %v15750_v49  ;;  %v15787_v49 = vld [vmem:[%s15978_s11 + $0x1dd8] sm:$0xff]  }
 0x3a1   : > { %14591 = vmatpush3.bf16.msra.mxu1 %v15749_v46  ;;  %v15784_v46 = vld [vmem:[%s15978_s11 + $0x1d20] sm:$0xff]  }
 0x3a2   : > { %14592 = vmatprep.subr.bf16.mxu1 %v15751_v51  ;;  %v15789_v51 = vld [vmem:[%s15978_s11 + $0x1d98] sm:$0xff]  }
 0x3a3   : > { %14571 = vmatpush3.bf16.msra.mxu0 %v15752_v53  ;;  %v15791_v53 = vld [vmem:[%s15978_s11 + $0x1dd0] sm:$0xff]  }
 0x3a4   : > { %14572 = vmatprep.subr.bf16.mxu0 %v15754_v55  ;;  %v15793_v55 = vld [vmem:[%s15978_s11 + $0x1d90] sm:$0xff]  }
 0x3a5   : > { %14593 = vmatpush3.bf16.msra.mxu1 %v15753_v54  ;;  %v15792_v54 = vld [vmem:[%s15978_s11 + $0x1d10] sm:$0xff]  }
 0x3a6   : > { %14594 = vmatprep.subr.bf16.mxu1 %v15755_v56  ;;  %v15794_v56 = vld [vmem:[%s15978_s11 + $0x1d48] sm:$0xff]  }
 0x3a7   : > { %14573 = vmatpush3.bf16.msra.mxu0 %v15756_v57  ;;  %v15795_v57 = vld [vmem:[%s15978_s11 + $0x1dc8] sm:$0xff]  }
 0x3a8   : > { %14574 = vmatprep.subr.bf16.mxu0 %v15758_v59  ;;  %v15797_v59 = vld [vmem:[%s15978_s11 + $0x1d88] sm:$0xff]  }
 0x3a9   : > { %14595 = vmatpush3.bf16.msra.mxu1 %v15757_v58  ;;  %v15796_v58 = vld [vmem:[%s15978_s11 + $0x1d08] sm:$0xff]  }
 0x3aa   : > { %14596 = vmatprep.subr.bf16.mxu1 %v15759_v61  ;;  %v15798_v61 = vld [vmem:[%s15978_s11 + $0x1d40] sm:$0xff]  }
 0x3ab   : > { %14575 = vmatpush3.bf16.msra.mxu0 %v15760_v60  ;;  %v15799_v60 = vld [vmem:[%s15978_s11 + $0x1dc0] sm:$0xff]  }
 0x3ac   : > { %14576 = vmatprep.subr.bf16.mxu0 %v15762_v63  ;;  %v15801_v63 = vld [vmem:[%s15978_s11 + $0x1d80] sm:$0xff]  }
 0x3ad   : > { %14597 = vmatpush3.bf16.msra.mxu1 %v15761_v62  ;;  %v15800_v62 = vld [vmem:[%s15978_s11 + $0x1d00] sm:$0xff]  }
 0x3ae   : > { %14598 = vmatprep.subr.bf16.mxu1 %v15763_v0  ;;  %v3090_v0 = vrot.slane %v17147_v11, %v16016_v42 }
 0x3af   : > { %14577 = vmatpush3.bf16.msra.mxu0 %v15764_v1  ;;  %v15803_v1 = vld [vmem:[%s15978_s11 + $0x1e78] sm:$0xff]  }
 0x3b0   : > { %14578 = vmatprep.subr.bf16.mxu0 %v15766_v3  ;;  %v15805_v3 = vld [vmem:[%s15978_s11 + $0x1e38] sm:$0xff]  }
 0x3b1   : > { %14599 = vmatpush3.bf16.msra.mxu1 %v15765_v2  ;;  %v15804_v2 = vld [vmem:[%s15978_s11 + $0x1ef8] sm:$0xff]  }
 0x3b2   : > { %14600 = vmatprep.subr.bf16.mxu1 %v15767_v5  ;;  %v3106_v5 = vcombine.high %v3090_v0, %v3090_v0 }
 0x3b3   : > { %14579 = vmatpush3.bf16.msra.mxu0 %v15768_v8 }
 0x3b4   : > { %14608 = vmatprep.subr.bf16.mxu0 %v15770_v13  ;;  %v15811_v13 = vld [vmem:[%s15978_s11 + $0x1e68] sm:$0xff]  }
 0x3b5   : > { %14601 = vmatpush3.bf16.msra.mxu1 %v15769_v9  ;;  %v15809_v9 = vld [vmem:[%s15978_s11 + $0x1e30] sm:$0xff]  }
 0x3b6   : > { %v14316_v25 = vpop.f32.mrf.mxu0  ;;  %11703 = vmatmul.mubr.bf16.vlgmr.msra.gmra.mxu0 %v3083_v12  ;;  %14630 = vmatprep.subr.bf16.mxu1 %v15771_v15  ;;  %v15812_v15 = vld [vmem:[%s15978_s11 + $0x1ee8] sm:$0xff]  }
 0x3b7   : > { %14609 = vmatpush3.bf16.msra.mxu0 %v15772_v17  ;;  %11782 = vmatprep.mubr.bf16.mxu0 %v3104_v20 }
 0x3b8   : > { %v14338_v28 = vpop.f32.mrf.mxu1  ;;  %11743 = vmatmul.mubr.bf16.vlgmr.msra.gmra.mxu1 %v3105_v21  ;;  %v14317_v29 = vpop.f32.mrf.mxu0  ;;  %14610 = vmatprep.subr.bf16.mxu0 %v15774_v22  ;;  %v15814_v21 = vld [vmem:[%s15978_s11 + $0x1ea8] sm:$0xff]  }
 0x3b9   : > { %14631 = vmatpush3.bf16.msra.mxu1 %v15773_v19  ;;  %v14318_v31 = vadd.f32 %v14317_v29, %v14316_v25  ;;  %11822 = vmatprep.mubr.bf16.mxu1 %v3108_v24  ;;  %v15815_v24 = vld [vmem:[%s15978_s11 + $0x1e60] sm:$0xff]  }
 0x3ba   : > { %v14339_v33 = vpop.f32.mrf.mxu1  ;;  %v14319_v34 = vpop.f32.mrf.mxu0  ;;  %14632 = vmatprep.subr.bf16.mxu1 %v15775_v23  ;;  %v15818_v29 = vld [vmem:[%s15978_s11 + $0x1ea0] sm:$0xff]  }
 0x3bb   : > { %v11225_v35 = vadd.f32 %v14318_v31, %v17123_v50  ;;  %v14340_v37 = vadd.f32 %v14339_v33, %v14338_v28  ;;  %14611 = vmatpush3.bf16.msra.mxu0 %v15776_v26  ;;  %v15788_v50 = vld [vmem:[%s15978_s11 + $0x1d18] sm:$0xff]   ;;  %v15816_v26 = vld [vmem:[%s15978_s11 + $0x1ee0] sm:$0xff]   ;;  %v15823_v34 = vld [vmem:[%s15978_s11 + $0x1e50] sm:$0xff]  }
 0x3bc   : > { %v14341_v39 = vpop.f32.mrf.mxu1  ;;  %v14320_v40 = vpop.f32.mrf.mxu0  ;;  %14612 = vmatprep.subr.bf16.mxu0 %v15778_v30  ;;  %v15817_v28 = vld [vmem:[%s15978_s11 + $0x1e20] sm:$0xff]   ;;  %v15819_v30 = vld [vmem:[%s15978_s11 + $0x1e58] sm:$0xff]  }
 0x3bd   : > { %v17168_v43 = vadd.f32 %v14340_v37, %v11225_v35  ;;  %14633 = vmatpush3.bf16.msra.mxu1 %v15777_v27  ;;  %v15820_v31 = vld [vmem:[%s15978_s11 + $0x1ed8] sm:$0xff]   ;;  %v15825_v35 = vld [vmem:[%s15978_s11 + $0x1e10] sm:$0xff]   ;;  %v15828_v39 = vld [vmem:[%s15978_s11 + $0x1ec8] sm:$0xff]  }
 0x3be   : > { %v14342_v45 = vpop.f32.mrf.mxu1  ;;  %14634 = vmatprep.subr.bf16.mxu1 %v15779_v32  ;;  %v15821_v32 = vld [vmem:[%s15978_s11 + $0x1e18] sm:$0xff]   ;;  %v15826_v37 = vld [vmem:[%s15978_s11 + $0x1e90] sm:$0xff]   ;;  %v15829_v40 = vld [vmem:[%s15978_s11 + $0x1e08] sm:$0xff]  }
 0x3bf   : > { %14613 = vmatpush3.bf16.msra.mxu0 %v15780_v36  ;;  %v15822_v33 = vld [vmem:[%s15978_s11 + $0x1e98] sm:$0xff]   ;;  %v15824_v36 = vld [vmem:[%s15978_s11 + $0x1ed0] sm:$0xff]   ;;  %v15832_v45 = vld [vmem:[%s15978_s11 + $0x1ec0] sm:$0xff]  }
 0x3c0   : > { %14614 = vmatprep.subr.bf16.mxu0 %v15782_v41  ;;  %v15830_v41 = vld [vmem:[%s15978_s11 + $0x1e88] sm:$0xff]  }
 0x3c1   : > { %14635 = vmatpush3.bf16.msra.mxu1 %v15781_v38  ;;  %v15827_v38 = vld [vmem:[%s15978_s11 + $0x1e48] sm:$0xff]  }
 0x3c2   : > { %14636 = vmatprep.subr.bf16.mxu1 %v15783_v44  ;;  %v309_v44 = vld [vmem:[%s15973_s30 + $0x78] sm:$0xff] }
 0x3c3   : > { %14615 = vmatpush3.bf16.msra.mxu0 %v15784_v46  ;;  %v3116_v46 = vrot.slane %v309_v44, %v16016_v42 }
 0x3c4   : > { %14616 = vmatprep.subr.bf16.mxu0 %v15786_v48  ;;  %v15833_v48 = vld [vmem:[%s15978_s11 + $0x1e00] sm:$0xff]  }
 0x3c5   : > { %14637 = vmatpush3.bf16.msra.mxu1 %v15785_v47  ;;  %v3109_v47 = vcombine.high %v309_v44, %v309_v44 }
 0x3c6   : > { %14638 = vmatprep.subr.bf16.mxu1 %v15787_v49  ;;  %v3124_v49 = vcombine.high %v3116_v46, %v3116_v46 }
 0x3c7   : > { %14617 = vmatpush3.bf16.msra.mxu0 %v15788_v50  ;;  %v3132_v50 = vrot.slane %v3116_v46, %v16016_v42 }
 0x3c8   : > { %14618 = vmatprep.subr.bf16.mxu0 %v15790_v52  ;;  %v17230_v52 = vrot.slane %v3109_v47, %v16016_v42 }
 0x3c9   : > { %14639 = vmatpush3.bf16.msra.mxu1 %v15789_v51  ;;  %v15835_v51 = vld [vmem:[%s15978_s11 + $0x1f78] sm:$0xff]  }
 0x3ca   : > { %14640 = vmatprep.subr.bf16.mxu1 %v15791_v53  ;;  %v15834_v53 = vld [vmem:[%s15978_s11 + $0x1e80] sm:$0xff]  }
 0x3cb   : > { %14619 = vmatpush3.bf16.msra.mxu0 %v15792_v54  ;;  %v3146_v54 = vrot.slane %v3124_v49, %v16016_v42 }
 0x3cc   : > { %14620 = vmatprep.subr.bf16.mxu0 %v15794_v56  ;;  %v3125_v56 = vcombine.high %v17230_v52, %v17230_v52 }
 0x3cd   : > { %14641 = vmatpush3.bf16.msra.mxu1 %v15793_v55  ;;  %v15836_v55 = vld [vmem:[%s15978_s11 + $0x1ff8] sm:$0xff]  }
 0x3ce   : > { %14642 = vmatprep.subr.bf16.mxu1 %v15795_v57  ;;  %v15837_v57 = vld [vmem:[%s15978_s11 + $0x1f38] sm:$0xff]  }
 0x3cf   : > { %14621 = vmatpush3.bf16.msra.mxu0 %v15796_v58  ;;  %v3156_v58 = vcombine.high %v3146_v54, %v3146_v54 }
 0x3d0   : > { %14622 = vmatprep.subr.bf16.mxu0 %v15798_v61  ;;  %v15839_v61 = vld [vmem:[%s15978_s11 + $0x1f70] sm:$0xff]  }
 0x3d1   : > { %14643 = vmatpush3.bf16.msra.mxu1 %v15797_v59  ;;  %v3154_v59 = vcombine.high %v3132_v50, %v3132_v50 }
 0x3d2   : > { %14644 = vmatprep.subr.bf16.mxu1 %v15799_v60  ;;  %v3153_v60 = vrot.slane %v3125_v56, %v16016_v42 }
 0x3d3   : > { %14623 = vmatpush3.bf16.msra.mxu0 %v15800_v62  ;;  %v15838_v62 = vld [vmem:[%s15978_s11 + $0x1fb8] sm:$0xff]  }
 0x3d4   : > { %14652 = vmatprep.subr.bf16.mxu0 %v15803_v1  ;;  %v3157_v1 = vcombine.high %v3153_v60, %v3153_v60 }
 0x3d5   : > { %14645 = vmatpush3.bf16.msra.mxu1 %v15801_v63 }
 0x3d6   : > { %v14360_v8 = vpop.f32.mrf.mxu0  ;;  %11783 = vmatmul.mubr.bf16.vlgmr.msra.gmra.mxu0 %v3090_v0  ;;  %14674 = vmatprep.subr.bf16.mxu1 %v15804_v2  ;;  %v15840_v0 = vld [vmem:[%s15978_s11 + $0x1ff0] sm:$0xff]  }
 0x3d7   : > { %14653 = vmatpush3.bf16.msra.mxu0 %v15805_v3  ;;  %11862 = vmatprep.mubr.bf16.mxu0 %v3146_v54  ;;  %v15841_v2 = vld [vmem:[%s15978_s11 + $0x1f30] sm:$0xff]  }
 0x3d8   : > { %v14382_v11 = vpop.f32.mrf.mxu1  ;;  %11823 = vmatmul.mubr.bf16.vlgmr.msra.gmra.mxu1 %v3106_v5  ;;  %v14361_v12 = vpop.f32.mrf.mxu0  ;;  %14654 = vmatprep.subr.bf16.mxu0 %v15807_v6  ;;  %v15843_v5 = vld [vmem:[%s15978_s11 + $0x1f68] sm:$0xff]  }
 0x3d9   : > { %14675 = vmatpush3.bf16.msra.mxu1 %v15806_v4  ;;  %v14362_v14 = vadd.f32 %v14361_v12, %v14360_v8  ;;  %11902 = vmatprep.mubr.bf16.mxu1 %v3156_v58 }
 0x3da   : > { %v14383_v16 = vpop.f32.mrf.mxu1  ;;  %v14363_v17 = vpop.f32.mrf.mxu0  ;;  %14676 = vmatprep.subr.bf16.mxu1 %v15808_v7  ;;  %v15842_v7 = vld [vmem:[%s15978_s11 + $0x1fb0] sm:$0xff]  }
 0x3db   : > { %v11305_v19 = vadd.f32 %v14362_v14, %v17168_v43  ;;  %v14384_v20 = vadd.f32 %v14383_v16, %v14382_v11  ;;  %14655 = vmatpush3.bf16.msra.mxu0 %v15809_v9  ;;  %v15831_v43 = vld [vmem:[%s15978_s11 + $0x1e40] sm:$0xff]  }
 0x3dc   : > { %v14385_v22 = vpop.f32.mrf.mxu1  ;;  %v14364_v23 = vpop.f32.mrf.mxu0  ;;  %14656 = vmatprep.subr.bf16.mxu0 %v15811_v13  ;;  %v15845_v13 = vld [vmem:[%s15978_s11 + $0x1f28] sm:$0xff]   ;;  %v15847_v16 = vld [vmem:[%s15978_s11 + $0x1f60] sm:$0xff]  }
 0x3dd   : > { %v17205_v25 = vadd.f32 %v14384_v20, %v11305_v19  ;;  %14677 = vmatpush3.bf16.msra.mxu1 %v15810_v10  ;;  %v15844_v10 = vld [vmem:[%s15978_s11 + $0x1fe8] sm:$0xff]   ;;  %v15848_v20 = vld [vmem:[%s15978_s11 + $0x1fe0] sm:$0xff]   ;;  %v15851_v22 = vld [vmem:[%s15978_s11 + $0x1f58] sm:$0xff]  }
 0x3de   : > { %v14386_v27 = vpop.f32.mrf.mxu1  ;;  %14678 = vmatprep.subr.bf16.mxu1 %v15812_v15  ;;  %v15850_v23 = vld [vmem:[%s15978_s11 + $0x1fa0] sm:$0xff]  }
 0x3df   : > { %14657 = vmatpush3.bf16.msra.mxu0 %v15813_v18  ;;  %v15846_v18 = vld [vmem:[%s15978_s11 + $0x1fa8] sm:$0xff]   ;;  %v15854_v27 = vld [vmem:[%s15978_s11 + $0x1f98] sm:$0xff]  }
 0x3e0   : > { %14658 = vmatprep.subr.bf16.mxu0 %v15815_v24  ;;  %v15852_v24 = vld [vmem:[%s15978_s11 + $0x1fd8] sm:$0xff]  }
 0x3e1   : > { %14679 = vmatpush3.bf16.msra.mxu1 %v15814_v21  ;;  %v15849_v21 = vld [vmem:[%s15978_s11 + $0x1f20] sm:$0xff]  }
 0x3e2   : > { %14680 = vmatprep.subr.bf16.mxu1 %v15816_v26  ;;  %v15855_v26 = vld [vmem:[%s15978_s11 + $0x1f50] sm:$0xff]  }
 0x3e3   : > { %14659 = vmatpush3.bf16.msra.mxu0 %v15817_v28  ;;  %v15856_v28 = vld [vmem:[%s15978_s11 + $0x1fd0] sm:$0xff]  }
 0x3e4   : > { %14660 = vmatprep.subr.bf16.mxu0 %v15819_v30  ;;  %v15859_v30 = vld [vmem:[%s15978_s11 + $0x1f48] sm:$0xff]  }
 0x3e5   : > { %14681 = vmatpush3.bf16.msra.mxu1 %v15818_v29  ;;  %v15857_v29 = vld [vmem:[%s15978_s11 + $0x1f10] sm:$0xff]  }
 0x3e6   : > { %14682 = vmatprep.subr.bf16.mxu1 %v15820_v31  ;;  %v15858_v31 = vld [vmem:[%s15978_s11 + $0x1f90] sm:$0xff]  }
 0x3e7   : > { %14661 = vmatpush3.bf16.msra.mxu0 %v15821_v32  ;;  %v15860_v32 = vld [vmem:[%s15978_s11 + $0x1fc8] sm:$0xff]  }
 0x3e8   : > { %14662 = vmatprep.subr.bf16.mxu0 %v15823_v34  ;;  %v15863_v34 = vld [vmem:[%s15978_s11 + $0x1f40] sm:$0xff]  }
 0x3e9   : > { %14683 = vmatpush3.bf16.msra.mxu1 %v15822_v33  ;;  %v15861_v33 = vld [vmem:[%s15978_s11 + $0x1f08] sm:$0xff]  }
 0x3ea   : > { %14684 = vmatprep.subr.bf16.mxu1 %v15824_v36  ;;  %v15862_v36 = vld [vmem:[%s15978_s11 + $0x1f88] sm:$0xff]  }
 0x3eb   : > { %14663 = vmatpush3.bf16.msra.mxu0 %v15825_v35  ;;  %v15864_v35 = vld [vmem:[%s15978_s11 + $0x1fc0] sm:$0xff]  }
 0x3ec   : > { %14664 = vmatprep.subr.bf16.mxu0 %v15827_v38  ;;  %v3139_v38 = vrot.slane %v17230_v52, %v16016_v42 }
 0x3ed   : > { %14685 = vmatpush3.bf16.msra.mxu1 %v15826_v37  ;;  %v15865_v37 = vld [vmem:[%s15978_s11 + $0x1f00] sm:$0xff]  }
 0x3ee   : > { %14686 = vmatprep.subr.bf16.mxu1 %v15828_v39  ;;  %v15866_v39 = vld [vmem:[%s15978_s11 + $0x1f80] sm:$0xff]  }
 0x3ef   : > { %14665 = vmatpush3.bf16.msra.mxu0 %v15829_v40  ;;  %v3155_v40 = vcombine.high %v3139_v38, %v3139_v38 }
 0x3f0   : > { %14666 = vmatprep.subr.bf16.mxu0 %v15831_v43 }
 0x3f1   : > { %14687 = vmatpush3.bf16.msra.mxu1 %v15830_v41 }
 0x3f2   : > { %14688 = vmatprep.subr.bf16.mxu1 %v15832_v45 }
 0x3f3   : > { %14667 = vmatpush3.bf16.msra.mxu0 %v15833_v48 }
 0x3f4   : > { %14696 = vmatprep.subr.bf16.mxu0 %v15835_v51 }
 0x3f5   : > { %14689 = vmatpush3.bf16.msra.mxu1 %v15834_v53 }
 0x3f6   : > { %v14404_v63 = vpop.f32.mrf.mxu0  ;;  %11863 = vmatmul.mubr.bf16.vlgmr.msra.gmra.mxu0 %v3132_v50  ;;  %14718 = vmatprep.subr.bf16.mxu1 %v15836_v55 }
 0x3f7   : > { %14697 = vmatpush3.bf16.msra.mxu0 %v15837_v57  ;;  %11942 = vmatprep.mubr.bf16.mxu0 %v3153_v60 }
 0x3f8   : > { %v14426_v3 = vpop.f32.mrf.mxu1  ;;  %11903 = vmatmul.mubr.bf16.vlgmr.msra.gmra.mxu1 %v3154_v59  ;;  %v14405_v4 = vpop.f32.mrf.mxu0  ;;  %14698 = vmatprep.subr.bf16.mxu0 %v15839_v61 }
 0x3f9   : > { %14719 = vmatpush3.bf16.msra.mxu1 %v15838_v62  ;;  %v14406_v6 = vadd.f32 %v14405_v4, %v14404_v63  ;;  %11982 = vmatprep.mubr.bf16.mxu1 %v3157_v1 }
 0x3fa   : > { %v14427_v8 = vpop.f32.mrf.mxu1  ;;  %v14407_v9 = vpop.f32.mrf.mxu0  ;;  %14720 = vmatprep.subr.bf16.mxu1 %v15840_v0 }
 0x3fb   : > { %v11385_v11 = vadd.f32 %v14406_v6, %v17205_v25  ;;  %v14428_v12 = vadd.f32 %v14427_v8, %v14426_v3  ;;  %14699 = vmatpush3.bf16.msra.mxu0 %v15841_v2  ;;  %v15853_v25 = vld [vmem:[%s15978_s11 + $0x1f18] sm:$0xff]  }
 0x3fc   : > { %v14429_v14 = vpop.f32.mrf.mxu1  ;;  %v14408_v15 = vpop.f32.mrf.mxu0  ;;  %14700 = vmatprep.subr.bf16.mxu0 %v15843_v5 }
 0x3fd   : > { %v11425_v17 = vadd.f32 %v14428_v12, %v11385_v11  ;;  %14721 = vmatpush3.bf16.msra.mxu1 %v15842_v7 }
 0x3fe   : > { %v14430_v19 = vpop.f32.mrf.mxu1  ;;  %14722 = vmatprep.subr.bf16.mxu1 %v15844_v10 }
 0x3ff   : > { %14701 = vmatpush3.bf16.msra.mxu0 %v15845_v13 }
 0x400   : > { %14702 = vmatprep.subr.bf16.mxu0 %v15847_v16 }
 0x401   : > { %14723 = vmatpush3.bf16.msra.mxu1 %v15846_v18 }
 0x402   : > { %14724 = vmatprep.subr.bf16.mxu1 %v15848_v20 }
 0x403   : > { %14703 = vmatpush3.bf16.msra.mxu0 %v15849_v21 }
 0x404   : > { %14704 = vmatprep.subr.bf16.mxu0 %v15851_v22 }
 0x405   : > { %14725 = vmatpush3.bf16.msra.mxu1 %v15850_v23 }
 0x406   : > { %14726 = vmatprep.subr.bf16.mxu1 %v15852_v24 }
 0x407   : > { %14705 = vmatpush3.bf16.msra.mxu0 %v15853_v25 }
 0x408   : > { %14706 = vmatprep.subr.bf16.mxu0 %v15855_v26 }
 0x409   : > { %14727 = vmatpush3.bf16.msra.mxu1 %v15854_v27 }
 0x40a   : > { %14728 = vmatprep.subr.bf16.mxu1 %v15856_v28 }
 0x40b   : > { %14707 = vmatpush3.bf16.msra.mxu0 %v15857_v29 }
 0x40c   : > { %14708 = vmatprep.subr.bf16.mxu0 %v15859_v30 }
 0x40d   : > { %14729 = vmatpush3.bf16.msra.mxu1 %v15858_v31 }
 0x40e   : > { %14730 = vmatprep.subr.bf16.mxu1 %v15860_v32 }
 0x40f   : > { %14709 = vmatpush3.bf16.msra.mxu0 %v15861_v33 }
 0x410   : > { %14710 = vmatprep.subr.bf16.mxu0 %v15863_v34 }
 0x411   : > { %14731 = vmatpush3.bf16.msra.mxu1 %v15862_v36 }
 0x412   : > { %14732 = vmatprep.subr.bf16.mxu1 %v15864_v35 }
 0x413   : > { %14711 = vmatpush3.bf16.msra.mxu0 %v15865_v37 }
 0x415   : > { %14733 = vmatpush3.bf16.msra.mxu1 %v15866_v39 }
 0x416   : > { %v14448_v41 = vpop.f32.mrf.mxu0  ;;  %11943 = vmatmul.mubr.bf16.vlgmr.msra.gmra.mxu0 %v3139_v38 }
 0x418   : > { %v14470_v43 = vpop.f32.mrf.mxu1  ;;  %11983 = vmatmul.mubr.bf16.vlgmr.msra.gmra.mxu1 %v3155_v40  ;;  %v14449_v44 = vpop.f32.mrf.mxu0 }
 0x419   : > { %v14450_v45 = vadd.f32 %v14449_v44, %v14448_v41 }
 0x41a   : > { %v14471_v46 = vpop.f32.mrf.mxu1  ;;  %v14451_v47 = vpop.f32.mrf.mxu0 }
 0x41b   : > { %v11465_v48 = vadd.f32 %v14450_v45, %v11425_v17  ;;  %v14472_v49 = vadd.f32 %v14471_v46, %v14470_v43 }
 0x41c   : > { %v14473_v50 = vpop.f32.mrf.mxu1  ;;  %v14452_v51 = vpop.f32.mrf.mxu0 }
 0x41d   : > { %v11505_v53 = vadd.f32 %v14472_v49, %v11465_v48 }
 0x41e   : > { %v14474_v42 = vpop.f32.mrf.mxu1 }
 0x436   : > { %v14492_v52 = vpop.f32.mrf.mxu0 }
 0x438   : > { %v14514_v54 = vpop.f32.mrf.mxu1  ;;  %v14493_v55 = vpop.f32.mrf.mxu0 }
 0x439   : > { %v14494_v56 = vadd.f32 %v14493_v55, %v14492_v52 }
 0x43a   : > { %v14515_v57 = vpop.f32.mrf.mxu1  ;;  %v14495_v58 = vpop.f32.mrf.mxu0 }
 0x43b   : > { %v11545_v59 = vadd.f32 %v14494_v56, %v11505_v53  ;;  %v14516_v61 = vadd.f32 %v14515_v57, %v14514_v54  ;;  %v293_v57 = vld [vmem:[#allocation2] sm:$0x3] }
 0x43c   : > { %v14517_v60 = vpop.f32.mrf.mxu1  ;;  %v14496_v62 = vpop.f32.mrf.mxu0 }
 0x43d   : > { %v11585_v63 = vadd.f32 %v14516_v61, %v11545_v59 }
 0x43e   : > { %v14518_v0 = vpop.f32.mrf.mxu1 }
 0x456   : > { %v14536_v1 = vpop.f32.mrf.mxu0 }
 0x458   : > { %v14558_v2 = vpop.f32.mrf.mxu1  ;;  %v14537_v3 = vpop.f32.mrf.mxu0 }
 0x459   : > { %v14538_v4 = vadd.f32 %v14537_v3, %v14536_v1 }
 0x45a   : > { %v14559_v5 = vpop.f32.mrf.mxu1  ;;  %v14539_v6 = vpop.f32.mrf.mxu0 }
 0x45b   : > { %v11625_v7 = vadd.f32 %v14538_v4, %v11585_v63  ;;  %v14560_v8 = vadd.f32 %v14559_v5, %v14558_v2 }
 0x45c   : > { %v14561_v9 = vpop.f32.mrf.mxu1  ;;  %v14540_v10 = vpop.f32.mrf.mxu0 }
 0x45d   : > { %v11665_v11 = vadd.f32 %v14560_v8, %v11625_v7 }
 0x45e   : > { %v14562_v12 = vpop.f32.mrf.mxu1 }
 0x476   : > { %v14580_v13 = vpop.f32.mrf.mxu0 }
 0x478   : > { %v14602_v14 = vpop.f32.mrf.mxu1  ;;  %v14581_v15 = vpop.f32.mrf.mxu0 }
 0x479   : > { %v14582_v16 = vadd.f32 %v14581_v15, %v14580_v13 }
 0x47a   : > { %v14603_v17 = vpop.f32.mrf.mxu1  ;;  %v14583_v18 = vpop.f32.mrf.mxu0 }
 0x47b   : > { %v11705_v19 = vadd.f32 %v14582_v16, %v11665_v11  ;;  %v14604_v20 = vadd.f32 %v14603_v17, %v14602_v14 }
 0x47c   : > { %v14605_v21 = vpop.f32.mrf.mxu1  ;;  %v14584_v22 = vpop.f32.mrf.mxu0 }
 0x47d   : > { %v11745_v23 = vadd.f32 %v14604_v20, %v11705_v19 }
 0x47e   : > { %v14606_v24 = vpop.f32.mrf.mxu1 }
 0x496   : > { %v14624_v25 = vpop.f32.mrf.mxu0 }
 0x498   : > { %v14646_v26 = vpop.f32.mrf.mxu1  ;;  %v14625_v27 = vpop.f32.mrf.mxu0 }
 0x499   : > { %v14626_v41 = vadd.f32 %v14625_v27, %v14624_v25 }
 0x49a   : > { %v14647_v28 = vpop.f32.mrf.mxu1  ;;  %v14627_v29 = vpop.f32.mrf.mxu0 }
 0x49b   : > { %v11785_v43 = vadd.f32 %v14626_v41, %v11745_v23  ;;  %v14648_v44 = vadd.f32 %v14647_v28, %v14646_v26 }
 0x49c   : > { %v14649_v30 = vpop.f32.mrf.mxu1  ;;  %v14628_v31 = vpop.f32.mrf.mxu0 }
 0x49d   : > { %v11825_v46 = vadd.f32 %v14648_v44, %v11785_v43 }
 0x49e   : > { %v14650_v32 = vpop.f32.mrf.mxu1 }
 0x4b6   : > { %v14668_v33 = vpop.f32.mrf.mxu0 }
 0x4b8   : > { %v14690_v34 = vpop.f32.mrf.mxu1  ;;  %v14669_v36 = vpop.f32.mrf.mxu0 }
 0x4b9   : > { %v14670_v45 = vadd.f32 %v14669_v36, %v14668_v33 }
 0x4ba   : > { %v14691_v35 = vpop.f32.mrf.mxu1  ;;  %v14671_v37 = vpop.f32.mrf.mxu0 }
 0x4bb   : > { %v11865_v47 = vadd.f32 %v14670_v45, %v11825_v46  ;;  %v14692_v48 = vadd.f32 %v14691_v35, %v14690_v34 }
 0x4bc   : > { %v14693_v38 = vpop.f32.mrf.mxu1  ;;  %v14672_v39 = vpop.f32.mrf.mxu0 }
 0x4bd   : > { %v11905_v53 = vadd.f32 %v14692_v48, %v11865_v47 }
 0x4be   : > { %v14694_v40 = vpop.f32.mrf.mxu1 }
 0x4d6   : > { %v14712_v49 = vpop.f32.mrf.mxu0 }
 0x4d8   : > { %v14734_v50 = vpop.f32.mrf.mxu1  ;;  %v14713_v51 = vpop.f32.mrf.mxu0 }
 0x4d9   : > { %v14714_v42 = vadd.f32 %v14713_v51, %v14712_v49 }
 0x4da   : > { %v14735_v52 = vpop.f32.mrf.mxu1  ;;  %v14715_v54 = vpop.f32.mrf.mxu0 }
 0x4db   : > { %v11945_v55 = vadd.f32 %v14714_v42, %v11905_v53  ;;  %v14736_v56 = vadd.f32 %v14735_v52, %v14734_v50 }
 0x4dc   : > { %v14737_v58 = vpop.f32.mrf.mxu1  ;;  %v14716_v59 = vpop.f32.mrf.mxu0 }
 0x4dd   : > { %v11985_v61 = vadd.f32 %v14736_v56, %v11945_v55  ;;  %11996 = sbr.rel (%p13320_p6) target bundleno = 1737 (0x6c9), region = 56 }
 0x4de   : > { %v14738_v60 = vpop.f32.mrf.mxu1 }
 0x4df   : > { %v11990_v62 = vadd.f32 %v11985_v61, %v293_v57 }
 0x4e1   : > { %11992 = vst.msk [vmem:[#allocation2] sm:$0x3] %vm11991_vm1, %v11990_v62 }
 0x4e2   : > { %v12011_v63 = vld [vmem:[%s17381_s3 + $0x60] sm:$0xf]  ;;  %vm12065_vm2 = vcmask 1043456   ;;  %v15914_v0 = vmov 0.0   ;;  %v12010_v1 = vld [vmem:[%s17381_s3 + $0x58] sm:$0xff]  ;;  %vm15915_vm3 = vmmov 0  }
 0x4e3   : > { %14762 = vmatprep.subr.mxu0 %v15914_v0  ;;  %14791 = vmatprep.subr.mxu1 %v15914_v0  ;;  %v12009_v2 = vld [vmem:[%s17381_s3 + $0x50] sm:$0xff]  ;;  %v13321_v4 = vld [vmem:[%s17380_s2] ss:$0 sm:$0xff]  ;;  %v12008_v5 = vld [vmem:[%s17381_s3 + $0x48] sm:$0xff]  ;;  %v15916_v36 = vmov -1.0   ;;  %vm12061_vm5 = vcmask 818176  }
 0x4e4   : > { %14763 = vmatpush3.msk.msra.mxu0 %vm12065_vm2, %v12011_v63  ;;  %14788 = vmatprep.mubr.msk.f32.mxu0 %vm15915_vm3, %v15914_v0  ;;  %v12007_v7 = vld [vmem:[%s17381_s3 + $0x40] sm:$0xff]  ;;  %v12006_v9 = vld [vmem:[%s17381_s3 + $0x38] sm:$0xff]  ;;  %v12005_v11 = vld [vmem:[%s17381_s3 + $0x30] sm:$0xff]  ;;  %vm12157_vm6 = vcmask 1041408   ;;  %vm12153_vm7 = vcmask 408576   ;;  %vm12231_vm9 = vcmask 91136  }
 0x4e5   : > { %14764 = vmatprep.subr.mxu0 %v15914_v0  ;;  %14805 = vmatprep.mubr.msk.f32.mxu1 %vm15915_vm3, %v15914_v0  ;;  %v12004_v13 = vld [vmem:[%s17381_s3 + $0x28] sm:$0xff]  ;;  %v12003_v15 = vld [vmem:[%s17381_s3 + $0x20] sm:$0xff]  ;;  %v12002_v16 = vld [vmem:[%s17381_s3 + $0x18] sm:$0xff] }
 0x4e6   : > { %14765 = vmatpush3.msra.mxu0 %v12010_v1  ;;  %v12001_v17 = vld [vmem:[%s17381_s3 + $0x10] sm:$0xff]  ;;  %v12000_v19 = vld [vmem:[%s17381_s3 + $0x8] sm:$0xff]  ;;  %v11999_v20 = vld [vmem:[%s17381_s3] sm:$0xff] }
 0x4e7   : > { %14766 = vmatprep.subr.mxu0 %v15914_v0  ;;  %v12019_v43 = vld [vmem:[%s17383_s5 + $0x30] sm:$0x3]  ;;  %v12018_v44 = vld [vmem:[%s17383_s5 + $0x28] sm:$0xff]  ;;  %v12017_v45 = vld [vmem:[%s17383_s5 + $0x20] sm:$0xff] }
 0x4e8   : > { %v11997_v3 = vld [vmem:[#allocation2] sm:$0x3]  ;;  %14767 = vmatpush3.msra.mxu0 %v12009_v2  ;;  %14792 = vmatpush3.msk.msra.mxu1 %vm12157_vm6, %v12019_v43  ;;  %v12016_v46 = vld [vmem:[%s17383_s5 + $0x18] sm:$0xff]  ;;  %v12015_v47 = vld [vmem:[%s17383_s5 + $0x10] sm:$0xff] }
 0x4e9   : > { %v12027_v6 = vadd.f32 %v13321_v4, %v11997_v3  ;;  %14768 = vmatprep.subr.mxu0 %v15914_v0  ;;  %14793 = vmatprep.subr.mxu1 %v15914_v0  ;;  %v12014_v48 = vld [vmem:[%s17383_s5 + $0x8] sm:$0xff]  ;;  %v12013_v49 = vld [vmem:[%s17383_s5] sm:$0xff] }
 0x4ea   : > { %14769 = vmatpush3.msra.mxu0 %v12008_v5  ;;  %14794 = vmatpush3.msra.mxu1 %v12018_v44  ;;  %v13322_v50 = vld [vmem:[%s17382_s4] ss:$0 sm:$0xff] }
 0x4eb   : > { %v12029_v8 = vmul.f32 0.70710677, %v12027_v6  ;;  %14770 = vmatprep.subr.mxu0 %v15914_v0  ;;  %v12028_v38 = vmul.f32 0.5, %v12027_v6  ;;  %14795 = vmatprep.subr.mxu1 %v15914_v0  ;;  %v13325_v61 = vld [vmem:[%s17384_s6] ss:$0 sm:$0xff] }
 0x4ec   : > { %14771 = vmatpush3.msra.mxu0 %v12007_v7  ;;  %14796 = vmatpush3.msra.mxu1 %v12017_v45 }
 0x4ed   : > { %v12032_v10 = vand.u32 2147483647, %v12029_v8  ;;  %14772 = vmatprep.subr.mxu0 %v15914_v0  ;;  %vm12030_vm4 = vcmp.ge.f32.partialorder %v12029_v8, 0.0  ;;  %14797 = vmatprep.subr.mxu1 %v15914_v0 }
 0x4ee   : > { %14773 = vmatpush3.msra.mxu0 %v12006_v9  ;;  %v12031_v35 = vsel %vm12030_vm4, 1.0, %v15916_v36  ;;  %14798 = vmatpush3.msra.mxu1 %v12016_v46 }
 0x4ef   : > { %v12033_v12 = vmul.f32 0.3275911, %v12032_v10  ;;  %14774 = vmatprep.subr.mxu0 %v15914_v0  ;;  %v12046_v18 = vsub.f32 0.0, %v12032_v10  ;;  %14799 = vmatprep.subr.mxu1 %v15914_v0 }
 0x4f0   : > { %14775 = vmatpush3.msra.mxu0 %v12005_v11  ;;  %14800 = vmatpush3.msra.mxu1 %v12015_v47 }
 0x4f1   : > { %v12034_v14 = vadd.f32 1.0, %v12033_v12  ;;  %14776 = vmatprep.subr.mxu0 %v15914_v0  ;;  %v12047_v21 = vmul.f32 %v12046_v18, %v12032_v10  ;;  %14801 = vmatprep.subr.mxu1 %v15914_v0 }
 0x4f2   : > { %14777 = vmatpush3.msra.mxu0 %v12004_v13  ;;  %14802 = vmatpush3.msra.mxu1 %v12014_v48 }
 0x4f3   : > { %15868 = vrcp.f32 %v12034_v14  ;;  %14778 = vmatprep.subr.mxu0 %v15914_v0  ;;  %v12048_v22 = vmul.f32 1.442695, %v12047_v21  ;;  %14803 = vmatprep.subr.mxu1 %v15914_v0 }
 0x4f4   : > { %14779 = vmatpush3.msra.mxu0 %v12003_v15  ;;  %14804 = vmatpush3.msra.mxu1 %v12013_v49 }
 0x4f5   : > { %14780 = vmatprep.subr.mxu0 %v15914_v0  ;;  %15870 = vpow2.f32 %v12048_v22 }
 0x4f6   : > { %14781 = vmatpush3.msra.mxu0 %v12002_v16 }
 0x4f7   : > { %14782 = vmatprep.subr.mxu0 %v15914_v0 }
 0x4f8   : > { %14783 = vmatpush3.msra.mxu0 %v12001_v17 }
 0x4f9   : > { %14784 = vmatprep.subr.mxu0 %v15914_v0 }
 0x4fa   : > { %14785 = vmatpush3.msra.mxu0 %v12000_v19 }
 0x4fb   : > { %14786 = vmatprep.subr.mxu0 %v15914_v0 }
 0x4fc   : > { %14787 = vmatpush3.msra.mxu0 %v11999_v20 }
 0x500   : > { %v15869_v23 = vpop.eup %15868 }
 0x501   : > { %v12037_v24 = vmul.f32 1.0614054, %v15869_v23 }
 0x502   : > { %v15871_v32 = vpop.eup %15870 }
 0x503   : > { %v12038_v25 = vadd.f32 -1.4531521, %v12037_v24 }
 0x505   : > { %v12039_v26 = vmul.f32 %v15869_v23, %v12038_v25 }
 0x507   : > { %v12040_v27 = vadd.f32 1.4214138, %v12039_v26 }
 0x509   : > { %v12041_v28 = vmul.f32 %v15869_v23, %v12040_v27 }
 0x50b   : > { %v12042_v29 = vadd.f32 -0.28449672, %v12041_v28 }
 0x50d   : > { %v12043_v30 = vmul.f32 %v15869_v23, %v12042_v29 }
 0x50f   : > { %v12044_v31 = vadd.f32 0.2548296, %v12043_v30 }
 0x511   : > { %v12045_v33 = vmul.f32 %v15869_v23, %v12044_v31 }
 0x513   : > { %v12050_v34 = vmul.f32 %v15871_v32, %v12045_v33 }
 0x515   : > { %v12051_v37 = vsub.f32 1.0, %v12050_v34 }
 0x517   : > { %v12052_v39 = vmul.f32 %v12051_v37, %v12031_v35 }
 0x519   : > { %v12053_v40 = vadd.f32 1.0, %v12052_v39 }
 0x51b   : > { %v12054_v41 = vmul.f32 %v12053_v40, %v12028_v38 }
 0x51d   : > { %14789 = vmatmul.mubr.msk.f32.vlgmr.msra.gmra.mxu0 %vm12061_vm5, %v12054_v41 }
 0x5dd   : > { %v12135_v51 = vpop.f32.mrf.mxu0 }
 0x5de   : > { %v12136_v53 = vadd.f32 %v13322_v50, %v12135_v51 }
 0x5df   : > { %v14790_v42 = vpop.f32.mrf.mxu0 }
 0x5e0   : > { %v12140_v52 = vmin.f32 %v12136_v53, 20.0  ;;  %vm12139_vm8 = vcmp.gt.f32.partialorder %v12136_v53, 20.0 }
 0x5e2   : > { %v12141_v54 = vmul.f32 1.442695, %v12140_v52 }
 0x5e4   : > { %15872 = vpow2.f32 %v12141_v54 }
 0x5f1   : > { %v15873_v55 = vpop.eup %15872 }
 0x5f2   : > { %v12143_v56 = vadd.f32 1.0, %v15873_v55 }
 0x5f4   : > { %15874 = vlog2.f32 %v12143_v56 }
 0x601   : > { %v15875_v57 = vpop.eup %15874 }
 0x602   : > { %v12145_v58 = vmul.f32 0.6931472, %v15875_v57 }
 0x604   : > { %v12146_v59 = vsel %vm12139_vm8, %v12136_v53, %v12145_v58 }
 0x605   : > { %14806 = vmatmul.mubr.msk.f32.vlgmr.msra.gmra.mxu1 %vm12153_vm7, %v12146_v59 }
 0x6c5   : > { %v12227_v60 = vpop.f32.mrf.mxu1 }
 0x6c6   : > { %v12228_v62 = vadd.f32 %v13325_v61, %v12227_v60 }
 0x6c7   : > { %v14807_v63 = vpop.f32.mrf.mxu1 }
 0x6c8   : > { %12232 = vst.msk [vmem:[#allocation3] sm:$0x3] %vm12231_vm9, %v12228_v62 }
 0x6c9 PF: > { %p14812_p7 = scmp.eq.s32.totalorder %s15964_s25, 3  ;;  %s15917_s16 = smov [#allocation3]  }
 0x6ca   : > { %s12240_s17 = sshll.u32 %s15917_s16, 4  ;;  %s12241_s17 = int_to_ptr.vmem [resolvable:$true] %s12240_s17 }
 0x6cb   : > { %s15876_s18 = scalar_lea.vmem %s12241_s17, 32  ;;  %p15883_p11 = scmp.lt.s32.totalorder %s12241_s17, %s12241_s17 }
 0x6cc   : > { %p15877_p8 = scmp.ne.s32.totalorder %s12241_s17, %s15876_s18  ;;  %p15884_p12 = scmp.lt.s32.totalorder %s15876_s18, %s15876_s18 }
 0x6ce   : > { %p15878_p9 = pnand %p15877_p8, %p14812_p7  ;;  %p15885_p13 = por %p15884_p12, %p15883_p11 }
 0x6d0   : > { %p15879_p10 = pneg %p15878_p9 }
 0x6d2   : > { %p15886_p0 = pnand %p15885_p13, %p15879_p10 }
 0x6d4   : > { %15889 = shalt.err (!%p15886_p0)
}
 0x6d5   : > { %14809 = dma.vmem_to_hbm [thread:$0]  (%p14812_p7), %s12241_s17, 32, %s17385_s7, [#allocation4]  }
 0x6d6   : > { %15905 = dma.done.wait (%p14812_p7), [#allocation4], 32  }
 0x6d7   : > { %15907 = vsyncadd (%p14812_p7), [#allocation4], 4294967264 }
 0x6d8 PF: > { %s18_s24 = sadd.s32 1, %s15910_s24  }
 0x6d9   : > { %p15_p1 = scmp.ge.s32.totalorder %s18_s24, 6  }
 0x6db   :  { %17 = sbr.rel (!%p15_p1) target bundleno = 1 (0x1), region = 86 }
 0x6e0   :  { %12253 = vsyncpa [#allocation4], 1 }
 0x6e1   :  { %12255 = vsyncpa [#allocation4 + $0x1], 1 }

</bundles_post_ra>
